<compile_context>
chip_gen: v7x
topology: tpu7x:2x2x1
jax: 0.10.0
libtpu: 0.0.40
codegen_flags: <defaults>
</compile_context>

<pallas_src>
import numpy as np

import jax
import jax.numpy as jnp
from jax.experimental import pallas as pl
from jax.experimental.pallas import tpu as pltpu


# ----------------------------------------------------------------------------
# Model config (synthetic VQVAE wrapped by vae_classifier; forward-only)
# ----------------------------------------------------------------------------
IN_CH = 4          # input channels
HIDDEN = 32        # vae.hidden_dims
CODEBOOK = 64      # VQ codebook entries
HEAD_CH = 128      # head conv channels
N_CLASSES = 10
NC_PAD = 128       # lane-dense padded classifier width

H_IN = 16          # input spatial (square)
H_LAT = 8          # after encoder conv1 (k4 s2 p1)
H_MID = 4          # after head conv1   (k3 s2 p1)
H_TOP = 2          # after head conv2   (k3 s2 p1)

# Padded, w-major "flat" activation layouts (row = w_pad*pitch + h_pad,
# lanes = channels).  With this layout a 3x3 tap (di, dj) of a stride-s conv
# is a single row-slice read at offset dj*pitch + di with row-stride s.
LAT_PITCH = H_LAT + 2                    # 10 : padded 10x10 latent grid
LAT_ROWS = 104                           # 100 used, rounded up; tail zeroed
MID_PITCH = H_MID + 2                    # 6  : padded 6x6 mid grid
MID_ROWS = MID_PITCH * MID_PITCH         # 36

F2 = LAT_PITCH * (H_LAT - 1) + H_LAT     # 78 : enc-conv2 / VQ working frame
F3 = LAT_PITCH * (H_MID - 1) + H_MID     # 34 : head-conv1 working frame
F4 = MID_PITCH * (H_TOP - 1) + H_TOP     # 8  : head-conv2 working frame

# Padding-border row ranges that must be zero (interiors are rewritten).
_LAT_ZERO = ((0, 11),) + tuple((10 * k + 9, 2) for k in range(1, 8)) + ((89, 15),)
_MID_ZERO = ((0, 7), (11, 2), (17, 2), (23, 2))


# ----------------------------------------------------------------------------
# Fused Pallas kernel: one grid step == one image
# ----------------------------------------------------------------------------
def _fused_kernel(x_ref, w1_ref, b1_ref, w2_ref, b2_ref,
                  cb_ref, cbt_ref, cbsq_ref,
                  w3_ref, b3_ref, w4_ref, b4_ref, fcw_ref, fcb_ref,
                  o_ref,
                  zbufp, qbufp, hbufp):
    f32 = jnp.float32
    bf16 = jnp.bfloat16

    def zero_rows(buf, ranges):
        for start, n in ranges:
            buf[pl.ds(start, n), :] = jnp.zeros((n, buf.shape[1]), f32)

    def tap_conv(src_ref, w_ref, bias_ref, pitch, frame, stride, relu):
        """3x3 conv as 9 raw-weight MXU matmuls on the padded flat layout."""
        acc = None
        for t in range(9):
            dj, di = divmod(t, 3)
            if stride == 1:
                lhs = src_ref[pl.ds(pitch * dj + di, frame), :]
            else:
                lhs = src_ref[pl.ds(pitch * dj + di, frame, stride=stride), :]
            term = jnp.dot(lhs.astype(bf16), w_ref[t], preferred_element_type=f32)
            acc = term if acc is None else acc + term
        acc = acc + bias_ref[...]
        if relu:
            acc = jnp.maximum(acc, 0.0)
        return acc

    # Zero only the padding-border rows; interiors are fully overwritten below.
    zero_rows(zbufp, _LAT_ZERO)
    zero_rows(qbufp, _LAT_ZERO)
    zero_rows(hbufp, _MID_ZERO)

    # ---- encoder conv1: 4x4, stride 2, pad 1, 4 -> 32, ReLU ----------------
    # One folded (block-Toeplitz) matmul: the 4 kernel-row slices are lane-
    # concatenated so the kh accumulation happens inside the MXU.
    lhs1 = jnp.concatenate(
        [x_ref[pl.ds(i, H_LAT, stride=2), :] for i in range(4)], axis=1)
    out1 = jnp.dot(lhs1.astype(bf16), w1_ref[...], preferred_element_type=f32)
    out1 = jnp.maximum(out1 + b1_ref[...], 0.0)                    # (8, 256)

    # Scatter (H, W*C) -> padded w-major flat layout (8 contiguous row stores).
    for w in range(H_LAT):
        zbufp[pl.ds(LAT_PITCH * w + LAT_PITCH + 1, H_LAT), :] = \
            out1[:, HIDDEN * w:HIDDEN * (w + 1)]

    # ---- encoder conv2: 3x3, stride 1, pad 1, 32 -> 32 (no ReLU) -----------
    z = tap_conv(zbufp, w2_ref, b2_ref, LAT_PITCH, F2, 1, False)   # (78, 32)

    # ---- VQ quantizer: fully vectorized (one cross matmul, one argmin) -----
    cross = jnp.dot(z, cbt_ref[...], preferred_element_type=f32)   # (78, 64)
    # ||z||^2 dropped: argmin over codes is invariant to a per-row constant.
    dist = cbsq_ref[...] - 2.0 * cross                              # (78, 64)
    iota = jax.lax.broadcasted_iota(jnp.int32, dist.shape, 1)
    min_d = jnp.min(dist, axis=-1, keepdims=True)
    idx = jnp.min(jnp.where(dist == min_d, iota, CODEBOOK),
                  axis=-1, keepdims=True)                           # first-index ties
    onehot = (iota == idx).astype(f32)
    q = jnp.dot(onehot, cb_ref[...], preferred_element_type=f32)    # (78, 32)
    for w in range(H_LAT):
        qbufp[pl.ds(LAT_PITCH * w + LAT_PITCH + 1, H_LAT), :] = \
            q[LAT_PITCH * w:LAT_PITCH * w + H_LAT, :]

    # ---- head conv1: 3x3, stride 2, pad 1, 32 -> 128, ReLU -----------------
    h1 = tap_conv(qbufp, w3_ref, b3_ref, LAT_PITCH, F3, 2, True)    # (34, 128)
    for w in range(H_MID):
        hbufp[pl.ds(MID_PITCH * w + MID_PITCH + 1, H_MID), :] = \
            h1[LAT_PITCH * w:LAT_PITCH * w + H_MID, :]

    # ---- head conv2: 3x3, stride 2, pad 1, 128 -> 128, ReLU ----------------
    h2 = tap_conv(hbufp, w4_ref, b4_ref, MID_PITCH, F4, 2, True)    # (8, 128)

    # ---- AdaptiveAvgPool2d((1,1)) + Flatten + Linear (128-lane padded) -----
    # Valid output positions sit at frame rows {0, 1, 6, 7}.
    pooled = (h2[0:1] + h2[1:2] + h2[6:7] + h2[7:8]) * 0.25         # (1, 128)
    logits = jnp.dot(pooled.astype(bf16), fcw_ref[...],
                     preferred_element_type=f32) + fcb_ref[...]
    o_ref[...] = logits.astype(o_ref.dtype)                         # lane-dense


# ----------------------------------------------------------------------------
# Forward wrapper
# ----------------------------------------------------------------------------
def vae_classifier_forward(x_nchw, kp):
    B = x_nchw.shape[0]
    # Boundary layout plumbing only: NCHW -> NHWC -> (B, H, W*C); pad H rows.
    x = jnp.transpose(x_nchw, (0, 2, 3, 1)).astype(jnp.float32)
    x = x.reshape(B, H_IN, H_IN * IN_CH)
    x = jnp.pad(x, ((0, 0), (1, 1), (0, 0)))                        # (B, 18, 64)

    flops = 2 * B * (
        H_LAT * (4 * H_IN * IN_CH) * (H_LAT * HIDDEN)               # enc conv1
        + 9 * F2 * HIDDEN * HIDDEN                                   # enc conv2
        + F2 * HIDDEN * CODEBOOK + F2 * CODEBOOK * HIDDEN            # VQ
        + 9 * F3 * HIDDEN * HEAD_CH                                  # head conv1
        + 9 * F4 * HEAD_CH * HEAD_CH                                 # head conv2
        + NC_PAD * HEAD_CH)                                          # fc
    bytes_accessed = int(x.size) * 4 + B * NC_PAD * 4 + sum(
        int(np.prod(v.shape)) * v.dtype.itemsize for v in kp.values())

    def full(a):
        return pl.BlockSpec(a.shape, lambda b: (0,) * a.ndim)

    out = pl.pallas_call(
        _fused_kernel,
        out_shape=jax.ShapeDtypeStruct((B, 1, NC_PAD), jnp.float32),
        grid=(B,),
        in_specs=[
            pl.BlockSpec((None, H_IN + 2, H_IN * IN_CH), lambda b: (b, 0, 0)),
            full(kp["w1f"]), full(kp["b1t"]),
            full(kp["w2r"]), full(kp["b2"]),
            full(kp["cb"]), full(kp["cbt"]), full(kp["cbsq"]),
            full(kp["w3r"]), full(kp["b3"]),
            full(kp["w4r"]), full(kp["b4"]),
            full(kp["fcw"]), full(kp["fcb"]),
        ],
        out_specs=pl.BlockSpec((None, 1, NC_PAD), lambda b: (b, 0, 0)),
        scratch_shapes=[
            pltpu.VMEM((LAT_ROWS, HIDDEN), jnp.float32),    # zbufp (104, 32)
            pltpu.VMEM((LAT_ROWS, HIDDEN), jnp.float32),    # qbufp (104, 32)
            pltpu.VMEM((MID_ROWS, HEAD_CH), jnp.float32),   # hbufp (36, 128)
        ],
        compiler_params=pltpu.CompilerParams(
            dimension_semantics=("parallel",)),             # v7x: 2 TCs on batch
        cost_estimate=pl.CostEstimate(
            flops=flops, transcendentals=0, bytes_accessed=bytes_accessed),
    )(x, kp["w1f"], kp["b1t"], kp["w2r"], kp["b2"],
      kp["cb"], kp["cbt"], kp["cbsq"],
      kp["w3r"], kp["b3"], kp["w4r"], kp["b4"], kp["fcw"], kp["fcb"])

    return out.reshape(B, NC_PAD)[:, :N_CLASSES]


# ----------------------------------------------------------------------------
# One-time weight preprocessing (host side, numpy)
# ----------------------------------------------------------------------------
def _fold_conv1_weight(w_hwio, stride, pad, w_in, w_out):
    """Encoder conv1 only: fold W taps + W zero-padding of an HWIO weight into
    a 2-D block-Toeplitz matrix (kh*W_in*Cin, W_out*Cout) so the conv is one
    MXU matmul against lane-concatenated kernel-row slices."""
    w_np = np.asarray(w_hwio, np.float32)
    kh, kw, cin, cout = w_np.shape
    wf = np.zeros((kh, w_in * cin, w_out * cout), np.float32)
    for i in range(kh):
        for ow in range(w_out):
            for j in range(kw):
                wsrc = stride * ow + j - pad
                if 0 <= wsrc < w_in:
                    wf[i, wsrc * cin:(wsrc + 1) * cin,
                       ow * cout:(ow + 1) * cout] = w_np[i, j]
    return wf.reshape(kh * w_in * cin, w_out * cout)


def _taps(w_hwio):
    """Raw 3x3 weight as 9 (Cin, Cout) taps, ordered t = dj*3 + di (W-major)
    to match the in-kernel flat-layout offsets."""
    w_np = np.asarray(w_hwio, np.float32)
    kh, kw, cin, cout = w_np.shape
    return np.transpose(w_np, (1, 0, 2, 3)).reshape(kw * kh, cin, cout)


def prepare_kernel_params(raw):
    cb = np.asarray(raw["codebook"], np.float32)
    fcw = np.zeros((HEAD_CH, NC_PAD), np.float32)
    fcw[:, :N_CLASSES] = np.asarray(raw["fc_w"], np.float32)
    fcb = np.zeros((1, NC_PAD), np.float32)
    fcb[0, :N_CLASSES] = np.asarray(raw["fc_b"], np.float32)

    return {
        "w1f": jnp.asarray(_fold_conv1_weight(raw["enc_w1"], 2, 1, H_IN, H_LAT),
                           jnp.bfloat16),                                 # (256, 256)
        "b1t": jnp.asarray(np.tile(np.asarray(raw["enc_b1"], np.float32),
                                   H_LAT)[None, :]),                      # (1, 256)
        "w2r": jnp.asarray(_taps(raw["enc_w2"]), jnp.bfloat16),           # (9, 32, 32)
        "b2": jnp.asarray(np.asarray(raw["enc_b2"], np.float32)[None, :]),
        "cb": jnp.asarray(cb),                                 # (K, D) one-hot gather
        "cbt": jnp.asarray(np.ascontiguousarray(cb.T)),        # (D, K) cross term
        "cbsq": jnp.asarray((cb * cb).sum(axis=1)[None, :]),   # (1, K)
        "w3r": jnp.asarray(_taps(raw["head_w1"]), jnp.bfloat16),          # (9, 32, 128)
        "b3": jnp.asarray(np.asarray(raw["head_b1"], np.float32)[None, :]),
        "w4r": jnp.asarray(_taps(raw["head_w2"]), jnp.bfloat16),          # (9, 128, 128)
        "b4": jnp.asarray(np.asarray(raw["head_b2"], np.float32)[None, :]),
        "fcw": jnp.asarray(fcw, jnp.bfloat16),
        "fcb": jnp.asarray(fcb),
    }


def init_raw_params(key):
    # Synthetic VQVAE encoder / quantizer / head params (HWIO conv weights),
    # structurally matching the PyTorch module (quantized_type == 'vq').
    ks = jax.random.split(key, 10)
    s = 0.1
    return {
        "enc_w1": s * jax.random.normal(ks[0], (4, 4, IN_CH, HIDDEN), jnp.float32),
        "enc_b1": s * jax.random.normal(ks[1], (HIDDEN,), jnp.float32),
        "enc_w2": s * jax.random.normal(ks[2], (3, 3, HIDDEN, HIDDEN), jnp.float32),
        "enc_b2": s * jax.random.normal(ks[3], (HIDDEN,), jnp.float32),
        "codebook": s * jax.random.normal(ks[4], (CODEBOOK, HIDDEN), jnp.float32),
        "head_w1": s * jax.random.normal(ks[5], (3, 3, HIDDEN, HEAD_CH), jnp.float32),
        "head_b1": s * jax.random.normal(ks[6], (HEAD_CH,), jnp.float32),
        "head_w2": s * jax.random.normal(ks[7], (3, 3, HEAD_CH, HEAD_CH), jnp.float32),
        "head_b2": s * jax.random.normal(ks[8], (HEAD_CH,), jnp.float32),
        "fc_w": s * jax.random.normal(ks[9], (HEAD_CH, N_CLASSES), jnp.float32),
        "fc_b": jnp.zeros((N_CLASSES,), jnp.float32),
    }


if __name__ == "__main__":
    key = jax.random.PRNGKey(0)
    k_param, k_x = jax.random.split(key)
    raw = init_raw_params(k_param)
    kp = prepare_kernel_params(raw)
    x = jax.random.normal(k_x, (2, IN_CH, H_IN, H_IN), jnp.float32)   # NCHW like PyTorch

    fwd = jax.jit(vae_classifier_forward)
    logits = fwd(x, kp)
    jax.block_until_ready(logits)

    assert logits.shape == (2, N_CLASSES), logits.shape
    assert bool(jnp.all(jnp.isfinite(logits))), "non-finite logits"
    print("KERNEL_OK")
</pallas_src>

<mosaic_0001>
module attributes {stable_mosaic.version = 11 : i64} {
  func.func @_fused_kernel(%arg0: i32, %arg1: memref<1x18x64xf32, #tpu.memory_space<vmem>>, %arg2: memref<256x256xbf16, #tpu.memory_space<vmem>>, %arg3: memref<1x256xf32, #tpu.memory_space<vmem>>, %arg4: memref<9x32x32xbf16, #tpu.memory_space<vmem>>, %arg5: memref<1x32xf32, #tpu.memory_space<vmem>>, %arg6: memref<64x32xf32, #tpu.memory_space<vmem>>, %arg7: memref<32x64xf32, #tpu.memory_space<vmem>>, %arg8: memref<1x64xf32, #tpu.memory_space<vmem>>, %arg9: memref<9x32x128xbf16, #tpu.memory_space<vmem>>, %arg10: memref<1x128xf32, #tpu.memory_space<vmem>>, %arg11: memref<9x128x128xbf16, #tpu.memory_space<vmem>>, %arg12: memref<1x128xf32, #tpu.memory_space<vmem>>, %arg13: memref<128x128xbf16, #tpu.memory_space<vmem>>, %arg14: memref<1x128xf32, #tpu.memory_space<vmem>>, %arg15: memref<1x1x128xf32, #tpu.memory_space<vmem>>, %arg16: memref<104x32xf32, #tpu.memory_space<vmem>>, %arg17: memref<104x32xf32, #tpu.memory_space<vmem>>, %arg18: memref<36x128xf32, #tpu.memory_space<vmem>>) attributes {dimension_semantics = [#tpu.dimension_semantics<parallel>], iteration_bounds = array<i64: 2>, scalar_prefetch = 0 : i64, scratch_operands = 3 : i64, tpu.core_type = #tpu.core_type<tc>, window_params = [{transform_indices = @transform_0, window_bounds = array<i64: 1, 18, 64>}, {pipeline_mode = #tpu.pipeline_mode<synchronous>, transform_indices = @transform_1, window_bounds = array<i64: 256, 256>}, {pipeline_mode = #tpu.pipeline_mode<synchronous>, transform_indices = @transform_2, window_bounds = array<i64: 1, 256>}, {pipeline_mode = #tpu.pipeline_mode<synchronous>, transform_indices = @transform_3, window_bounds = array<i64: 9, 32, 32>}, {pipeline_mode = #tpu.pipeline_mode<synchronous>, transform_indices = @transform_4, window_bounds = array<i64: 1, 32>}, {pipeline_mode = #tpu.pipeline_mode<synchronous>, transform_indices = @transform_5, window_bounds = array<i64: 64, 32>}, {pipeline_mode = #tpu.pipeline_mode<synchronous>, transform_indices = @transform_6, window_bounds = array<i64: 32, 64>}, {pipeline_mode = #tpu.pipeline_mode<synchronous>, transform_indices = @transform_7, window_bounds = array<i64: 1, 64>}, {pipeline_mode = #tpu.pipeline_mode<synchronous>, transform_indices = @transform_8, window_bounds = array<i64: 9, 32, 128>}, {pipeline_mode = #tpu.pipeline_mode<synchronous>, transform_indices = @transform_9, window_bounds = array<i64: 1, 128>}, {pipeline_mode = #tpu.pipeline_mode<synchronous>, transform_indices = @transform_10, window_bounds = array<i64: 9, 128, 128>}, {pipeline_mode = #tpu.pipeline_mode<synchronous>, transform_indices = @transform_11, window_bounds = array<i64: 1, 128>}, {pipeline_mode = #tpu.pipeline_mode<synchronous>, transform_indices = @transform_12, window_bounds = array<i64: 128, 128>}, {pipeline_mode = #tpu.pipeline_mode<synchronous>, transform_indices = @transform_13, window_bounds = array<i64: 1, 128>}, {transform_indices = @transform_14, window_bounds = array<i64: 1, 1, 128>}]} {
    %cst = arith.constant 0.000000e+00 : f32
    %0 = vector.broadcast %cst : f32 to vector<11x32xf32>
    %c0 = arith.constant 0 : index
    %c0_0 = arith.constant 0 : index
    %1 = vector.load %arg16[%c0, %c0_0] : memref<104x32xf32, #tpu.memory_space<vmem>>, vector<11x32xf32>
    tpu.vector_store %arg16[%c0, %c0_0], %0 {strides = array<i32>} : memref<104x32xf32, #tpu.memory_space<vmem>>, vector<11x32xf32>,
    %cst_1 = arith.constant 0.000000e+00 : f32
    %2 = vector.broadcast %cst_1 : f32 to vector<2x32xf32>
    %c19 = arith.constant 19 : index
    %c0_2 = arith.constant 0 : index
    %3 = vector.load %arg16[%c19, %c0_2] : memref<104x32xf32, #tpu.memory_space<vmem>>, vector<2x32xf32>
    tpu.vector_store %arg16[%c19, %c0_2], %2 {strides = array<i32>} : memref<104x32xf32, #tpu.memory_space<vmem>>, vector<2x32xf32>,
    %cst_3 = arith.constant 0.000000e+00 : f32
    %4 = vector.broadcast %cst_3 : f32 to vector<2x32xf32>
    %c29 = arith.constant 29 : index
    %c0_4 = arith.constant 0 : index
    %5 = vector.load %arg16[%c29, %c0_4] : memref<104x32xf32, #tpu.memory_space<vmem>>, vector<2x32xf32>
    tpu.vector_store %arg16[%c29, %c0_4], %4 {strides = array<i32>} : memref<104x32xf32, #tpu.memory_space<vmem>>, vector<2x32xf32>,
    %cst_5 = arith.constant 0.000000e+00 : f32
    %6 = vector.broadcast %cst_5 : f32 to vector<2x32xf32>
    %c39 = arith.constant 39 : index
    %c0_6 = arith.constant 0 : index
    %7 = vector.load %arg16[%c39, %c0_6] : memref<104x32xf32, #tpu.memory_space<vmem>>, vector<2x32xf32>
    tpu.vector_store %arg16[%c39, %c0_6], %6 {strides = array<i32>} : memref<104x32xf32, #tpu.memory_space<vmem>>, vector<2x32xf32>,
    %cst_7 = arith.constant 0.000000e+00 : f32
    %8 = vector.broadcast %cst_7 : f32 to vector<2x32xf32>
    %c49 = arith.constant 49 : index
    %c0_8 = arith.constant 0 : index
    %9 = vector.load %arg16[%c49, %c0_8] : memref<104x32xf32, #tpu.memory_space<vmem>>, vector<2x32xf32>
    tpu.vector_store %arg16[%c49, %c0_8], %8 {strides = array<i32>} : memref<104x32xf32, #tpu.memory_space<vmem>>, vector<2x32xf32>,
    %cst_9 = arith.constant 0.000000e+00 : f32
    %10 = vector.broadcast %cst_9 : f32 to vector<2x32xf32>
    %c59 = arith.constant 59 : index
    %c0_10 = arith.constant 0 : index
    %11 = vector.load %arg16[%c59, %c0_10] : memref<104x32xf32, #tpu.memory_space<vmem>>, vector<2x32xf32>
    tpu.vector_store %arg16[%c59, %c0_10], %10 {strides = array<i32>} : memref<104x32xf32, #tpu.memory_space<vmem>>, vector<2x32xf32>,
    %cst_11 = arith.constant 0.000000e+00 : f32
    %12 = vector.broadcast %cst_11 : f32 to vector<2x32xf32>
    %c69 = arith.constant 69 : index
    %c0_12 = arith.constant 0 : index
    %13 = vector.load %arg16[%c69, %c0_12] : memref<104x32xf32, #tpu.memory_space<vmem>>, vector<2x32xf32>
    tpu.vector_store %arg16[%c69, %c0_12], %12 {strides = array<i32>} : memref<104x32xf32, #tpu.memory_space<vmem>>, vector<2x32xf32>,
    %cst_13 = arith.constant 0.000000e+00 : f32
    %14 = vector.broadcast %cst_13 : f32 to vector<2x32xf32>
    %c79 = arith.constant 79 : index
    %c0_14 = arith.constant 0 : index
    %15 = vector.load %arg16[%c79, %c0_14] : memref<104x32xf32, #tpu.memory_space<vmem>>, vector<2x32xf32>
    tpu.vector_store %arg16[%c79, %c0_14], %14 {strides = array<i32>} : memref<104x32xf32, #tpu.memory_space<vmem>>, vector<2x32xf32>,
    %cst_15 = arith.constant 0.000000e+00 : f32
    %16 = vector.broadcast %cst_15 : f32 to vector<15x32xf32>
    %c89 = arith.constant 89 : index
    %c0_16 = arith.constant 0 : index
    %17 = vector.load %arg16[%c89, %c0_16] : memref<104x32xf32, #tpu.memory_space<vmem>>, vector<15x32xf32>
    tpu.vector_store %arg16[%c89, %c0_16], %16 {strides = array<i32>} : memref<104x32xf32, #tpu.memory_space<vmem>>, vector<15x32xf32>,
    %cst_17 = arith.constant 0.000000e+00 : f32
    %18 = vector.broadcast %cst_17 : f32 to vector<11x32xf32>
    %c0_18 = arith.constant 0 : index
    %c0_19 = arith.constant 0 : index
    %19 = vector.load %arg17[%c0_18, %c0_19] : memref<104x32xf32, #tpu.memory_space<vmem>>, vector<11x32xf32>
    tpu.vector_store %arg17[%c0_18, %c0_19], %18 {strides = array<i32>} : memref<104x32xf32, #tpu.memory_space<vmem>>, vector<11x32xf32>,
    %cst_20 = arith.constant 0.000000e+00 : f32
    %20 = vector.broadcast %cst_20 : f32 to vector<2x32xf32>
    %c19_21 = arith.constant 19 : index
    %c0_22 = arith.constant 0 : index
    %21 = vector.load %arg17[%c19_21, %c0_22] : memref<104x32xf32, #tpu.memory_space<vmem>>, vector<2x32xf32>
    tpu.vector_store %arg17[%c19_21, %c0_22], %20 {strides = array<i32>} : memref<104x32xf32, #tpu.memory_space<vmem>>, vector<2x32xf32>,
    %cst_23 = arith.constant 0.000000e+00 : f32
    %22 = vector.broadcast %cst_23 : f32 to vector<2x32xf32>
    %c29_24 = arith.constant 29 : index
    %c0_25 = arith.constant 0 : index
    %23 = vector.load %arg17[%c29_24, %c0_25] : memref<104x32xf32, #tpu.memory_space<vmem>>, vector<2x32xf32>
    tpu.vector_store %arg17[%c29_24, %c0_25], %22 {strides = array<i32>} : memref<104x32xf32, #tpu.memory_space<vmem>>, vector<2x32xf32>,
    %cst_26 = arith.constant 0.000000e+00 : f32
    %24 = vector.broadcast %cst_26 : f32 to vector<2x32xf32>
    %c39_27 = arith.constant 39 : index
    %c0_28 = arith.constant 0 : index
    %25 = vector.load %arg17[%c39_27, %c0_28] : memref<104x32xf32, #tpu.memory_space<vmem>>, vector<2x32xf32>
    tpu.vector_store %arg17[%c39_27, %c0_28], %24 {strides = array<i32>} : memref<104x32xf32, #tpu.memory_space<vmem>>, vector<2x32xf32>,
    %cst_29 = arith.constant 0.000000e+00 : f32
    %26 = vector.broadcast %cst_29 : f32 to vector<2x32xf32>
    %c49_30 = arith.constant 49 : index
    %c0_31 = arith.constant 0 : index
    %27 = vector.load %arg17[%c49_30, %c0_31] : memref<104x32xf32, #tpu.memory_space<vmem>>, vector<2x32xf32>
    tpu.vector_store %arg17[%c49_30, %c0_31], %26 {strides = array<i32>} : memref<104x32xf32, #tpu.memory_space<vmem>>, vector<2x32xf32>,
    %cst_32 = arith.constant 0.000000e+00 : f32
    %28 = vector.broadcast %cst_32 : f32 to vector<2x32xf32>
    %c59_33 = arith.constant 59 : index
    %c0_34 = arith.constant 0 : index
    %29 = vector.load %arg17[%c59_33, %c0_34] : memref<104x32xf32, #tpu.memory_space<vmem>>, vector<2x32xf32>
    tpu.vector_store %arg17[%c59_33, %c0_34], %28 {strides = array<i32>} : memref<104x32xf32, #tpu.memory_space<vmem>>, vector<2x32xf32>,
    %cst_35 = arith.constant 0.000000e+00 : f32
    %30 = vector.broadcast %cst_35 : f32 to vector<2x32xf32>
    %c69_36 = arith.constant 69 : index
    %c0_37 = arith.constant 0 : index
    %31 = vector.load %arg17[%c69_36, %c0_37] : memref<104x32xf32, #tpu.memory_space<vmem>>, vector<2x32xf32>
    tpu.vector_store %arg17[%c69_36, %c0_37], %30 {strides = array<i32>} : memref<104x32xf32, #tpu.memory_space<vmem>>, vector<2x32xf32>,
    %cst_38 = arith.constant 0.000000e+00 : f32
    %32 = vector.broadcast %cst_38 : f32 to vector<2x32xf32>
    %c79_39 = arith.constant 79 : index
    %c0_40 = arith.constant 0 : index
    %33 = vector.load %arg17[%c79_39, %c0_40] : memref<104x32xf32, #tpu.memory_space<vmem>>, vector<2x32xf32>
    tpu.vector_store %arg17[%c79_39, %c0_40], %32 {strides = array<i32>} : memref<104x32xf32, #tpu.memory_space<vmem>>, vector<2x32xf32>,
    %cst_41 = arith.constant 0.000000e+00 : f32
    %34 = vector.broadcast %cst_41 : f32 to vector<15x32xf32>
    %c89_42 = arith.constant 89 : index
    %c0_43 = arith.constant 0 : index
    %35 = vector.load %arg17[%c89_42, %c0_43] : memref<104x32xf32, #tpu.memory_space<vmem>>, vector<15x32xf32>
    tpu.vector_store %arg17[%c89_42, %c0_43], %34 {strides = array<i32>} : memref<104x32xf32, #tpu.memory_space<vmem>>, vector<15x32xf32>,
    %cst_44 = arith.constant 0.000000e+00 : f32
    %36 = vector.broadcast %cst_44 : f32 to vector<7x128xf32>
    %c0_45 = arith.constant 0 : index
    %c0_46 = arith.constant 0 : index
    %37 = vector.load %arg18[%c0_45, %c0_46] : memref<36x128xf32, #tpu.memory_space<vmem>>, vector<7x128xf32>
    tpu.vector_store %arg18[%c0_45, %c0_46], %36 {strides = array<i32>} : memref<36x128xf32, #tpu.memory_space<vmem>>, vector<7x128xf32>,
    %cst_47 = arith.constant 0.000000e+00 : f32
    %38 = vector.broadcast %cst_47 : f32 to vector<2x128xf32>
    %c11 = arith.constant 11 : index
    %c0_48 = arith.constant 0 : index
    %39 = vector.load %arg18[%c11, %c0_48] : memref<36x128xf32, #tpu.memory_space<vmem>>, vector<2x128xf32>
    tpu.vector_store %arg18[%c11, %c0_48], %38 {strides = array<i32>} : memref<36x128xf32, #tpu.memory_space<vmem>>, vector<2x128xf32>,
    %cst_49 = arith.constant 0.000000e+00 : f32
    %40 = vector.broadcast %cst_49 : f32 to vector<2x128xf32>
    %c17 = arith.constant 17 : index
    %c0_50 = arith.constant 0 : index
    %41 = vector.load %arg18[%c17, %c0_50] : memref<36x128xf32, #tpu.memory_space<vmem>>, vector<2x128xf32>
    tpu.vector_store %arg18[%c17, %c0_50], %40 {strides = array<i32>} : memref<36x128xf32, #tpu.memory_space<vmem>>, vector<2x128xf32>,
    %cst_51 = arith.constant 0.000000e+00 : f32
    %42 = vector.broadcast %cst_51 : f32 to vector<2x128xf32>
    %c23 = arith.constant 23 : index
    %c0_52 = arith.constant 0 : index
    %43 = vector.load %arg18[%c23, %c0_52] : memref<36x128xf32, #tpu.memory_space<vmem>>, vector<2x128xf32>
    tpu.vector_store %arg18[%c23, %c0_52], %42 {strides = array<i32>} : memref<36x128xf32, #tpu.memory_space<vmem>>, vector<2x128xf32>,
    %c0_53 = arith.constant 0 : index
    %c0_54 = arith.constant 0 : index
    %c0_55 = arith.constant 0 : index
    %44 = tpu.strided_load %arg1[%c0_53, %c0_54, %c0_55] {strides = array<i32: 1, 2, 1>} : memref<1x18x64xf32, #tpu.memory_space<vmem>>, vector<1x8x64xf32>
    %45 = vector.shape_cast %44 : vector<1x8x64xf32> to vector<8x64xf32>
    %c0_56 = arith.constant 0 : index
    %c1 = arith.constant 1 : index
    %c0_57 = arith.constant 0 : index
    %46 = tpu.strided_load %arg1[%c0_56, %c1, %c0_57] {strides = array<i32: 1, 2, 1>} : memref<1x18x64xf32, #tpu.memory_space<vmem>>, vector<1x8x64xf32>
    %47 = vector.shape_cast %46 : vector<1x8x64xf32> to vector<8x64xf32>
    %c0_58 = arith.constant 0 : index
    %c2 = arith.constant 2 : index
    %c0_59 = arith.constant 0 : index
    %48 = tpu.strided_load %arg1[%c0_58, %c2, %c0_59] {strides = array<i32: 1, 2, 1>} : memref<1x18x64xf32, #tpu.memory_space<vmem>>, vector<1x8x64xf32>
    %49 = vector.shape_cast %48 : vector<1x8x64xf32> to vector<8x64xf32>
    %c0_60 = arith.constant 0 : index
    %c3 = arith.constant 3 : index
    %c0_61 = arith.constant 0 : index
    %50 = tpu.strided_load %arg1[%c0_60, %c3, %c0_61] {strides = array<i32: 1, 2, 1>} : memref<1x18x64xf32, #tpu.memory_space<vmem>>, vector<1x8x64xf32>
    %51 = vector.shape_cast %50 : vector<1x8x64xf32> to vector<8x64xf32>
    %52 = tpu.concatenate %45, %47, %49, %51 in 1 : vector<8x64xf32>, vector<8x64xf32>, vector<8x64xf32>, vector<8x64xf32> -> vector<8x256xf32>
    %53 = arith.truncf %52 : vector<8x256xf32> to vector<8x256xbf16>
    %c0_62 = arith.constant 0 : index
    %c0_63 = arith.constant 0 : index
    %54 = vector.load %arg2[%c0_62, %c0_63] : memref<256x256xbf16, #tpu.memory_space<vmem>>, vector<256x256xbf16>
    %cst_64 = arith.constant dense<0.000000e+00> : vector<8x256xf32>
    %55 = tpu.matmul %53, %54, %cst_64 {dimension_numbers = #tpu.dot_dimension_numbers<[1], [0], [0], [1], [0, 0, 1, 1], [], []>} : vector<8x256xbf16>, vector<256x256xbf16>, vector<8x256xf32> -> vector<8x256xf32>
    %c0_65 = arith.constant 0 : index
    %c0_66 = arith.constant 0 : index
    %56 = vector.load %arg3[%c0_65, %c0_66] : memref<1x256xf32, #tpu.memory_space<vmem>>, vector<1x256xf32>
    %57 = vector.broadcast %56 : vector<1x256xf32> to vector<8x256xf32>
    %58 = arith.addf %55, %57 : vector<8x256xf32>
    %cst_67 = arith.constant 0.000000e+00 : f32
    %59 = vector.broadcast %cst_67 : f32 to vector<8x256xf32>
    %60 = arith.maximumf %58, %59 : vector<8x256xf32>
    %61 = vector.extract_strided_slice %60 {offsets = [0, 0], sizes = [8, 32], strides = [1, 1]} : vector<8x256xf32> to vector<8x32xf32>
    %c11_68 = arith.constant 11 : index
    %c0_69 = arith.constant 0 : index
    %62 = vector.load %arg16[%c11_68, %c0_69] : memref<104x32xf32, #tpu.memory_space<vmem>>, vector<8x32xf32>
    tpu.vector_store %arg16[%c11_68, %c0_69], %61 {strides = array<i32>} : memref<104x32xf32, #tpu.memory_space<vmem>>, vector<8x32xf32>,
    %63 = vector.extract_strided_slice %60 {offsets = [0, 32], sizes = [8, 32], strides = [1, 1]} : vector<8x256xf32> to vector<8x32xf32>
    %c21 = arith.constant 21 : index
    %c0_70 = arith.constant 0 : index
    %64 = vector.load %arg16[%c21, %c0_70] : memref<104x32xf32, #tpu.memory_space<vmem>>, vector<8x32xf32>
    tpu.vector_store %arg16[%c21, %c0_70], %63 {strides = array<i32>} : memref<104x32xf32, #tpu.memory_space<vmem>>, vector<8x32xf32>,
    %65 = vector.extract_strided_slice %60 {offsets = [0, 64], sizes = [8, 32], strides = [1, 1]} : vector<8x256xf32> to vector<8x32xf32>
    %c31 = arith.constant 31 : index
    %c0_71 = arith.constant 0 : index
    %66 = vector.load %arg16[%c31, %c0_71] : memref<104x32xf32, #tpu.memory_space<vmem>>, vector<8x32xf32>
    tpu.vector_store %arg16[%c31, %c0_71], %65 {strides = array<i32>} : memref<104x32xf32, #tpu.memory_space<vmem>>, vector<8x32xf32>,
    %67 = vector.extract_strided_slice %60 {offsets = [0, 96], sizes = [8, 32], strides = [1, 1]} : vector<8x256xf32> to vector<8x32xf32>
    %c41 = arith.constant 41 : index
    %c0_72 = arith.constant 0 : index
    %68 = vector.load %arg16[%c41, %c0_72] : memref<104x32xf32, #tpu.memory_space<vmem>>, vector<8x32xf32>
    tpu.vector_store %arg16[%c41, %c0_72], %67 {strides = array<i32>} : memref<104x32xf32, #tpu.memory_space<vmem>>, vector<8x32xf32>,
    %69 = vector.extract_strided_slice %60 {offsets = [0, 128], sizes = [8, 32], strides = [1, 1]} : vector<8x256xf32> to vector<8x32xf32>
    %c51 = arith.constant 51 : index
    %c0_73 = arith.constant 0 : index
    %70 = vector.load %arg16[%c51, %c0_73] : memref<104x32xf32, #tpu.memory_space<vmem>>, vector<8x32xf32>
    tpu.vector_store %arg16[%c51, %c0_73], %69 {strides = array<i32>} : memref<104x32xf32, #tpu.memory_space<vmem>>, vector<8x32xf32>,
    %71 = vector.extract_strided_slice %60 {offsets = [0, 160], sizes = [8, 32], strides = [1, 1]} : vector<8x256xf32> to vector<8x32xf32>
    %c61 = arith.constant 61 : index
    %c0_74 = arith.constant 0 : index
    %72 = vector.load %arg16[%c61, %c0_74] : memref<104x32xf32, #tpu.memory_space<vmem>>, vector<8x32xf32>
    tpu.vector_store %arg16[%c61, %c0_74], %71 {strides = array<i32>} : memref<104x32xf32, #tpu.memory_space<vmem>>, vector<8x32xf32>,
    %73 = vector.extract_strided_slice %60 {offsets = [0, 192], sizes = [8, 32], strides = [1, 1]} : vector<8x256xf32> to vector<8x32xf32>
    %c71 = arith.constant 71 : index
    %c0_75 = arith.constant 0 : index
    %74 = vector.load %arg16[%c71, %c0_75] : memref<104x32xf32, #tpu.memory_space<vmem>>, vector<8x32xf32>
    tpu.vector_store %arg16[%c71, %c0_75], %73 {strides = array<i32>} : memref<104x32xf32, #tpu.memory_space<vmem>>, vector<8x32xf32>,
    %75 = vector.extract_strided_slice %60 {offsets = [0, 224], sizes = [8, 32], strides = [1, 1]} : vector<8x256xf32> to vector<8x32xf32>
    %c81 = arith.constant 81 : index
    %c0_76 = arith.constant 0 : index
    %76 = vector.load %arg16[%c81, %c0_76] : memref<104x32xf32, #tpu.memory_space<vmem>>, vector<8x32xf32>
    tpu.vector_store %arg16[%c81, %c0_76], %75 {strides = array<i32>} : memref<104x32xf32, #tpu.memory_space<vmem>>, vector<8x32xf32>,
    %c0_77 = arith.constant 0 : index
    %c0_78 = arith.constant 0 : index
    %77 = vector.load %arg16[%c0_77, %c0_78] : memref<104x32xf32, #tpu.memory_space<vmem>>, vector<78x32xf32>
    %78 = arith.truncf %77 : vector<78x32xf32> to vector<78x32xbf16>
    %c0_79 = arith.constant 0 : index
    %c0_80 = arith.constant 0 : index
    %c0_81 = arith.constant 0 : index
    %79 = vector.load %arg4[%c0_79, %c0_80, %c0_81] : memref<9x32x32xbf16, #tpu.memory_space<vmem>>, vector<1x32x32xbf16>
    %80 = vector.shape_cast %79 : vector<1x32x32xbf16> to vector<32x32xbf16>
    %cst_82 = arith.constant dense<0.000000e+00> : vector<78x32xf32>
    %81 = tpu.matmul %78, %80, %cst_82 {dimension_numbers = #tpu.dot_dimension_numbers<[1], [0], [0], [1], [0, 0, 1, 1], [], []>} : vector<78x32xbf16>, vector<32x32xbf16>, vector<78x32xf32> -> vector<78x32xf32>
    %c1_83 = arith.constant 1 : index
    %c0_84 = arith.constant 0 : index
    %82 = vector.load %arg16[%c1_83, %c0_84] : memref<104x32xf32, #tpu.memory_space<vmem>>, vector<78x32xf32>
    %83 = arith.truncf %82 : vector<78x32xf32> to vector<78x32xbf16>
    %c1_85 = arith.constant 1 : index
    %c0_86 = arith.constant 0 : index
    %c0_87 = arith.constant 0 : index
    %84 = vector.load %arg4[%c1_85, %c0_86, %c0_87] : memref<9x32x32xbf16, #tpu.memory_space<vmem>>, vector<1x32x32xbf16>
    %85 = vector.shape_cast %84 : vector<1x32x32xbf16> to vector<32x32xbf16>
    %cst_88 = arith.constant dense<0.000000e+00> : vector<78x32xf32>
    %86 = tpu.matmul %83, %85, %cst_88 {dimension_numbers = #tpu.dot_dimension_numbers<[1], [0], [0], [1], [0, 0, 1, 1], [], []>} : vector<78x32xbf16>, vector<32x32xbf16>, vector<78x32xf32> -> vector<78x32xf32>
    %87 = arith.addf %81, %86 : vector<78x32xf32>
    %c2_89 = arith.constant 2 : index
    %c0_90 = arith.constant 0 : index
    %88 = vector.load %arg16[%c2_89, %c0_90] : memref<104x32xf32, #tpu.memory_space<vmem>>, vector<78x32xf32>
    %89 = arith.truncf %88 : vector<78x32xf32> to vector<78x32xbf16>
    %c2_91 = arith.constant 2 : index
    %c0_92 = arith.constant 0 : index
    %c0_93 = arith.constant 0 : index
    %90 = vector.load %arg4[%c2_91, %c0_92, %c0_93] : memref<9x32x32xbf16, #tpu.memory_space<vmem>>, vector<1x32x32xbf16>
    %91 = vector.shape_cast %90 : vector<1x32x32xbf16> to vector<32x32xbf16>
    %cst_94 = arith.constant dense<0.000000e+00> : vector<78x32xf32>
    %92 = tpu.matmul %89, %91, %cst_94 {dimension_numbers = #tpu.dot_dimension_numbers<[1], [0], [0], [1], [0, 0, 1, 1], [], []>} : vector<78x32xbf16>, vector<32x32xbf16>, vector<78x32xf32> -> vector<78x32xf32>
    %93 = arith.addf %87, %92 : vector<78x32xf32>
    %c10 = arith.constant 10 : index
    %c0_95 = arith.constant 0 : index
    %94 = vector.load %arg16[%c10, %c0_95] : memref<104x32xf32, #tpu.memory_space<vmem>>, vector<78x32xf32>
    %95 = arith.truncf %94 : vector<78x32xf32> to vector<78x32xbf16>
    %c3_96 = arith.constant 3 : index
    %c0_97 = arith.constant 0 : index
    %c0_98 = arith.constant 0 : index
    %96 = vector.load %arg4[%c3_96, %c0_97, %c0_98] : memref<9x32x32xbf16, #tpu.memory_space<vmem>>, vector<1x32x32xbf16>
    %97 = vector.shape_cast %96 : vector<1x32x32xbf16> to vector<32x32xbf16>
    %cst_99 = arith.constant dense<0.000000e+00> : vector<78x32xf32>
    %98 = tpu.matmul %95, %97, %cst_99 {dimension_numbers = #tpu.dot_dimension_numbers<[1], [0], [0], [1], [0, 0, 1, 1], [], []>} : vector<78x32xbf16>, vector<32x32xbf16>, vector<78x32xf32> -> vector<78x32xf32>
    %99 = arith.addf %93, %98 : vector<78x32xf32>
    %c11_100 = arith.constant 11 : index
    %c0_101 = arith.constant 0 : index
    %100 = vector.load %arg16[%c11_100, %c0_101] : memref<104x32xf32, #tpu.memory_space<vmem>>, vector<78x32xf32>
    %101 = arith.truncf %100 : vector<78x32xf32> to vector<78x32xbf16>
    %c4 = arith.constant 4 : index
    %c0_102 = arith.constant 0 : index
    %c0_103 = arith.constant 0 : index
    %102 = vector.load %arg4[%c4, %c0_102, %c0_103] : memref<9x32x32xbf16, #tpu.memory_space<vmem>>, vector<1x32x32xbf16>
    %103 = vector.shape_cast %102 : vector<1x32x32xbf16> to vector<32x32xbf16>
    %cst_104 = arith.constant dense<0.000000e+00> : vector<78x32xf32>
    %104 = tpu.matmul %101, %103, %cst_104 {dimension_numbers = #tpu.dot_dimension_numbers<[1], [0], [0], [1], [0, 0, 1, 1], [], []>} : vector<78x32xbf16>, vector<32x32xbf16>, vector<78x32xf32> -> vector<78x32xf32>
    %105 = arith.addf %99, %104 : vector<78x32xf32>
    %c12 = arith.constant 12 : index
    %c0_105 = arith.constant 0 : index
    %106 = vector.load %arg16[%c12, %c0_105] : memref<104x32xf32, #tpu.memory_space<vmem>>, vector<78x32xf32>
    %107 = arith.truncf %106 : vector<78x32xf32> to vector<78x32xbf16>
    %c5 = arith.constant 5 : index
    %c0_106 = arith.constant 0 : index
    %c0_107 = arith.constant 0 : index
    %108 = vector.load %arg4[%c5, %c0_106, %c0_107] : memref<9x32x32xbf16, #tpu.memory_space<vmem>>, vector<1x32x32xbf16>
    %109 = vector.shape_cast %108 : vector<1x32x32xbf16> to vector<32x32xbf16>
    %cst_108 = arith.constant dense<0.000000e+00> : vector<78x32xf32>
    %110 = tpu.matmul %107, %109, %cst_108 {dimension_numbers = #tpu.dot_dimension_numbers<[1], [0], [0], [1], [0, 0, 1, 1], [], []>} : vector<78x32xbf16>, vector<32x32xbf16>, vector<78x32xf32> -> vector<78x32xf32>
    %111 = arith.addf %105, %110 : vector<78x32xf32>
    %c20 = arith.constant 20 : index
    %c0_109 = arith.constant 0 : index
    %112 = vector.load %arg16[%c20, %c0_109] : memref<104x32xf32, #tpu.memory_space<vmem>>, vector<78x32xf32>
    %113 = arith.truncf %112 : vector<78x32xf32> to vector<78x32xbf16>
    %c6 = arith.constant 6 : index
    %c0_110 = arith.constant 0 : index
    %c0_111 = arith.constant 0 : index
    %114 = vector.load %arg4[%c6, %c0_110, %c0_111] : memref<9x32x32xbf16, #tpu.memory_space<vmem>>, vector<1x32x32xbf16>
    %115 = vector.shape_cast %114 : vector<1x32x32xbf16> to vector<32x32xbf16>
    %cst_112 = arith.constant dense<0.000000e+00> : vector<78x32xf32>
    %116 = tpu.matmul %113, %115, %cst_112 {dimension_numbers = #tpu.dot_dimension_numbers<[1], [0], [0], [1], [0, 0, 1, 1], [], []>} : vector<78x32xbf16>, vector<32x32xbf16>, vector<78x32xf32> -> vector<78x32xf32>
    %117 = arith.addf %111, %116 : vector<78x32xf32>
    %c21_113 = arith.constant 21 : index
    %c0_114 = arith.constant 0 : index
    %118 = vector.load %arg16[%c21_113, %c0_114] : memref<104x32xf32, #tpu.memory_space<vmem>>, vector<78x32xf32>
    %119 = arith.truncf %118 : vector<78x32xf32> to vector<78x32xbf16>
    %c7 = arith.constant 7 : index
    %c0_115 = arith.constant 0 : index
    %c0_116 = arith.constant 0 : index
    %120 = vector.load %arg4[%c7, %c0_115, %c0_116] : memref<9x32x32xbf16, #tpu.memory_space<vmem>>, vector<1x32x32xbf16>
    %121 = vector.shape_cast %120 : vector<1x32x32xbf16> to vector<32x32xbf16>
    %cst_117 = arith.constant dense<0.000000e+00> : vector<78x32xf32>
    %122 = tpu.matmul %119, %121, %cst_117 {dimension_numbers = #tpu.dot_dimension_numbers<[1], [0], [0], [1], [0, 0, 1, 1], [], []>} : vector<78x32xbf16>, vector<32x32xbf16>, vector<78x32xf32> -> vector<78x32xf32>
    %123 = arith.addf %117, %122 : vector<78x32xf32>
    %c22 = arith.constant 22 : index
    %c0_118 = arith.constant 0 : index
    %124 = vector.load %arg16[%c22, %c0_118] : memref<104x32xf32, #tpu.memory_space<vmem>>, vector<78x32xf32>
    %125 = arith.truncf %124 : vector<78x32xf32> to vector<78x32xbf16>
    %c8 = arith.constant 8 : index
    %c0_119 = arith.constant 0 : index
    %c0_120 = arith.constant 0 : index
    %126 = vector.load %arg4[%c8, %c0_119, %c0_120] : memref<9x32x32xbf16, #tpu.memory_space<vmem>>, vector<1x32x32xbf16>
    %127 = vector.shape_cast %126 : vector<1x32x32xbf16> to vector<32x32xbf16>
    %cst_121 = arith.constant dense<0.000000e+00> : vector<78x32xf32>
    %128 = tpu.matmul %125, %127, %cst_121 {dimension_numbers = #tpu.dot_dimension_numbers<[1], [0], [0], [1], [0, 0, 1, 1], [], []>} : vector<78x32xbf16>, vector<32x32xbf16>, vector<78x32xf32> -> vector<78x32xf32>
    %129 = arith.addf %123, %128 : vector<78x32xf32>
    %c0_122 = arith.constant 0 : index
    %c0_123 = arith.constant 0 : index
    %130 = vector.load %arg5[%c0_122, %c0_123] : memref<1x32xf32, #tpu.memory_space<vmem>>, vector<1x32xf32>
    %131 = vector.broadcast %130 : vector<1x32xf32> to vector<78x32xf32>
    %132 = arith.addf %129, %131 : vector<78x32xf32>
    %c0_124 = arith.constant 0 : index
    %c0_125 = arith.constant 0 : index
    %133 = vector.load %arg7[%c0_124, %c0_125] : memref<32x64xf32, #tpu.memory_space<vmem>>, vector<32x64xf32>
    %cst_126 = arith.constant dense<0.000000e+00> : vector<78x64xf32>
    %134 = tpu.matmul %132, %133, %cst_126 {dimension_numbers = #tpu.dot_dimension_numbers<[1], [0], [0], [1], [0, 0, 1, 1], [], []>} : vector<78x32xf32>, vector<32x64xf32>, vector<78x64xf32> -> vector<78x64xf32>
    %c0_127 = arith.constant 0 : index
    %c0_128 = arith.constant 0 : index
    %135 = vector.load %arg8[%c0_127, %c0_128] : memref<1x64xf32, #tpu.memory_space<vmem>>, vector<1x64xf32>
    %cst_129 = arith.constant 2.000000e+00 : f32
    %136 = vector.broadcast %cst_129 : f32 to vector<78x64xf32>
    %137 = arith.mulf %136, %134 : vector<78x64xf32>
    %138 = vector.broadcast %135 : vector<1x64xf32> to vector<78x64xf32>
    %139 = arith.subf %138, %137 : vector<78x64xf32>
    %140 = tpu.iota {dimensions = array<i32: 1>} : vector<78x64xi32>
    %cst_130 = arith.constant dense<0x7F800000> : vector<78xf32>
    %141 = vector.multi_reduction <minimumf>, %139, %cst_130 [1] : vector<78x64xf32> to vector<78xf32>
    %142 = vector.shape_cast %141 : vector<78xf32> to vector<78x1xf32>
    %143 = vector.broadcast %142 : vector<78x1xf32> to vector<78x64xf32>
    %144 = arith.cmpf oeq, %139, %143 : vector<78x64xf32>
    %c64_i32 = arith.constant 64 : i32
    %145 = vector.broadcast %c64_i32 : i32 to vector<78x64xi32>
    %146 = arith.select %144, %140, %145 : vector<78x64xi1>, vector<78x64xi32>
    %cst_131 = arith.constant dense<2147483647> : vector<78xi32>
    %147 = vector.multi_reduction <minsi>, %146, %cst_131 [1] : vector<78x64xi32> to vector<78xi32>
    %148 = vector.shape_cast %147 : vector<78xi32> to vector<78x1xi32>
    %149 = vector.broadcast %148 : vector<78x1xi32> to vector<78x64xi32>
    %150 = arith.cmpi eq, %140, %149 : vector<78x64xi32>
    %151 = arith.extui %150 : vector<78x64xi1> to vector<78x64xi32>
    %152 = arith.sitofp %151 : vector<78x64xi32> to vector<78x64xf32>
    %c0_132 = arith.constant 0 : index
    %c0_133 = arith.constant 0 : index
    %153 = vector.load %arg6[%c0_132, %c0_133] : memref<64x32xf32, #tpu.memory_space<vmem>>, vector<64x32xf32>
    %cst_134 = arith.constant dense<0.000000e+00> : vector<78x32xf32>
    %154 = tpu.matmul %152, %153, %cst_134 {dimension_numbers = #tpu.dot_dimension_numbers<[1], [0], [0], [1], [0, 0, 1, 1], [], []>} : vector<78x64xf32>, vector<64x32xf32>, vector<78x32xf32> -> vector<78x32xf32>
    %155 = vector.extract_strided_slice %154 {offsets = [0, 0], sizes = [8, 32], strides = [1, 1]} : vector<78x32xf32> to vector<8x32xf32>
    %c11_135 = arith.constant 11 : index
    %c0_136 = arith.constant 0 : index
    %156 = vector.load %arg17[%c11_135, %c0_136] : memref<104x32xf32, #tpu.memory_space<vmem>>, vector<8x32xf32>
    tpu.vector_store %arg17[%c11_135, %c0_136], %155 {strides = array<i32>} : memref<104x32xf32, #tpu.memory_space<vmem>>, vector<8x32xf32>,
    %157 = vector.extract_strided_slice %154 {offsets = [10, 0], sizes = [8, 32], strides = [1, 1]} : vector<78x32xf32> to vector<8x32xf32>
    %c21_137 = arith.constant 21 : index
    %c0_138 = arith.constant 0 : index
    %158 = vector.load %arg17[%c21_137, %c0_138] : memref<104x32xf32, #tpu.memory_space<vmem>>, vector<8x32xf32>
    tpu.vector_store %arg17[%c21_137, %c0_138], %157 {strides = array<i32>} : memref<104x32xf32, #tpu.memory_space<vmem>>, vector<8x32xf32>,
    %159 = vector.extract_strided_slice %154 {offsets = [20, 0], sizes = [8, 32], strides = [1, 1]} : vector<78x32xf32> to vector<8x32xf32>
    %c31_139 = arith.constant 31 : index
    %c0_140 = arith.constant 0 : index
    %160 = vector.load %arg17[%c31_139, %c0_140] : memref<104x32xf32, #tpu.memory_space<vmem>>, vector<8x32xf32>
    tpu.vector_store %arg17[%c31_139, %c0_140], %159 {strides = array<i32>} : memref<104x32xf32, #tpu.memory_space<vmem>>, vector<8x32xf32>,
    %161 = vector.extract_strided_slice %154 {offsets = [30, 0], sizes = [8, 32], strides = [1, 1]} : vector<78x32xf32> to vector<8x32xf32>
    %c41_141 = arith.constant 41 : index
    %c0_142 = arith.constant 0 : index
    %162 = vector.load %arg17[%c41_141, %c0_142] : memref<104x32xf32, #tpu.memory_space<vmem>>, vector<8x32xf32>
    tpu.vector_store %arg17[%c41_141, %c0_142], %161 {strides = array<i32>} : memref<104x32xf32, #tpu.memory_space<vmem>>, vector<8x32xf32>,
    %163 = vector.extract_strided_slice %154 {offsets = [40, 0], sizes = [8, 32], strides = [1, 1]} : vector<78x32xf32> to vector<8x32xf32>
    %c51_143 = arith.constant 51 : index
    %c0_144 = arith.constant 0 : index
    %164 = vector.load %arg17[%c51_143, %c0_144] : memref<104x32xf32, #tpu.memory_space<vmem>>, vector<8x32xf32>
    tpu.vector_store %arg17[%c51_143, %c0_144], %163 {strides = array<i32>} : memref<104x32xf32, #tpu.memory_space<vmem>>, vector<8x32xf32>,
    %165 = vector.extract_strided_slice %154 {offsets = [50, 0], sizes = [8, 32], strides = [1, 1]} : vector<78x32xf32> to vector<8x32xf32>
    %c61_145 = arith.constant 61 : index
    %c0_146 = arith.constant 0 : index
    %166 = vector.load %arg17[%c61_145, %c0_146] : memref<104x32xf32, #tpu.memory_space<vmem>>, vector<8x32xf32>
    tpu.vector_store %arg17[%c61_145, %c0_146], %165 {strides = array<i32>} : memref<104x32xf32, #tpu.memory_space<vmem>>, vector<8x32xf32>,
    %167 = vector.extract_strided_slice %154 {offsets = [60, 0], sizes = [8, 32], strides = [1, 1]} : vector<78x32xf32> to vector<8x32xf32>
    %c71_147 = arith.constant 71 : index
    %c0_148 = arith.constant 0 : index
    %168 = vector.load %arg17[%c71_147, %c0_148] : memref<104x32xf32, #tpu.memory_space<vmem>>, vector<8x32xf32>
    tpu.vector_store %arg17[%c71_147, %c0_148], %167 {strides = array<i32>} : memref<104x32xf32, #tpu.memory_space<vmem>>, vector<8x32xf32>,
    %169 = vector.extract_strided_slice %154 {offsets = [70, 0], sizes = [8, 32], strides = [1, 1]} : vector<78x32xf32> to vector<8x32xf32>
    %c81_149 = arith.constant 81 : index
    %c0_150 = arith.constant 0 : index
    %170 = vector.load %arg17[%c81_149, %c0_150] : memref<104x32xf32, #tpu.memory_space<vmem>>, vector<8x32xf32>
    tpu.vector_store %arg17[%c81_149, %c0_150], %169 {strides = array<i32>} : memref<104x32xf32, #tpu.memory_space<vmem>>, vector<8x32xf32>,
    %c0_151 = arith.constant 0 : index
    %c0_152 = arith.constant 0 : index
    %171 = tpu.strided_load %arg17[%c0_151, %c0_152] {strides = array<i32: 2, 1>} : memref<104x32xf32, #tpu.memory_space<vmem>>, vector<34x32xf32>
    %172 = arith.truncf %171 : vector<34x32xf32> to vector<34x32xbf16>
    %c0_153 = arith.constant 0 : index
    %c0_154 = arith.constant 0 : index
    %c0_155 = arith.constant 0 : index
    %173 = vector.load %arg9[%c0_153, %c0_154, %c0_155] : memref<9x32x128xbf16, #tpu.memory_space<vmem>>, vector<1x32x128xbf16>
    %174 = vector.shape_cast %173 : vector<1x32x128xbf16> to vector<32x128xbf16>
    %cst_156 = arith.constant dense<0.000000e+00> : vector<34x128xf32>
    %175 = tpu.matmul %172, %174, %cst_156 {dimension_numbers = #tpu.dot_dimension_numbers<[1], [0], [0], [1], [0, 0, 1, 1], [], []>} : vector<34x32xbf16>, vector<32x128xbf16>, vector<34x128xf32> -> vector<34x128xf32>
    %c1_157 = arith.constant 1 : index
    %c0_158 = arith.constant 0 : index
    %176 = tpu.strided_load %arg17[%c1_157, %c0_158] {strides = array<i32: 2, 1>} : memref<104x32xf32, #tpu.memory_space<vmem>>, vector<34x32xf32>
    %177 = arith.truncf %176 : vector<34x32xf32> to vector<34x32xbf16>
    %c1_159 = arith.constant 1 : index
    %c0_160 = arith.constant 0 : index
    %c0_161 = arith.constant 0 : index
    %178 = vector.load %arg9[%c1_159, %c0_160, %c0_161] : memref<9x32x128xbf16, #tpu.memory_space<vmem>>, vector<1x32x128xbf16>
    %179 = vector.shape_cast %178 : vector<1x32x128xbf16> to vector<32x128xbf16>
    %cst_162 = arith.constant dense<0.000000e+00> : vector<34x128xf32>
    %180 = tpu.matmul %177, %179, %cst_162 {dimension_numbers = #tpu.dot_dimension_numbers<[1], [0], [0], [1], [0, 0, 1, 1], [], []>} : vector<34x32xbf16>, vector<32x128xbf16>, vector<34x128xf32> -> vector<34x128xf32>
    %181 = arith.addf %175, %180 : vector<34x128xf32>
    %c2_163 = arith.constant 2 : index
    %c0_164 = arith.constant 0 : index
    %182 = tpu.strided_load %arg17[%c2_163, %c0_164] {strides = array<i32: 2, 1>} : memref<104x32xf32, #tpu.memory_space<vmem>>, vector<34x32xf32>
    %183 = arith.truncf %182 : vector<34x32xf32> to vector<34x32xbf16>
    %c2_165 = arith.constant 2 : index
    %c0_166 = arith.constant 0 : index
    %c0_167 = arith.constant 0 : index
    %184 = vector.load %arg9[%c2_165, %c0_166, %c0_167] : memref<9x32x128xbf16, #tpu.memory_space<vmem>>, vector<1x32x128xbf16>
    %185 = vector.shape_cast %184 : vector<1x32x128xbf16> to vector<32x128xbf16>
    %cst_168 = arith.constant dense<0.000000e+00> : vector<34x128xf32>
    %186 = tpu.matmul %183, %185, %cst_168 {dimension_numbers = #tpu.dot_dimension_numbers<[1], [0], [0], [1], [0, 0, 1, 1], [], []>} : vector<34x32xbf16>, vector<32x128xbf16>, vector<34x128xf32> -> vector<34x128xf32>
    %187 = arith.addf %181, %186 : vector<34x128xf32>
    %c10_169 = arith.constant 10 : index
    %c0_170 = arith.constant 0 : index
    %188 = tpu.strided_load %arg17[%c10_169, %c0_170] {strides = array<i32: 2, 1>} : memref<104x32xf32, #tpu.memory_space<vmem>>, vector<34x32xf32>
    %189 = arith.truncf %188 : vector<34x32xf32> to vector<34x32xbf16>
    %c3_171 = arith.constant 3 : index
    %c0_172 = arith.constant 0 : index
    %c0_173 = arith.constant 0 : index
    %190 = vector.load %arg9[%c3_171, %c0_172, %c0_173] : memref<9x32x128xbf16, #tpu.memory_space<vmem>>, vector<1x32x128xbf16>
    %191 = vector.shape_cast %190 : vector<1x32x128xbf16> to vector<32x128xbf16>
    %cst_174 = arith.constant dense<0.000000e+00> : vector<34x128xf32>
    %192 = tpu.matmul %189, %191, %cst_174 {dimension_numbers = #tpu.dot_dimension_numbers<[1], [0], [0], [1], [0, 0, 1, 1], [], []>} : vector<34x32xbf16>, vector<32x128xbf16>, vector<34x128xf32> -> vector<34x128xf32>
    %193 = arith.addf %187, %192 : vector<34x128xf32>
    %c11_175 = arith.constant 11 : index
    %c0_176 = arith.constant 0 : index
    %194 = tpu.strided_load %arg17[%c11_175, %c0_176] {strides = array<i32: 2, 1>} : memref<104x32xf32, #tpu.memory_space<vmem>>, vector<34x32xf32>
    %195 = arith.truncf %194 : vector<34x32xf32> to vector<34x32xbf16>
    %c4_177 = arith.constant 4 : index
    %c0_178 = arith.constant 0 : index
    %c0_179 = arith.constant 0 : index
    %196 = vector.load %arg9[%c4_177, %c0_178, %c0_179] : memref<9x32x128xbf16, #tpu.memory_space<vmem>>, vector<1x32x128xbf16>
    %197 = vector.shape_cast %196 : vector<1x32x128xbf16> to vector<32x128xbf16>
    %cst_180 = arith.constant dense<0.000000e+00> : vector<34x128xf32>
    %198 = tpu.matmul %195, %197, %cst_180 {dimension_numbers = #tpu.dot_dimension_numbers<[1], [0], [0], [1], [0, 0, 1, 1], [], []>} : vector<34x32xbf16>, vector<32x128xbf16>, vector<34x128xf32> -> vector<34x128xf32>
    %199 = arith.addf %193, %198 : vector<34x128xf32>
    %c12_181 = arith.constant 12 : index
    %c0_182 = arith.constant 0 : index
    %200 = tpu.strided_load %arg17[%c12_181, %c0_182] {strides = array<i32: 2, 1>} : memref<104x32xf32, #tpu.memory_space<vmem>>, vector<34x32xf32>
    %201 = arith.truncf %200 : vector<34x32xf32> to vector<34x32xbf16>
    %c5_183 = arith.constant 5 : index
    %c0_184 = arith.constant 0 : index
    %c0_185 = arith.constant 0 : index
    %202 = vector.load %arg9[%c5_183, %c0_184, %c0_185] : memref<9x32x128xbf16, #tpu.memory_space<vmem>>, vector<1x32x128xbf16>
    %203 = vector.shape_cast %202 : vector<1x32x128xbf16> to vector<32x128xbf16>
    %cst_186 = arith.constant dense<0.000000e+00> : vector<34x128xf32>
    %204 = tpu.matmul %201, %203, %cst_186 {dimension_numbers = #tpu.dot_dimension_numbers<[1], [0], [0], [1], [0, 0, 1, 1], [], []>} : vector<34x32xbf16>, vector<32x128xbf16>, vector<34x128xf32> -> vector<34x128xf32>
    %205 = arith.addf %199, %204 : vector<34x128xf32>
    %c20_187 = arith.constant 20 : index
    %c0_188 = arith.constant 0 : index
    %206 = tpu.strided_load %arg17[%c20_187, %c0_188] {strides = array<i32: 2, 1>} : memref<104x32xf32, #tpu.memory_space<vmem>>, vector<34x32xf32>
    %207 = arith.truncf %206 : vector<34x32xf32> to vector<34x32xbf16>
    %c6_189 = arith.constant 6 : index
    %c0_190 = arith.constant 0 : index
    %c0_191 = arith.constant 0 : index
    %208 = vector.load %arg9[%c6_189, %c0_190, %c0_191] : memref<9x32x128xbf16, #tpu.memory_space<vmem>>, vector<1x32x128xbf16>
    %209 = vector.shape_cast %208 : vector<1x32x128xbf16> to vector<32x128xbf16>
    %cst_192 = arith.constant dense<0.000000e+00> : vector<34x128xf32>
    %210 = tpu.matmul %207, %209, %cst_192 {dimension_numbers = #tpu.dot_dimension_numbers<[1], [0], [0], [1], [0, 0, 1, 1], [], []>} : vector<34x32xbf16>, vector<32x128xbf16>, vector<34x128xf32> -> vector<34x128xf32>
    %211 = arith.addf %205, %210 : vector<34x128xf32>
    %c21_193 = arith.constant 21 : index
    %c0_194 = arith.constant 0 : index
    %212 = tpu.strided_load %arg17[%c21_193, %c0_194] {strides = array<i32: 2, 1>} : memref<104x32xf32, #tpu.memory_space<vmem>>, vector<34x32xf32>
    %213 = arith.truncf %212 : vector<34x32xf32> to vector<34x32xbf16>
    %c7_195 = arith.constant 7 : index
    %c0_196 = arith.constant 0 : index
    %c0_197 = arith.constant 0 : index
    %214 = vector.load %arg9[%c7_195, %c0_196, %c0_197] : memref<9x32x128xbf16, #tpu.memory_space<vmem>>, vector<1x32x128xbf16>
    %215 = vector.shape_cast %214 : vector<1x32x128xbf16> to vector<32x128xbf16>
    %cst_198 = arith.constant dense<0.000000e+00> : vector<34x128xf32>
    %216 = tpu.matmul %213, %215, %cst_198 {dimension_numbers = #tpu.dot_dimension_numbers<[1], [0], [0], [1], [0, 0, 1, 1], [], []>} : vector<34x32xbf16>, vector<32x128xbf16>, vector<34x128xf32> -> vector<34x128xf32>
    %217 = arith.addf %211, %216 : vector<34x128xf32>
    %c22_199 = arith.constant 22 : index
    %c0_200 = arith.constant 0 : index
    %218 = tpu.strided_load %arg17[%c22_199, %c0_200] {strides = array<i32: 2, 1>} : memref<104x32xf32, #tpu.memory_space<vmem>>, vector<34x32xf32>
    %219 = arith.truncf %218 : vector<34x32xf32> to vector<34x32xbf16>
    %c8_201 = arith.constant 8 : index
    %c0_202 = arith.constant 0 : index
    %c0_203 = arith.constant 0 : index
    %220 = vector.load %arg9[%c8_201, %c0_202, %c0_203] : memref<9x32x128xbf16, #tpu.memory_space<vmem>>, vector<1x32x128xbf16>
    %221 = vector.shape_cast %220 : vector<1x32x128xbf16> to vector<32x128xbf16>
    %cst_204 = arith.constant dense<0.000000e+00> : vector<34x128xf32>
    %222 = tpu.matmul %219, %221, %cst_204 {dimension_numbers = #tpu.dot_dimension_numbers<[1], [0], [0], [1], [0, 0, 1, 1], [], []>} : vector<34x32xbf16>, vector<32x128xbf16>, vector<34x128xf32> -> vector<34x128xf32>
    %223 = arith.addf %217, %222 : vector<34x128xf32>
    %c0_205 = arith.constant 0 : index
    %c0_206 = arith.constant 0 : index
    %224 = vector.load %arg10[%c0_205, %c0_206] : memref<1x128xf32, #tpu.memory_space<vmem>>, vector<1x128xf32>
    %225 = vector.broadcast %224 : vector<1x128xf32> to vector<34x128xf32>
    %226 = arith.addf %223, %225 : vector<34x128xf32>
    %cst_207 = arith.constant 0.000000e+00 : f32
    %227 = vector.broadcast %cst_207 : f32 to vector<34x128xf32>
    %228 = arith.maximumf %226, %227 : vector<34x128xf32>
    %229 = vector.extract_strided_slice %228 {offsets = [0, 0], sizes = [4, 128], strides = [1, 1]} : vector<34x128xf32> to vector<4x128xf32>
    %c7_208 = arith.constant 7 : index
    %c0_209 = arith.constant 0 : index
    %230 = vector.load %arg18[%c7_208, %c0_209] : memref<36x128xf32, #tpu.memory_space<vmem>>, vector<4x128xf32>
    tpu.vector_store %arg18[%c7_208, %c0_209], %229 {strides = array<i32>} : memref<36x128xf32, #tpu.memory_space<vmem>>, vector<4x128xf32>,
    %231 = vector.extract_strided_slice %228 {offsets = [10, 0], sizes = [4, 128], strides = [1, 1]} : vector<34x128xf32> to vector<4x128xf32>
    %c13 = arith.constant 13 : index
    %c0_210 = arith.constant 0 : index
    %232 = vector.load %arg18[%c13, %c0_210] : memref<36x128xf32, #tpu.memory_space<vmem>>, vector<4x128xf32>
    tpu.vector_store %arg18[%c13, %c0_210], %231 {strides = array<i32>} : memref<36x128xf32, #tpu.memory_space<vmem>>, vector<4x128xf32>,
    %233 = vector.extract_strided_slice %228 {offsets = [20, 0], sizes = [4, 128], strides = [1, 1]} : vector<34x128xf32> to vector<4x128xf32>
    %c19_211 = arith.constant 19 : index
    %c0_212 = arith.constant 0 : index
    %234 = vector.load %arg18[%c19_211, %c0_212] : memref<36x128xf32, #tpu.memory_space<vmem>>, vector<4x128xf32>
    tpu.vector_store %arg18[%c19_211, %c0_212], %233 {strides = array<i32>} : memref<36x128xf32, #tpu.memory_space<vmem>>, vector<4x128xf32>,
    %235 = vector.extract_strided_slice %228 {offsets = [30, 0], sizes = [4, 128], strides = [1, 1]} : vector<34x128xf32> to vector<4x128xf32>
    %c25 = arith.constant 25 : index
    %c0_213 = arith.constant 0 : index
    %236 = vector.load %arg18[%c25, %c0_213] : memref<36x128xf32, #tpu.memory_space<vmem>>, vector<4x128xf32>
    tpu.vector_store %arg18[%c25, %c0_213], %235 {strides = array<i32>} : memref<36x128xf32, #tpu.memory_space<vmem>>, vector<4x128xf32>,
    %c0_214 = arith.constant 0 : index
    %c0_215 = arith.constant 0 : index
    %237 = tpu.strided_load %arg18[%c0_214, %c0_215] {strides = array<i32: 2, 1>} : memref<36x128xf32, #tpu.memory_space<vmem>>, vector<8x128xf32>
    %238 = arith.truncf %237 : vector<8x128xf32> to vector<8x128xbf16>
    %c0_216 = arith.constant 0 : index
    %c0_217 = arith.constant 0 : index
    %c0_218 = arith.constant 0 : index
    %239 = vector.load %arg11[%c0_216, %c0_217, %c0_218] : memref<9x128x128xbf16, #tpu.memory_space<vmem>>, vector<1x128x128xbf16>
    %240 = vector.shape_cast %239 : vector<1x128x128xbf16> to vector<128x128xbf16>
    %cst_219 = arith.constant dense<0.000000e+00> : vector<8x128xf32>
    %241 = tpu.matmul %238, %240, %cst_219 {dimension_numbers = #tpu.dot_dimension_numbers<[1], [0], [0], [1], [0, 0, 1, 1], [], []>} : vector<8x128xbf16>, vector<128x128xbf16>, vector<8x128xf32> -> vector<8x128xf32>
    %c1_220 = arith.constant 1 : index
    %c0_221 = arith.constant 0 : index
    %242 = tpu.strided_load %arg18[%c1_220, %c0_221] {strides = array<i32: 2, 1>} : memref<36x128xf32, #tpu.memory_space<vmem>>, vector<8x128xf32>
    %243 = arith.truncf %242 : vector<8x128xf32> to vector<8x128xbf16>
    %c1_222 = arith.constant 1 : index
    %c0_223 = arith.constant 0 : index
    %c0_224 = arith.constant 0 : index
    %244 = vector.load %arg11[%c1_222, %c0_223, %c0_224] : memref<9x128x128xbf16, #tpu.memory_space<vmem>>, vector<1x128x128xbf16>
    %245 = vector.shape_cast %244 : vector<1x128x128xbf16> to vector<128x128xbf16>
    %cst_225 = arith.constant dense<0.000000e+00> : vector<8x128xf32>
    %246 = tpu.matmul %243, %245, %cst_225 {dimension_numbers = #tpu.dot_dimension_numbers<[1], [0], [0], [1], [0, 0, 1, 1], [], []>} : vector<8x128xbf16>, vector<128x128xbf16>, vector<8x128xf32> -> vector<8x128xf32>
    %247 = arith.addf %241, %246 : vector<8x128xf32>
    %c2_226 = arith.constant 2 : index
    %c0_227 = arith.constant 0 : index
    %248 = tpu.strided_load %arg18[%c2_226, %c0_227] {strides = array<i32: 2, 1>} : memref<36x128xf32, #tpu.memory_space<vmem>>, vector<8x128xf32>
    %249 = arith.truncf %248 : vector<8x128xf32> to vector<8x128xbf16>
    %c2_228 = arith.constant 2 : index
    %c0_229 = arith.constant 0 : index
    %c0_230 = arith.constant 0 : index
    %250 = vector.load %arg11[%c2_228, %c0_229, %c0_230] : memref<9x128x128xbf16, #tpu.memory_space<vmem>>, vector<1x128x128xbf16>
    %251 = vector.shape_cast %250 : vector<1x128x128xbf16> to vector<128x128xbf16>
    %cst_231 = arith.constant dense<0.000000e+00> : vector<8x128xf32>
    %252 = tpu.matmul %249, %251, %cst_231 {dimension_numbers = #tpu.dot_dimension_numbers<[1], [0], [0], [1], [0, 0, 1, 1], [], []>} : vector<8x128xbf16>, vector<128x128xbf16>, vector<8x128xf32> -> vector<8x128xf32>
    %253 = arith.addf %247, %252 : vector<8x128xf32>
    %c6_232 = arith.constant 6 : index
    %c0_233 = arith.constant 0 : index
    %254 = tpu.strided_load %arg18[%c6_232, %c0_233] {strides = array<i32: 2, 1>} : memref<36x128xf32, #tpu.memory_space<vmem>>, vector<8x128xf32>
    %255 = arith.truncf %254 : vector<8x128xf32> to vector<8x128xbf16>
    %c3_234 = arith.constant 3 : index
    %c0_235 = arith.constant 0 : index
    %c0_236 = arith.constant 0 : index
    %256 = vector.load %arg11[%c3_234, %c0_235, %c0_236] : memref<9x128x128xbf16, #tpu.memory_space<vmem>>, vector<1x128x128xbf16>
    %257 = vector.shape_cast %256 : vector<1x128x128xbf16> to vector<128x128xbf16>
    %cst_237 = arith.constant dense<0.000000e+00> : vector<8x128xf32>
    %258 = tpu.matmul %255, %257, %cst_237 {dimension_numbers = #tpu.dot_dimension_numbers<[1], [0], [0], [1], [0, 0, 1, 1], [], []>} : vector<8x128xbf16>, vector<128x128xbf16>, vector<8x128xf32> -> vector<8x128xf32>
    %259 = arith.addf %253, %258 : vector<8x128xf32>
    %c7_238 = arith.constant 7 : index
    %c0_239 = arith.constant 0 : index
    %260 = tpu.strided_load %arg18[%c7_238, %c0_239] {strides = array<i32: 2, 1>} : memref<36x128xf32, #tpu.memory_space<vmem>>, vector<8x128xf32>
    %261 = arith.truncf %260 : vector<8x128xf32> to vector<8x128xbf16>
    %c4_240 = arith.constant 4 : index
    %c0_241 = arith.constant 0 : index
    %c0_242 = arith.constant 0 : index
    %262 = vector.load %arg11[%c4_240, %c0_241, %c0_242] : memref<9x128x128xbf16, #tpu.memory_space<vmem>>, vector<1x128x128xbf16>
    %263 = vector.shape_cast %262 : vector<1x128x128xbf16> to vector<128x128xbf16>
    %cst_243 = arith.constant dense<0.000000e+00> : vector<8x128xf32>
    %264 = tpu.matmul %261, %263, %cst_243 {dimension_numbers = #tpu.dot_dimension_numbers<[1], [0], [0], [1], [0, 0, 1, 1], [], []>} : vector<8x128xbf16>, vector<128x128xbf16>, vector<8x128xf32> -> vector<8x128xf32>
    %265 = arith.addf %259, %264 : vector<8x128xf32>
    %c8_244 = arith.constant 8 : index
    %c0_245 = arith.constant 0 : index
    %266 = tpu.strided_load %arg18[%c8_244, %c0_245] {strides = array<i32: 2, 1>} : memref<36x128xf32, #tpu.memory_space<vmem>>, vector<8x128xf32>
    %267 = arith.truncf %266 : vector<8x128xf32> to vector<8x128xbf16>
    %c5_246 = arith.constant 5 : index
    %c0_247 = arith.constant 0 : index
    %c0_248 = arith.constant 0 : index
    %268 = vector.load %arg11[%c5_246, %c0_247, %c0_248] : memref<9x128x128xbf16, #tpu.memory_space<vmem>>, vector<1x128x128xbf16>
    %269 = vector.shape_cast %268 : vector<1x128x128xbf16> to vector<128x128xbf16>
    %cst_249 = arith.constant dense<0.000000e+00> : vector<8x128xf32>
    %270 = tpu.matmul %267, %269, %cst_249 {dimension_numbers = #tpu.dot_dimension_numbers<[1], [0], [0], [1], [0, 0, 1, 1], [], []>} : vector<8x128xbf16>, vector<128x128xbf16>, vector<8x128xf32> -> vector<8x128xf32>
    %271 = arith.addf %265, %270 : vector<8x128xf32>
    %c12_250 = arith.constant 12 : index
    %c0_251 = arith.constant 0 : index
    %272 = tpu.strided_load %arg18[%c12_250, %c0_251] {strides = array<i32: 2, 1>} : memref<36x128xf32, #tpu.memory_space<vmem>>, vector<8x128xf32>
    %273 = arith.truncf %272 : vector<8x128xf32> to vector<8x128xbf16>
    %c6_252 = arith.constant 6 : index
    %c0_253 = arith.constant 0 : index
    %c0_254 = arith.constant 0 : index
    %274 = vector.load %arg11[%c6_252, %c0_253, %c0_254] : memref<9x128x128xbf16, #tpu.memory_space<vmem>>, vector<1x128x128xbf16>
    %275 = vector.shape_cast %274 : vector<1x128x128xbf16> to vector<128x128xbf16>
    %cst_255 = arith.constant dense<0.000000e+00> : vector<8x128xf32>
    %276 = tpu.matmul %273, %275, %cst_255 {dimension_numbers = #tpu.dot_dimension_numbers<[1], [0], [0], [1], [0, 0, 1, 1], [], []>} : vector<8x128xbf16>, vector<128x128xbf16>, vector<8x128xf32> -> vector<8x128xf32>
    %277 = arith.addf %271, %276 : vector<8x128xf32>
    %c13_256 = arith.constant 13 : index
    %c0_257 = arith.constant 0 : index
    %278 = tpu.strided_load %arg18[%c13_256, %c0_257] {strides = array<i32: 2, 1>} : memref<36x128xf32, #tpu.memory_space<vmem>>, vector<8x128xf32>
    %279 = arith.truncf %278 : vector<8x128xf32> to vector<8x128xbf16>
    %c7_258 = arith.constant 7 : index
    %c0_259 = arith.constant 0 : index
    %c0_260 = arith.constant 0 : index
    %280 = vector.load %arg11[%c7_258, %c0_259, %c0_260] : memref<9x128x128xbf16, #tpu.memory_space<vmem>>, vector<1x128x128xbf16>
    %281 = vector.shape_cast %280 : vector<1x128x128xbf16> to vector<128x128xbf16>
    %cst_261 = arith.constant dense<0.000000e+00> : vector<8x128xf32>
    %282 = tpu.matmul %279, %281, %cst_261 {dimension_numbers = #tpu.dot_dimension_numbers<[1], [0], [0], [1], [0, 0, 1, 1], [], []>} : vector<8x128xbf16>, vector<128x128xbf16>, vector<8x128xf32> -> vector<8x128xf32>
    %283 = arith.addf %277, %282 : vector<8x128xf32>
    %c14 = arith.constant 14 : index
    %c0_262 = arith.constant 0 : index
    %284 = tpu.strided_load %arg18[%c14, %c0_262] {strides = array<i32: 2, 1>} : memref<36x128xf32, #tpu.memory_space<vmem>>, vector<8x128xf32>
    %285 = arith.truncf %284 : vector<8x128xf32> to vector<8x128xbf16>
    %c8_263 = arith.constant 8 : index
    %c0_264 = arith.constant 0 : index
    %c0_265 = arith.constant 0 : index
    %286 = vector.load %arg11[%c8_263, %c0_264, %c0_265] : memref<9x128x128xbf16, #tpu.memory_space<vmem>>, vector<1x128x128xbf16>
    %287 = vector.shape_cast %286 : vector<1x128x128xbf16> to vector<128x128xbf16>
    %cst_266 = arith.constant dense<0.000000e+00> : vector<8x128xf32>
    %288 = tpu.matmul %285, %287, %cst_266 {dimension_numbers = #tpu.dot_dimension_numbers<[1], [0], [0], [1], [0, 0, 1, 1], [], []>} : vector<8x128xbf16>, vector<128x128xbf16>, vector<8x128xf32> -> vector<8x128xf32>
    %289 = arith.addf %283, %288 : vector<8x128xf32>
    %c0_267 = arith.constant 0 : index
    %c0_268 = arith.constant 0 : index
    %290 = vector.load %arg12[%c0_267, %c0_268] : memref<1x128xf32, #tpu.memory_space<vmem>>, vector<1x128xf32>
    %291 = vector.broadcast %290 : vector<1x128xf32> to vector<8x128xf32>
    %292 = arith.addf %289, %291 : vector<8x128xf32>
    %cst_269 = arith.constant 0.000000e+00 : f32
    %293 = vector.broadcast %cst_269 : f32 to vector<8x128xf32>
    %294 = arith.maximumf %292, %293 : vector<8x128xf32>
    %295 = vector.extract_strided_slice %294 {offsets = [0, 0], sizes = [1, 128], strides = [1, 1]} : vector<8x128xf32> to vector<1x128xf32>
    %296 = vector.extract_strided_slice %294 {offsets = [1, 0], sizes = [1, 128], strides = [1, 1]} : vector<8x128xf32> to vector<1x128xf32>
    %297 = arith.addf %295, %296 : vector<1x128xf32>
    %298 = vector.extract_strided_slice %294 {offsets = [6, 0], sizes = [1, 128], strides = [1, 1]} : vector<8x128xf32> to vector<1x128xf32>
    %299 = arith.addf %297, %298 : vector<1x128xf32>
    %300 = vector.extract_strided_slice %294 {offsets = [7, 0], sizes = [1, 128], strides = [1, 1]} : vector<8x128xf32> to vector<1x128xf32>
    %301 = arith.addf %299, %300 : vector<1x128xf32>
    %cst_270 = arith.constant 2.500000e-01 : f32
    %302 = vector.broadcast %cst_270 : f32 to vector<1x128xf32>
    %303 = arith.mulf %301, %302 : vector<1x128xf32>
    %304 = arith.truncf %303 : vector<1x128xf32> to vector<1x128xbf16>
    %c0_271 = arith.constant 0 : index
    %c0_272 = arith.constant 0 : index
    %305 = vector.load %arg13[%c0_271, %c0_272] : memref<128x128xbf16, #tpu.memory_space<vmem>>, vector<128x128xbf16>
    %cst_273 = arith.constant dense<0.000000e+00> : vector<1x128xf32>
    %306 = tpu.matmul %304, %305, %cst_273 {dimension_numbers = #tpu.dot_dimension_numbers<[1], [0], [0], [1], [0, 0, 1, 1], [], []>} : vector<1x128xbf16>, vector<128x128xbf16>, vector<1x128xf32> -> vector<1x128xf32>
    %c0_274 = arith.constant 0 : index
    %c0_275 = arith.constant 0 : index
    %307 = vector.load %arg14[%c0_274, %c0_275] : memref<1x128xf32, #tpu.memory_space<vmem>>, vector<1x128xf32>
    %308 = arith.addf %306, %307 : vector<1x128xf32>
    %c0_276 = arith.constant 0 : index
    %c0_277 = arith.constant 0 : index
    %c0_278 = arith.constant 0 : index
    %309 = vector.load %arg15[%c0_276, %c0_277, %c0_278] : memref<1x1x128xf32, #tpu.memory_space<vmem>>, vector<1x1x128xf32>
    %310 = vector.shape_cast %309 : vector<1x1x128xf32> to vector<1x128xf32>
    %311 = vector.shape_cast %308 : vector<1x128xf32> to vector<1x1x128xf32>
    tpu.vector_store %arg15[%c0_276, %c0_277, %c0_278], %311 {strides = array<i32>} : memref<1x1x128xf32, #tpu.memory_space<vmem>>, vector<1x1x128xf32>,
    return
  }
  func.func @transform_0(%arg0: i32) -> (i32, i32, i32) {
    %c0_i32 = arith.constant 0 : i32
    %c0_i32_0 = arith.constant 0 : i32
    %c0_i32_1 = arith.constant 0 : i32
    return %arg0, %c0_i32, %c0_i32_0 : i32, i32, i32
  }
  func.func @transform_1(%arg0: i32) -> (i32, i32) {
    %c0_i32 = arith.constant 0 : i32
    %c0_i32_0 = arith.constant 0 : i32
    %c0_i32_1 = arith.constant 0 : i32
    return %c0_i32, %c0_i32_0 : i32, i32
  }
  func.func @transform_2(%arg0: i32) -> (i32, i32) {
    %c0_i32 = arith.constant 0 : i32
    %c0_i32_0 = arith.constant 0 : i32
    %c0_i32_1 = arith.constant 0 : i32
    return %c0_i32, %c0_i32_0 : i32, i32
  }
  func.func @transform_3(%arg0: i32) -> (i32, i32, i32) {
    %c0_i32 = arith.constant 0 : i32
    %c0_i32_0 = arith.constant 0 : i32
    %c0_i32_1 = arith.constant 0 : i32
    %c0_i32_2 = arith.constant 0 : i32
    return %c0_i32, %c0_i32_0, %c0_i32_1 : i32, i32, i32
  }
  func.func @transform_4(%arg0: i32) -> (i32, i32) {
    %c0_i32 = arith.constant 0 : i32
    %c0_i32_0 = arith.constant 0 : i32
    %c0_i32_1 = arith.constant 0 : i32
    return %c0_i32, %c0_i32_0 : i32, i32
  }
  func.func @transform_5(%arg0: i32) -> (i32, i32) {
    %c0_i32 = arith.constant 0 : i32
    %c0_i32_0 = arith.constant 0 : i32
    %c0_i32_1 = arith.constant 0 : i32
    return %c0_i32, %c0_i32_0 : i32, i32
  }
  func.func @transform_6(%arg0: i32) -> (i32, i32) {
    %c0_i32 = arith.constant 0 : i32
    %c0_i32_0 = arith.constant 0 : i32
    %c0_i32_1 = arith.constant 0 : i32
    return %c0_i32, %c0_i32_0 : i32, i32
  }
  func.func @transform_7(%arg0: i32) -> (i32, i32) {
    %c0_i32 = arith.constant 0 : i32
    %c0_i32_0 = arith.constant 0 : i32
    %c0_i32_1 = arith.constant 0 : i32
    return %c0_i32, %c0_i32_0 : i32, i32
  }
  func.func @transform_8(%arg0: i32) -> (i32, i32, i32) {
    %c0_i32 = arith.constant 0 : i32
    %c0_i32_0 = arith.constant 0 : i32
    %c0_i32_1 = arith.constant 0 : i32
    %c0_i32_2 = arith.constant 0 : i32
    return %c0_i32, %c0_i32_0, %c0_i32_1 : i32, i32, i32
  }
  func.func @transform_9(%arg0: i32) -> (i32, i32) {
    %c0_i32 = arith.constant 0 : i32
    %c0_i32_0 = arith.constant 0 : i32
    %c0_i32_1 = arith.constant 0 : i32
    return %c0_i32, %c0_i32_0 : i32, i32
  }
  func.func @transform_10(%arg0: i32) -> (i32, i32, i32) {
    %c0_i32 = arith.constant 0 : i32
    %c0_i32_0 = arith.constant 0 : i32
    %c0_i32_1 = arith.constant 0 : i32
    %c0_i32_2 = arith.constant 0 : i32
    return %c0_i32, %c0_i32_0, %c0_i32_1 : i32, i32, i32
  }
  func.func @transform_11(%arg0: i32) -> (i32, i32) {
    %c0_i32 = arith.constant 0 : i32
    %c0_i32_0 = arith.constant 0 : i32
    %c0_i32_1 = arith.constant 0 : i32
    return %c0_i32, %c0_i32_0 : i32, i32
  }
  func.func @transform_12(%arg0: i32) -> (i32, i32) {
    %c0_i32 = arith.constant 0 : i32
    %c0_i32_0 = arith.constant 0 : i32
    %c0_i32_1 = arith.constant 0 : i32
    return %c0_i32, %c0_i32_0 : i32, i32
  }
  func.func @transform_13(%arg0: i32) -> (i32, i32) {
    %c0_i32 = arith.constant 0 : i32
    %c0_i32_0 = arith.constant 0 : i32
    %c0_i32_1 = arith.constant 0 : i32
    return %c0_i32, %c0_i32_0 : i32, i32
  }
  func.func @transform_14(%arg0: i32) -> (i32, i32, i32) {
    %c0_i32 = arith.constant 0 : i32
    %c0_i32_0 = arith.constant 0 : i32
    %c0_i32_1 = arith.constant 0 : i32
    return %arg0, %c0_i32, %c0_i32_0 : i32, i32, i32
  }
}

</mosaic_0001>

<bundles_post_ra>
// kernel: vae_classifier_forward.1
= control target key start
LH: loop header
LB: loop body
LE: loop exit
PB: predicated region body
PF: predicated region fallthrough
CT: control target
= control target key end

     0   :  { %s7899_s0 = inlined_call_operand.vmem [shape: f32[2,18,64], index: 0, kind: input, shape index: {}]   ;;  %s7900_s1 = inlined_call_operand.hbm [shape: bf16[256,256], index: 1, kind: input, shape index: {}]   ;;  %s7901_s2 = inlined_call_operand.vmem [shape: f32[1,256], index: 2, kind: input, shape index: {}]   ;;  %s7902_s3 = inlined_call_operand.hbm [shape: bf16[9,32,32], index: 3, kind: input, shape index: {}]   ;;  %s7903_s4 = inlined_call_operand.vmem [shape: f32[1,32], index: 4, kind: input, shape index: {}]   ;;  %s7904_s5 = inlined_call_operand.vmem [shape: f32[64,32], index: 5, kind: input, shape index: {}]   ;;  %s7905_s6 = inlined_call_operand.hbm [shape: f32[32,64], index: 6, kind: input, shape index: {}]   ;;  %s7906_s7 = inlined_call_operand.vmem [shape: f32[1,64], index: 7, kind: input, shape index: {}]   ;;  %s7907_s8 = inlined_call_operand.hbm [shape: bf16[9,32,128], index: 8, kind: input, shape index: {}]   ;;  %s7908_s9 = inlined_call_operand.vmem [shape: f32[1,128], index: 9, kind: input, shape index: {}]   ;;  %s7909_s10 = inlined_call_operand.vmem [shape: bf16[9,128,128], index: 10, kind: input, shape index: {}]   ;;  %s7910_s11 = inlined_call_operand.vmem [shape: f32[1,128], index: 11, kind: input, shape index: {}]   ;;  %s7911_s12 = inlined_call_operand.hbm [shape: bf16[128,128], index: 12, kind: input, shape index: {}]   ;;  %s7912_s13 = inlined_call_operand.vmem [shape: f32[1,128], index: 13, kind: input, shape index: {}]   ;;  %s7913_s14 = inlined_call_operand.hbm [shape: f32[2,1,128], index: 14, kind: output, shape index: {}]  }
   0x1   :  { %7929 = sst [smem:[#allocation27_spill]] %s7902_s3 }
   0x2   :  { %7930 = sst [smem:[#allocation28_spill]] %s7907_s8 }
   0x3   :  { %7931 = sst [smem:[#allocation29_spill]] %s7912_s13 }
   0x4   :  { %7932 = sst [smem:[#allocation30_spill]] %s7913_s14 }
   0x5   :  { %19 = vsyncpa [#allocation6], 0 }
   0x6   :  { %20 = vsyncpa [#allocation9], 0 }
   0x7   :  { %21 = vsyncpa [#allocation12], 0 }
   0x8   :  { %22 = vsyncpa [#allocation7], 0 }
   0x9   :  { %24 = vsyncpa [#allocation7 + $0x1], 0  ;;  %s6589_s29 = smov 0   ;;  %s6591_s30 = smov 0  }
   0xa   :  { %s6593_s15 = smov 0   ;;  %s6595_s16 = smov 0  }
   0xb LB: > { %7933 = sst [smem:[#allocation19_spill]] %s6485_s29  ;;  %s6610_s17 = sadd.s32 4294967295, %s6497_s16   ;;  %s6497_s16 = sphi %s6595_s16, %s7966_s16   ;;  %s6493_s15 = sphi %s6593_s15, %s7969_s15   ;;  %s6489_s30 = sphi %s6591_s30, %s7968_s30   ;;  %s6485_s29 = sphi %s6589_s29, %s7967_s29  }
   0xc   : > { %7934 = sst [smem:[#allocation20_spill]] %s6489_s30  ;;  %s4743_s18 = sadd.s32 4294967294, %s6497_s16  }
   0xd   : > { %7935 = sst [smem:[#allocation21_spill]] %s6493_s15  ;;  %s6614_s19 = sadd.s32 1, %s6497_s16  }
   0xe   : > { %7936 = sst [smem:[#allocation22_spill]] %s6497_s16  ;;  %s336_s20 = sadd.s32 1, %s6493_s15 }
   0xf   : > { %7937 = sst [smem:[#allocation23_spill]] %s6614_s19  ;;  %s333_s21 = ssub.s32 %s6497_s16, %s6614_s19 }
  0x10   : > { %p346_p0 = scmp.ne.s32.totalorder %s6493_s15, %s6489_s30  ;;  %p334_p1 = scmp.eq.s32.totalorder %s333_s21, 0 }
  0x11   : > { %p347_p2 = scmp.eq.s32.totalorder %s6610_s17, 1  ;;  %p352_p3 = scmp.ne.s32.totalorder %s6489_s30, %s6485_s29 }
  0x12   : > { %p353_p4 = scmp.eq.s32.totalorder %s4743_s18, 1  ;;  %p4744_p7 = scmp.ge.s32.totalorder %s6497_s16, 1 }
  0x13   : > { %s6625_s22 = scalar_select %p334_p1, %s6493_s15, %s336_s20  }
  0x14   : > { %p6627_p5 = por %p347_p2, %p346_p0  ;;  %p6631_p6 = por %p353_p4, %p352_p3 }
  0x15   : > { %7938 = sst [smem:[#allocation24_spill]] %s6625_s22  ;;  %p360_p8 = scmp.lt.s32.totalorder %s6497_s16, 3 }
  0x16   : > { %s7939_s23 = scalar_select %p6627_p5, 1, 0 }
  0x17   : > { %s7941_s24 = scalar_select %p6631_p6, 1, 0 }
  0x18   : > { %7940 = sst [smem:[#allocation25_spill]] %s7939_s23  ;;  %p7920_p9 = scmp.eq.s32.totalorder %s6610_s17, 0 }
  0x19   : > { %7942 = sst [smem:[#allocation26_spill]] %s7941_s24  ;;  %p6638_p10 = pnand %p4744_p7, %p360_p8 }
  0x1a   : > { %s6499_s26 = smov [#allocation8]   ;;  %s6500_s18 = smov [#allocation11]  }
  0x1b   : > { %s7943_s25 = scalar_select %p6638_p10, 1, 0 }
  0x1c   : > { %s388_s27 = sshll.u32 %s6499_s26, 4  ;;  %p6037_p11 = pneg %p6638_p10  ;;  %s6644_s27 = int_to_ptr.vmem [resolvable:$true] %s388_s27 }
  0x1d   : > { %s423_s20 = sshll.u32 %s6500_s18, 4  ;;  %s6501_s21 = smov [#allocation5]   ;;  %s6652_s20 = int_to_ptr.vmem [resolvable:$true] %s423_s20 }
  0x1e   : > { %p6648_p12 = pnand %p7920_p9, %p6037_p11  ;;  %s6654_s22 = sshll.u32 %s6501_s21, 4  ;;  %s373_s22 = int_to_ptr.vmem [resolvable:$true] %s6654_s22 }
  0x1f   : > { %s7945_s3 = sld [smem:[#allocation27_spill]] }
  0x20   : > { %p6664_p0 = pneg %p6648_p12 }
  0x25   : > { %s6283_s26 = scalar_lea.hbm %s7945_s3, 2304 }
  0x26   : > { %p6284_p13 = scmp.ne.s32.totalorder %s7945_s3, %s6283_s26  ;;  %p6290_p3 = scmp.lt.u32.totalorder %s6283_s26, %s7945_s3 }
  0x28   : > { %p6286_p1 = pnand %p6664_p0, %p6284_p13 }
  0x2a   : > { %p6287_p2 = pneg %p6286_p1 }
  0x2c   : > { %p6292_p4 = pnand %p6290_p3, %p6287_p2 }
  0x2e   : > { %6295 = shalt.err (!%p6292_p4)
}
  0x2f   : > { %s6296_s29 = scalar_lea.vmem %s6644_s27, 2304  ;;  %p6304_p9 = scmp.lt.s32.totalorder %s6644_s27, %s6644_s27 }
  0x30   : > { %p6297_p7 = scmp.ne.s32.totalorder %s6644_s27, %s6296_s29  ;;  %p6305_p6 = scmp.lt.s32.totalorder %s6296_s29, %s6296_s29 }
  0x32   : > { %p6299_p8 = pnand %p6297_p7, %p6664_p0  ;;  %p6306_p13 = por %p6305_p6, %p6304_p9 }
  0x34   : > { %p6300_p11 = pneg %p6299_p8 }
  0x36   : > { %p6307_p1 = pnand %p6306_p13, %p6300_p11 }
  0x38   : > { %6310 = shalt.err (!%p6307_p1)
}
  0x39   : > { %s7927_s15 = smov 64   ;;  %s7928_s19 = smov 4  }
  0x3a   : > { %6043 = dma.hbm_to_vmem [thread:$0]  (!%p6648_p12), %s7945_s3, 2304, %s6644_s27, [#allocation9], %s7927_s15, %s7927_s15, %s7928_s19  }
  0x3b   : > { %s7947_s8 = sld [smem:[#allocation28_spill]] }
  0x41   : > { %s6311_s29 = scalar_lea.hbm %s7947_s8, 2304 }
  0x42   : > { %p6312_p6 = scmp.ne.s32.totalorder %s7947_s8, %s6311_s29  ;;  %p6318_p3 = scmp.lt.u32.totalorder %s6311_s29, %s7947_s8 }
  0x44   : > { %p6314_p9 = pnand %p6312_p6, %p6664_p0 }
  0x46   : > { %p6315_p2 = pneg %p6314_p9 }
  0x48   : > { %p6320_p4 = pnand %p6318_p3, %p6315_p2 }
  0x4a   : > { %6323 = shalt.err (!%p6320_p4)
}
  0x4b   : > { %s6324_s27 = scalar_lea.vmem %s6652_s20, 2304  ;;  %p6332_p13 = scmp.lt.s32.totalorder %s6652_s20, %s6652_s20 }
  0x4c   : > { %p6325_p7 = scmp.ne.s32.totalorder %s6652_s20, %s6324_s27  ;;  %p6333_p1 = scmp.lt.s32.totalorder %s6324_s27, %s6324_s27 }
  0x4e   : > { %p6327_p8 = pnand %p6325_p7, %p6664_p0  ;;  %p6334_p6 = por %p6333_p1, %p6332_p13 }
  0x50   : > { %p6328_p11 = pneg %p6327_p8 }
  0x52   : > { %p6335_p9 = pnand %p6334_p6, %p6328_p11 }
  0x54   : > { %6338 = shalt.err (!%p6335_p9)
}
  0x55   : > { %6049 = dma.hbm_to_vmem [thread:$0]  (!%p6648_p12), %s7947_s8, 2304, %s6652_s20, [#allocation12], %s7927_s15, %s7927_s15, %s7928_s19  }
  0x56   : > { %s6339_s24 = scalar_lea.hbm %s7900_s1, 4096 }
  0x57   : > { %p6340_p2 = scmp.ne.s32.totalorder %s7900_s1, %s6339_s24  ;;  %p6346_p7 = scmp.lt.u32.totalorder %s6339_s24, %s7900_s1 }
  0x59   : > { %p6342_p3 = pnand %p6340_p2, %p6664_p0 }
  0x5b   : > { %p6343_p4 = pneg %p6342_p3 }
  0x5d   : > { %p6348_p8 = pnand %p6346_p7, %p6343_p4 }
  0x5f   : > { %6351 = shalt.err (!%p6348_p8)
}
  0x60   : > { %s6352_s27 = scalar_lea.vmem %s373_s22, 4096  ;;  %p6360_p6 = scmp.lt.s32.totalorder %s373_s22, %s373_s22 }
  0x61   : > { %p6353_p11 = scmp.ne.s32.totalorder %s373_s22, %s6352_s27  ;;  %p6361_p9 = scmp.lt.s32.totalorder %s6352_s27, %s6352_s27 }
  0x63   : > { %p6355_p13 = pnand %p6353_p11, %p6664_p0  ;;  %p6362_p5 = por %p6361_p9, %p6360_p6 }
  0x65   : > { %p6356_p1 = pneg %p6355_p13 }
  0x67   : > { %p6363_p10 = pnand %p6362_p5, %p6356_p1 }
  0x69   : > { %6366 = shalt.err (!%p6363_p10)
}
  0x6a   : > { %s6504_s20 = smov 128   ;;  %s6505_s13 = smov 8  }
  0x6b   : > { %6040 = dma.hbm_to_vmem [thread:$0]  (!%p6648_p12), %s7900_s1, 4096, %s373_s22, [#allocation6], %s6504_s20, %s6504_s20, %s6505_s13  }
  0x6c   : > { %s6506_s23 = smov [#allocation10]   ;;  %s6507_s26 = smov [#allocation13]  }
  0x6d   : > { %s407_s24 = sshll.u32 %s6506_s23, 4  ;;  %s445_s18 = sshll.u32 %s6507_s26, 4  ;;  %s408_s24 = int_to_ptr.vmem [resolvable:$true] %s407_s24  ;;  %s446_s18 = int_to_ptr.vmem [resolvable:$true] %s445_s18 }
  0x6e   : > { %s6367_s27 = scalar_lea.hbm %s7905_s6, 512 }
  0x6f   : > { %p6368_p5 = scmp.ne.s32.totalorder %s7905_s6, %s6367_s27  ;;  %p6374_p3 = scmp.lt.u32.totalorder %s6367_s27, %s7905_s6 }
  0x71   : > { %p6370_p10 = pnand %p6368_p5, %p6664_p0 }
  0x73   : > { %p6371_p2 = pneg %p6370_p10 }
  0x75   : > { %p6376_p4 = pnand %p6374_p3, %p6371_p2 }
  0x77   : > { %6379 = shalt.err (!%p6376_p4)
}
  0x78   : > { %s6380_s22 = scalar_lea.vmem %s408_s24, 512  ;;  %p6388_p13 = scmp.lt.s32.totalorder %s408_s24, %s408_s24 }
  0x79   : > { %p6381_p7 = scmp.ne.s32.totalorder %s408_s24, %s6380_s22  ;;  %p6389_p1 = scmp.lt.s32.totalorder %s6380_s22, %s6380_s22 }
  0x7b   : > { %p6383_p8 = pnand %p6381_p7, %p6664_p0  ;;  %p6390_p6 = por %p6389_p1, %p6388_p13 }
  0x7d   : > { %p6384_p11 = pneg %p6383_p8 }
  0x7f   : > { %p6391_p9 = pnand %p6390_p6, %p6384_p11 }
  0x81   : > { %6394 = shalt.err (!%p6391_p9)
}
  0x82   : > { %6046 = dma.hbm_to_vmem [thread:$0]  (!%p6648_p12), %s7905_s6, 512, %s408_s24, [#allocation9], %s6504_s20, %s6504_s20, %s6505_s13  }
  0x83   : > { %s6395_s14 = scalar_lea.hbm %s7911_s12, 1024 }
  0x84   : > { %p6396_p5 = scmp.ne.s32.totalorder %s7911_s12, %s6395_s14  ;;  %p6402_p3 = scmp.lt.u32.totalorder %s6395_s14, %s7911_s12 }
  0x86   : > { %p6398_p10 = pnand %p6396_p5, %p6664_p0 }
  0x88   : > { %p6399_p2 = pneg %p6398_p10 }
  0x8a   : > { %p6404_p4 = pnand %p6402_p3, %p6399_p2 }
  0x8c   : > { %6407 = shalt.err (!%p6404_p4)
}
  0x8d   : > { %s6408_s29 = scalar_lea.vmem %s446_s18, 1024  ;;  %p6416_p13 = scmp.lt.s32.totalorder %s446_s18, %s446_s18 }
  0x8e   : > { %p6409_p7 = scmp.ne.s32.totalorder %s446_s18, %s6408_s29  ;;  %p6417_p1 = scmp.lt.s32.totalorder %s6408_s29, %s6408_s29 }
  0x90   : > { %p6411_p8 = pnand %p6409_p7, %p6664_p0  ;;  %p6418_p6 = por %p6417_p1, %p6416_p13 }
  0x92   : > { %p6412_p11 = pneg %p6411_p8 }
  0x94   : > { %p6419_p9 = pnand %p6418_p6, %p6412_p11 }
  0x96   : > { %6422 = shalt.err (!%p6419_p9)
}
  0x97   : > { %s7948_s20 = smov 4   ;;  %s7949_s13 = smov 64  }
  0x98   : > { %6052 = dma.hbm_to_vmem [thread:$0]  (!%p6648_p12), %s7911_s12, 1024, %s446_s18, [#allocation12], %s7949_s13, %s7949_s13, %s7948_s20  }
  0x99   : > { %p7950_p5 = scmp.ne.s32.totalorder %s7943_s25, 0 }
  0x9a   : > { %p7951_p0 = scmp.eq.s32.totalorder (!%p7950_p5), %s6610_s17, 0 }
  0x9b   : > { %472 = sbr.rel (%p7950_p5) target bundleno = 2826 (0xb0a), region = 76 }
  0xa2   : > { %6468 = dma.done.wait (%p7951_p0), [#allocation6], 4096   ;;  %p7952_p10 = pmov %p7951_p0 }
  0xa3   : > { %p7953_p2 = pmov %p7951_p0 }
  0xa4   : > { %6470 = vsyncadd (%p7952_p10), [#allocation6], 4294963200 }
  0xa5   : > { %6472 = dma.done.wait (%p7953_p2), [#allocation9], 2816   ;;  %p7954_p3 = pmov %p7951_p0 }
  0xa6   : > { %p7955_p4 = pmov %p7951_p0 }
  0xa7   : > { %6474 = vsyncadd (%p7954_p3), [#allocation9], 4294964480 }
  0xa8   : > { %6476 = dma.done.wait (%p7955_p4), [#allocation12], 3328   ;;  %p7956_p12 = pmov %p7951_p0 }
  0xa9   : > { %vm539_vm0 = vcmask 261120   ;;  %p533_p7 = scmp.lt.s32.totalorder %s6610_s17, 1  ;;  %v6508_v0 = vmov 0.0   ;;  %v6119_v4 = vld [vmem:[#allocation5 + $0x4] ss:$8 sps:$4 sm:$0xff]   ;;  %s6509_s15 = smov 64   ;;  %v623_v49 = vlaneseq }
  0xaa   : > { %6478 = vsyncadd (%p7956_p12), [#allocation12], 4294963968  ;;  %540 = vst.msk [vmem:[#allocation2] sm:$0xff] %vm539_vm0, %v6508_v0  ;;  %5376 = vmatprep.subr.bf16.mxu1 %v6508_v0  ;;  %v6121_v5 = vld [vmem:[#allocation5] ss:$8 sps:$4 sm:$0xff]   ;;  %793 = vmatprep.subr.bf16.mxu0 %v6119_v4  ;;  %vm584_vm1 = vcmask 523264  }
  0xab   : > { %551 = vst.msk [vmem:[#allocation2 + $0x59] sm:$0xff] %vm539_vm0, %v6508_v0  ;;  %554 = vst.msk [vmem:[#allocation3] sm:$0xff] %vm539_vm0, %v6508_v0  ;;  %s534_s16 = scalar_select %p533_p7, %s6610_s17, 1  ;;  %v6122_v6 = vld [vmem:[#allocation5 + $0x14] ss:$8 sps:$4 sm:$0xff]   ;;  %794 = vmatpush1.bf16.msra.mxu0 %v6121_v5  ;;  %vm541_vm2 = vcmask 256000  }
  0xac   : > { %565 = vst [vmem:[#allocation4] sm:$0x7f] %v6508_v0  ;;  %566 = vst [vmem:[#allocation4 + $0xb] sm:$0x3] %v6508_v0  ;;  %v6124_v7 = vld [vmem:[#allocation5 + $0x10] ss:$8 sps:$4 sm:$0xff]   ;;  %795 = vmatprep.subr.bf16.mxu0 %v6122_v6 }
  0xad   : > { %567 = vst [vmem:[#allocation4 + $0x11] sm:$0x3] %v6508_v0  ;;  %568 = vst [vmem:[#allocation4 + $0x17] sm:$0x3] %v6508_v0  ;;  %s6014_s25 = smul.u32 24, %s534_s16  ;;  %vm543_vm3 = vcmask 254976  }
  0xae   : > { %v6125_v8 = vld [vmem:[#allocation5 + $0x24] ss:$8 sps:$4 sm:$0xff]   ;;  %v6127_v9 = vld [vmem:[#allocation5 + $0x20] ss:$8 sps:$4 sm:$0xff]   ;;  %v6128_v10 = vld [vmem:[#allocation5 + $0x34] ss:$8 sps:$4 sm:$0xff]  }
  0xaf   : > { %s6802_s22 = scalar_lea.vmem %s7899_s0, %s6014_s25  ;;  %796 = vmatpush1.bf16.msra.mxu0 %v6124_v7  ;;  %v6130_v11 = vld [vmem:[#allocation5 + $0x30] ss:$8 sps:$4 sm:$0xff]   ;;  %v6131_v12 = vld [vmem:[#allocation5 + $0x44] ss:$8 sps:$4 sm:$0xff]   ;;  %v6133_v13 = vld [vmem:[#allocation5 + $0x40] ss:$8 sps:$4 sm:$0xff]  }
  0xb0   : > { %v4758_v1 = vld [vmem:[%s6802_s22 + $0x1] ss:$2 sm:$0xff]  ;;  %797 = vmatprep.subr.bf16.mxu0 %v6125_v8  ;;  %v4759_v37 = vld [vmem:[%s6802_s22 + $0x2] ss:$2 sm:$0xff]  ;;  %542 = vst.msk [vmem:[#allocation2 + $0x8] sm:$0x7] %vm541_vm2, %v6508_v0 }
  0xb1   : > { %v4760_v2 = vld [vmem:[%s6802_s22 + $0x3] ss:$2 sm:$0xff]  ;;  %v569_v38 = vld [vmem:[%s6802_s22] ss:$2 sm:$0xff]  ;;  %555 = vst.msk [vmem:[#allocation3 + $0x8] sm:$0x7] %vm541_vm2, %v6508_v0 }
  0xb2   : > { %v6114_v3 = vpack.i.bf16 %v4758_v1, %v4760_v2  ;;  %v6134_v14 = vld [vmem:[#allocation5 + $0x54] ss:$8 sps:$4 sm:$0xff]   ;;  %v6136_v15 = vld [vmem:[#allocation5 + $0x50] ss:$8 sps:$4 sm:$0xff]   ;;  %v6137_v16 = vld [vmem:[#allocation5 + $0x64] ss:$8 sps:$4 sm:$0xff]  }
  0xb3   : > { %798 = vmatpush1.bf16.msra.mxu0 %v6127_v9  ;;  %v6139_v17 = vld [vmem:[#allocation5 + $0x60] ss:$8 sps:$4 sm:$0xff]   ;;  %v6140_v18 = vld [vmem:[#allocation5 + $0x74] ss:$8 sps:$4 sm:$0xff]   ;;  %v6142_v19 = vld [vmem:[#allocation5 + $0x70] ss:$8 sps:$4 sm:$0xff]  }
  0xb4   : > { %6115 = vrot.lane.b32.xlu0 %v6114_v3, %s6509_s15  ;;  %799 = vmatprep.subr.bf16.mxu0 %v6128_v10  ;;  %v6143_v20 = vld [vmem:[#allocation5 + $0x84] ss:$8 sps:$4 sm:$0xff]   ;;  %v6145_v21 = vld [vmem:[#allocation5 + $0x80] ss:$8 sps:$4 sm:$0xff]   ;;  %v6146_v22 = vld [vmem:[#allocation5 + $0x94] ss:$8 sps:$4 sm:$0xff]  }
  0xb5   : > { %v6148_v23 = vld [vmem:[#allocation5 + $0x90] ss:$8 sps:$4 sm:$0xff]   ;;  %v6149_v24 = vld [vmem:[#allocation5 + $0xa4] ss:$8 sps:$4 sm:$0xff]   ;;  %v6151_v25 = vld [vmem:[#allocation5 + $0xa0] ss:$8 sps:$4 sm:$0xff]  }
  0xb6   : > { %v6152_v26 = vld [vmem:[#allocation5 + $0xb4] ss:$8 sps:$4 sm:$0xff]   ;;  %v6154_v27 = vld [vmem:[#allocation5 + $0xb0] ss:$8 sps:$4 sm:$0xff]   ;;  %v6155_v28 = vld [vmem:[#allocation5 + $0xc4] ss:$8 sps:$4 sm:$0xff]  }
  0xb7   : > { %800 = vmatpush1.bf16.msra.mxu0 %v6130_v11  ;;  %v6157_v29 = vld [vmem:[#allocation5 + $0xc0] ss:$8 sps:$4 sm:$0xff]   ;;  %v6158_v30 = vld [vmem:[#allocation5 + $0xd4] ss:$8 sps:$4 sm:$0xff]   ;;  %v6160_v31 = vld [vmem:[#allocation5 + $0xd0] ss:$8 sps:$4 sm:$0xff]  }
  0xb8   : > { %801 = vmatprep.subr.bf16.mxu0 %v6131_v12  ;;  %v6161_v32 = vld [vmem:[#allocation5 + $0xe4] ss:$8 sps:$4 sm:$0xff]   ;;  %v6163_v33 = vld [vmem:[#allocation5 + $0xe0] ss:$8 sps:$4 sm:$0xff]   ;;  %v6164_v34 = vld [vmem:[#allocation5 + $0xf4] ss:$8 sps:$4 sm:$0xff]  }
  0xb9   : > { %v6166_v35 = vld [vmem:[#allocation5 + $0xf0] ss:$8 sps:$4 sm:$0xff]   ;;  %544 = vst.msk [vmem:[#allocation2 + $0x13] sm:$0x3] %vm543_vm3, %v6508_v0  ;;  %545 = vst.msk [vmem:[#allocation2 + $0x1d] sm:$0x3] %vm543_vm3, %v6508_v0 }
  0xba   : > { %546 = vst.msk [vmem:[#allocation2 + $0x27] sm:$0x3] %vm543_vm3, %v6508_v0  ;;  %547 = vst.msk [vmem:[#allocation2 + $0x31] sm:$0x3] %vm543_vm3, %v6508_v0  ;;  %v6167_v45 = vld [vmem:[#allocation8 + $0x10] sm:$0xff]   ;;  %v6168_v46 = vld [vmem:[#allocation8 + $0x20] sm:$0xff]  }
  0xbb   : > { %802 = vmatpush1.bf16.msra.mxu0 %v6133_v13  ;;  %548 = vst.msk [vmem:[#allocation2 + $0x3b] sm:$0x3] %vm543_vm3, %v6508_v0  ;;  %549 = vst.msk [vmem:[#allocation2 + $0x45] sm:$0x3] %vm543_vm3, %v6508_v0  ;;  %5377 = vmatpush3.bf16.msra.mxu1 %v6167_v45  ;;  %v6169_v47 = vld [vmem:[#allocation8 + $0x18] sm:$0xff]   ;;  %v6170_v48 = vld [vmem:[#allocation8 + $0x28] sm:$0xff]  }
  0xbc   : > { %803 = vmatprep.subr.bf16.mxu0 %v6134_v14  ;;  %550 = vst.msk [vmem:[#allocation2 + $0x4f] sm:$0x3] %vm543_vm3, %v6508_v0  ;;  %556 = vst.msk [vmem:[#allocation3 + $0x13] sm:$0x3] %vm543_vm3, %v6508_v0  ;;  %5378 = vmatprep.subr.bf16.mxu1 %v6508_v0  ;;  %vm6510_vm4 = vmmov 0   ;;  %v624_v50 = vshrl.u32 %v623_v49, 7 }
  0xbd   : > { %557 = vst.msk [vmem:[#allocation3 + $0x1d] sm:$0x3] %vm543_vm3, %v6508_v0  ;;  %558 = vst.msk [vmem:[#allocation3 + $0x27] sm:$0x3] %vm543_vm3, %v6508_v0  ;;  %5380 = vmatprep.mubr.msk.bf16.mxu1 %vm6510_vm4, %v6508_v0  ;;  %v621_v52 = vld [vmem:[%s7901_s2] sm:$0x3] }
  0xbe   : > { %559 = vst.msk [vmem:[#allocation3 + $0x31] sm:$0x3] %vm543_vm3, %v6508_v0  ;;  %560 = vst.msk [vmem:[#allocation3 + $0x3b] sm:$0x3] %vm543_vm3, %v6508_v0  ;;  %v625_v51 = vsub.s32 0, %v624_v50  ;;  %v629_v53 = vsub.s32 1, %v624_v50 }
  0xbf   : > { %804 = vmatpush1.bf16.msra.mxu0 %v6136_v15  ;;  %561 = vst.msk [vmem:[#allocation3 + $0x45] sm:$0x3] %vm543_vm3, %v6508_v0  ;;  %562 = vst.msk [vmem:[#allocation3 + $0x4f] sm:$0x3] %vm543_vm3, %v6508_v0  ;;  %5379 = vmatpush3.bf16.msra.mxu1 %v6169_v47  ;;  %s6511_s8 = smov 96   ;;  %vm552_vm5 = vcmask 260096  }
  0xc0   : > { %805 = vmatprep.subr.bf16.mxu0 %v6137_v16  ;;  %5400 = vmatprep.subr.bf16.mxu1 %v6508_v0  ;;  %v626_v54 = vrot.slane %v621_v52, %v625_v51  ;;  %v630_v55 = vrot.slane %v621_v52, %v629_v53  ;;  %553 = vst.msk [vmem:[#allocation2 + $0x61] sm:$0x7f] %vm552_vm5, %v6508_v0  ;;  %s6512_s14 = smov 32   ;;  %v883_v1 = vld [vmem:[#allocation2 + $0x1] sm:$0xff]  ;;  %v6171_v5 = vld [vmem:[#allocation8] sm:$0xff]   ;;  %v6176_v53 = vld [vmem:[#allocation8 + $0x38] sm:$0xff]  }
  0xc1   : > { %v1103_v2 = vld [vmem:[#allocation2 + $0x2] sm:$0xff]  ;;  %v6173_v9 = vld [vmem:[#allocation8 + $0x40] sm:$0xff]   ;;  %vm2235_vm6 = vcmask 521216   ;;  %s7957_s3 = sld [smem:[#allocation20_spill]]  ;;  %s7958_s23 = sld [smem:[#allocation29_spill]] }
  0xc2   : > { %v6172_v8 = vld [vmem:[#allocation8 + $0x8] sm:$0xff]   ;;  %v6175_v47 = vld [vmem:[#allocation8 + $0x30] sm:$0xff]   ;;  %v6177_v52 = vld [vmem:[#allocation8 + $0x60] sm:$0xff]   ;;  %s7959_s26 = sld [smem:[#allocation25_spill]]  ;;  %s5143_s21 = sshll.u32 %s6610_s17, 4 }
  0xc3   : > { %806 = vmatpush1.bf16.msra.mxu0 %v6139_v17  ;;  %v6174_v10 = vld [vmem:[#allocation8 + $0x48] sm:$0xff]   ;;  %s7960_s27 = sld [smem:[#allocation30_spill]]  ;;  %s6513_s28 = smov [#allocation14]  }
  0xc4   : > { %807 = vmatprep.subr.bf16.mxu0 %v6140_v18  ;;  %s6427_s18 = sshll.u32 %s6513_s28, 4  ;;  %s6428_s18 = int_to_ptr.vmem [resolvable:$false] %s6427_s18 }
  0xc5   : > { %s6429_s22 = scalar_lea.vmem %s6428_s18, 32 }
  0xc7   : > { %808 = vmatpush1.bf16.msra.mxu0 %v6142_v19 }
  0xc8   : > { %809 = vmatprep.subr.bf16.mxu0 %v6143_v20  ;;  %p7961_p11 = scmp.ne.s32.totalorder %s7959_s26, 0 }
  0xc9   : > { %s7857_s16 = scalar_lea.hbm %s7960_s27, %s5143_s21 }
  0xcb   : > { %810 = vmatpush1.bf16.msra.mxu0 %v6145_v21 }
  0xcc   : > { %811 = vmatprep.subr.bf16.mxu0 %v6146_v22 }
  0xcf   : > { %812 = vmatpush1.bf16.msra.mxu0 %v6148_v23 }
  0xd0   : > { %813 = vmatprep.subr.bf16.mxu0 %v6149_v24 }
  0xd3   : > { %814 = vmatpush1.bf16.msra.mxu0 %v6151_v25 }
  0xd4   : > { %815 = vmatprep.subr.bf16.mxu0 %v6152_v26 }
  0xd7   : > { %816 = vmatpush1.bf16.msra.mxu0 %v6154_v27 }
  0xd8   : > { %817 = vmatprep.subr.bf16.mxu0 %v6155_v28 }
  0xdb   : > { %818 = vmatpush1.bf16.msra.mxu0 %v6157_v29 }
  0xdc   : > { %819 = vmatprep.subr.bf16.mxu0 %v6158_v30 }
  0xdf   : > { %820 = vmatpush1.bf16.msra.mxu0 %v6160_v31 }
  0xe0   : > { %821 = vmatprep.subr.bf16.mxu0 %v6161_v32 }
  0xe3   : > { %822 = vmatpush1.bf16.msra.mxu0 %v6163_v33 }
  0xe4   : > { %823 = vmatprep.subr.bf16.mxu0 %v6164_v34 }
  0xe7   : > { %824 = vmatpush1.bf16.msra.mxu0 %v6166_v35 }
  0xe8   : > { %5424 = vmatprep.subr.bf16.mxu0 %v6508_v0 }
 0x126   : > { %v6116_v36 = vpop.permute.xlu0 %6115 }
 0x127   : > { %v6118_v39 = vunpack.i.h.bf16 %v6116_v36  ;;  %v6117_v40 = vunpack.i.l.bf16 %v6116_v36 }
 0x129   : > { %v586_v41 = vsel %vm584_vm1, %v4759_v37, %v6117_v40  ;;  %v585_v42 = vsel %vm584_vm1, %v569_v38, %v6118_v39 }
 0x12a   : > { %v588_v43 = vpack.c.bf16 %v586_v41, %v586_v41  ;;  %v587_v44 = vpack.c.bf16 %v585_v42, %v585_v42 }
 0x12c   : > { %825 = vmatprep.mubr.bf16.mxu0 %v588_v43 }
 0x12d   : > { %826 = vmatmul.mubr.bf16.vlgmr.msra.gmra.mrb[0].mxu0 %v587_v44  ;;  %v864_v44 = vld [vmem:[#allocation2] sm:$0xff] }
 0x12e   : > { %5425 = vmatpush3.bf16.msra.mxu0 %v6168_v46  ;;  %5428 = vmatprep.mubr.msk.bf16.mxu0 %vm6510_vm4, %v6508_v0 }
 0x12f   : > { %5426 = vmatprep.subr.bf16.mxu0 %v6508_v0 }
 0x132   : > { %5427 = vmatpush3.bf16.msra.mxu0 %v6170_v48 }
 0x133   : > { %5472 = vmatprep.subr.bf16.mxu0 %v6508_v0 }
 0x200   : > { %v827_v56 = vpop.f32.mrb[0].mxu0 }
 0x201   : > { %v828_v57 = vadd.f32 %v827_v56, %v626_v54  ;;  %v829_v58 = vpop.f32.mrb[1].mxu0  ;;  %v6178_v56 = vld [vmem:[#allocation8 + $0x68] sm:$0xff]  }
 0x202   : > { %v830_v59 = vadd.f32 %v829_v58, %v630_v55  ;;  %v831_v60 = vpop.f32.mrb[2].mxu0 }
 0x203   : > { %v834_v61 = vmax.f32 %v828_v57, 0.0  ;;  %v832_v62 = vpop.f32.mrb[3].mxu0 }
 0x204   : > { %v835_v63 = vmax.f32 %v830_v59, 0.0 }
 0x205   : > { %836 = vst.msk [vmem:[#allocation2 + $0xb] sm:$0xff] %vm539_vm0, %v834_v61  ;;  %842 = vrot.lane.b32.xlu1 %v834_v61, %s6509_s15  ;;  %838 = vrot.lane.b32.xlu0 %v834_v61, %s6511_s8 }
 0x206   : > { %850 = vst.msk [vmem:[#allocation2 + $0x33] sm:$0xff] %vm539_vm0, %v835_v63 }
 0x209   : > { %846 = vrot.lane.b32.xlu1 %v834_v61, %s6512_s14  ;;  %852 = vrot.lane.b32.xlu0 %v835_v63, %s6511_s8  ;;  %s531_s8 = sand.u32 1, %s7957_s3  }
 0x20a   : > { %s532_s29 = scalar_lea.vmem [#allocation14], %s531_s8  ;;  %s4626_s25 = scalar_lea.sflag [#allocation7], %s531_s8 }
 0x20b   : > { %s4638_s20 = sshll.u32 %s532_s29, 4  ;;  %s7859_s20 = int_to_ptr.vmem [resolvable:$true] %s4638_s20 }
 0x20c   : > { %v884_v3 = vld [vmem:[#allocation2 + $0x9] sm:$0xff]  ;;  %s6423_s17 = scalar_lea.vmem %s7859_s20, 16  ;;  %p6430_p6 = scmp.lt.s32.totalorder %s7859_s20, %s6428_s18 }
 0x20d   : > { %v6858_v4 = vld [vmem:[#allocation2 + $0xa] sm:$0xff]  ;;  %856 = vrot.lane.b32.xlu1 %v835_v63, %s6509_s15  ;;  %860 = vrot.lane.b32.xlu0 %v835_v63, %s6512_s14  ;;  %v893_v6 = vpack.c.bf16 %v884_v3, %v883_v1  ;;  %v6892_v25 = vld [vmem:[#allocation2 + $0x32] sm:$0xff]  ;;  %p6424_p8 = scmp.ne.s32.totalorder %s7859_s20, %s6423_s17  ;;  %p6431_p9 = scmp.lt.s32.totalorder %s6429_s22, %s6423_s17 }
 0x20e   : > { %v1113_v7 = vpack.c.bf16 %v6858_v4, %v1103_v2  ;;  %v889_v36 = vld [vmem:[#allocation2 + $0x31] sm:$0xff]  ;;  %v865_v45 = vld [vmem:[#allocation2 + $0x8] sm:$0xff] }
 0x20f   : > { %5381 = vmatmul.mubr.msk.bf16.vlgmr.msra.gmra.mrb[0].mxu1 %vm539_vm0, %v893_v6  ;;  %v874_v48 = vpack.c.bf16 %v865_v45, %v864_v44  ;;  %v1363_v50 = vld [vmem:[#allocation2 + $0xb] sm:$0xff]  ;;  %v1368_v2 = vld [vmem:[#allocation2 + $0x33] sm:$0xff]  ;;  %p6425_p13 = pnand %p6424_p8, %p7961_p11  ;;  %p6432_p5 = por %p6431_p9, %p6430_p6 }
 0x210   : > { %5429 = vmatmul.mubr.msk.bf16.vlgmr.msra.gmra.mrb[4].mxu0 %vm539_vm0, %v1113_v7  ;;  %5401 = vmatpush3.bf16.msra.mxu1 %v6171_v5 }
 0x211   : > { %5384 = vmatprep.mubr.msk.bf16.mxu1 %vm6510_vm4, %v6508_v0  ;;  %5432 = vmatprep.mubr.msk.bf16.mxu0 %vm6510_vm4, %v6508_v0  ;;  %p6426_p1 = pneg %p6425_p13 }
 0x212   : > { %5402 = vmatprep.subr.bf16.mxu1 %v6508_v0  ;;  %5473 = vmatpush3.bf16.msra.mxu0 %v6173_v9 }
 0x213   : > { %5474 = vmatprep.subr.bf16.mxu0 %v6508_v0  ;;  %p6433_p0 = pnand %p6432_p5, %p6426_p1 }
 0x214   : > { %5403 = vmatpush3.bf16.msra.mxu1 %v6172_v8 }
 0x215   : > { %5448 = vmatprep.subr.bf16.mxu1 %v6508_v0 }
 0x216   : > { %5475 = vmatpush3.bf16.msra.mxu0 %v6174_v10 }
 0x217   : > { %5520 = vmatprep.subr.bf16.mxu0 %v6508_v0 }
 0x277   : > { %v843_v11 = vpop.permute.xlu1 %842  ;;  %v839_v12 = vpop.permute.xlu0 %838 }
 0x278   : > { %845 = vst.msk [vmem:[#allocation2 + $0x1f] sm:$0xff] %vm539_vm0, %v843_v11  ;;  %841 = vst.msk [vmem:[#allocation2 + $0x15] sm:$0xff] %vm539_vm0, %v839_v12 }
 0x27b   : > { %v847_v13 = vpop.permute.xlu1 %846  ;;  %v853_v14 = vpop.permute.xlu0 %852 }
 0x27c   : > { %849 = vst.msk [vmem:[#allocation2 + $0x29] sm:$0xff] %vm539_vm0, %v847_v13  ;;  %855 = vst.msk [vmem:[#allocation2 + $0x3d] sm:$0xff] %vm539_vm0, %v853_v14 }
 0x27f   : > { %v857_v15 = vpop.permute.xlu1 %856  ;;  %v861_v16 = vpop.permute.xlu0 %860  ;;  %v885_v17 = vld [vmem:[#allocation2 + $0x11] sm:$0xff]  ;;  %v886_v18 = vld [vmem:[#allocation2 + $0x19] sm:$0xff]  ;;  %v887_v29 = vld [vmem:[#allocation2 + $0x21] sm:$0xff] }
 0x280   : > { %v6876_v19 = vld [vmem:[#allocation2 + $0x12] sm:$0xff]  ;;  %859 = vst.msk [vmem:[#allocation2 + $0x47] sm:$0xff] %vm539_vm0, %v857_v15  ;;  %863 = vst.msk [vmem:[#allocation2 + $0x51] sm:$0xff] %vm539_vm0, %v861_v16  ;;  %v894_v20 = vpack.c.bf16 %v886_v18, %v885_v17  ;;  %v6880_v21 = vld [vmem:[#allocation2 + $0x1a] sm:$0xff] }
 0x281   : > { %v1114_v22 = vpack.c.bf16 %v6880_v21, %v6876_v19  ;;  %v1364_v46 = vld [vmem:[#allocation2 + $0x13] sm:$0xff]  ;;  %v1365_v59 = vld [vmem:[#allocation2 + $0x1b] sm:$0xff] }
 0x282   : > { %5385 = vmatmul.mubr.msk.bf16.gmra.mrb[4].mxu1 %vm539_vm0, %v894_v20  ;;  %v1373_v51 = vpack.c.bf16 %v1364_v46, %v1363_v50  ;;  %v866_v54 = vld [vmem:[#allocation2 + $0x10] sm:$0xff]  ;;  %v867_v55 = vld [vmem:[#allocation2 + $0x18] sm:$0xff]  ;;  %v868_v63 = vld [vmem:[#allocation2 + $0x20] sm:$0xff] }
 0x283   : > { %5433 = vmatmul.mubr.msk.bf16.gmra.mrb[8].mxu0 %vm539_vm0, %v1114_v22  ;;  %5388 = vmatprep.mubr.msk.bf16.mxu1 %vm6510_vm4, %v6508_v0  ;;  %v6888_v23 = vld [vmem:[#allocation2 + $0x22] sm:$0xff]  ;;  %v6890_v24 = vld [vmem:[#allocation2 + $0x2a] sm:$0xff]  ;;  %v6900_v30 = vld [vmem:[#allocation2 + $0x3a] sm:$0xff]  ;;  %v875_v58 = vpack.c.bf16 %v867_v55, %v866_v54  ;;  %v1243_v22 = vpack.c.bf16 %v6876_v19, %v6858_v4 }
 0x284   : > { %5436 = vmatprep.mubr.msk.bf16.mxu0 %vm6510_vm4, %v6508_v0  ;;  %v1244_v26 = vpack.c.bf16 %v6888_v23, %v6880_v21  ;;  %v1245_v27 = vpack.c.bf16 %v6892_v25, %v6890_v24  ;;  %v888_v28 = vld [vmem:[#allocation2 + $0x29] sm:$0xff]  ;;  %v1115_v34 = vpack.c.bf16 %v6890_v24, %v6888_v23  ;;  %v890_v35 = vld [vmem:[#allocation2 + $0x39] sm:$0xff]  ;;  %v1116_v38 = vpack.c.bf16 %v6900_v30, %v6892_v25 }
 0x285   : > { %v895_v32 = vpack.c.bf16 %v888_v28, %v887_v29  ;;  %v896_v37 = vpack.c.bf16 %v890_v35, %v889_v36  ;;  %v1366_v57 = vld [vmem:[#allocation2 + $0x23] sm:$0xff]  ;;  %v1367_v62 = vld [vmem:[#allocation2 + $0x2b] sm:$0xff]  ;;  %v871_v6 = vld [vmem:[#allocation2 + $0x38] sm:$0xff] }
 0x286   : > { %v1374_v60 = vpack.c.bf16 %v1366_v57, %v1365_v59  ;;  %v869_v61 = vld [vmem:[#allocation2 + $0x28] sm:$0xff]  ;;  %v1375_v3 = vpack.c.bf16 %v1368_v2, %v1367_v62  ;;  %v870_v5 = vld [vmem:[#allocation2 + $0x30] sm:$0xff]  ;;  %v1369_v9 = vld [vmem:[#allocation2 + $0x3b] sm:$0xff] }
 0x287   : > { %v6902_v31 = vld [vmem:[#allocation2 + $0x42] sm:$0xff]  ;;  %v1112_v41 = vld [vmem:[#allocation2 + $0x4a] sm:$0x3f]  ;;  %v876_v1 = vpack.c.bf16 %v869_v61, %v868_v63  ;;  %v877_v8 = vpack.c.bf16 %v871_v6, %v870_v5  ;;  %v1372_v14 = vld [vmem:[#allocation2 + $0x53] sm:$0x3f] }
 0x288   : > { %v1246_v33 = vpack.c.bf16 %v6902_v31, %v6900_v30  ;;  %v891_v39 = vld [vmem:[#allocation2 + $0x41] sm:$0xff]  ;;  %v892_v40 = vld [vmem:[#allocation2 + $0x49] sm:$0x3f]  ;;  %v1117_v43 = vpack.c.bf16 %v1112_v41, %v6902_v31  ;;  %v6963_v17 = vld [vmem:[#allocation2 + $0x14] sm:$0xff] }
 0x289   : > { %v897_v42 = vpack.c.bf16 %v892_v40, %v891_v39  ;;  %v1370_v7 = vld [vmem:[#allocation2 + $0x43] sm:$0xff]  ;;  %v1371_v13 = vld [vmem:[#allocation2 + $0x4b] sm:$0xff]  ;;  %v6181_v29 = vld [vmem:[#allocation8 + $0x80] sm:$0xff]  }
 0x28a   : > { %5389 = vmatmul.mubr.msk.bf16.gmra.mrb[8].mxu1 %vm539_vm0, %v895_v32  ;;  %v1376_v10 = vpack.c.bf16 %v1370_v7, %v1369_v9  ;;  %v872_v11 = vld [vmem:[#allocation2 + $0x40] sm:$0xff]  ;;  %v873_v12 = vld [vmem:[#allocation2 + $0x48] sm:$0x3f]  ;;  %v1377_v16 = vpack.c.bf16 %v1372_v14, %v1371_v13  ;;  %v6180_v32 = vld [vmem:[#allocation8 + $0x58] sm:$0xff]  }
 0x28b   : > { %5437 = vmatmul.mubr.msk.bf16.gmra.mrb[12].mxu0 %vm539_vm0, %v1115_v34  ;;  %5392 = vmatprep.mubr.msk.bf16.mxu1 %vm6510_vm4, %v6508_v0  ;;  %v878_v15 = vpack.c.bf16 %v873_v12, %v872_v11  ;;  %v6965_v18 = vld [vmem:[#allocation2 + $0x1c] sm:$0xff]  ;;  %v6179_v20 = vld [vmem:[#allocation8 + $0x50] sm:$0xff]   ;;  %v1242_v30 = vld [vmem:[#allocation2 + $0x52] sm:$0x3f] }
 0x28c   : > { %5440 = vmatprep.mubr.msk.bf16.mxu0 %vm6510_vm4, %v6508_v0  ;;  %v1633_v28 = vpack.c.bf16 %v6965_v18, %v6963_v17  ;;  %v6182_v4 = vld [vmem:[#allocation8 + $0x88] sm:$0xff]   ;;  %v6980_v34 = vld [vmem:[#allocation2 + $0x2c] sm:$0xff]  ;;  %v1631_v31 = vld [vmem:[#allocation2 + $0x54] sm:$0xff] }
 0x28d   : > { %v6978_v19 = vld [vmem:[#allocation2 + $0x24] sm:$0xff]  ;;  %v6996_v36 = vld [vmem:[#allocation2 + $0x3c] sm:$0xff]  ;;  %v7008_v23 = vld [vmem:[#allocation2 + $0x4c] sm:$0xff] }
 0x28e   : > { %v1634_v35 = vpack.c.bf16 %v6980_v34, %v6978_v19  ;;  %v1629_v21 = vld [vmem:[#allocation2 + $0x44] sm:$0xff]  ;;  %v1493_v50 = vld [vmem:[#allocation2 + $0xc] sm:$0xff]  ;;  %v1504_v57 = vpack.c.bf16 %v6978_v19, %v6965_v18  ;;  %v1887_v59 = vld [vmem:[#allocation2 + $0x36] sm:$0xff] }
 0x28f   : > { %v1241_v44 = vld [vmem:[#allocation2 + $0x4a] sm:$0xff]  ;;  %v1506_v2 = vpack.c.bf16 %v1629_v21, %v6996_v36  ;;  %v1502_v5 = vld [vmem:[#allocation2 + $0x54] sm:$0x3f]  ;;  %v1892_v7 = vld [vmem:[#allocation2 + $0x5e] sm:$0x3f] }
 0x290   : > { %v1247_v45 = vpack.c.bf16 %v1242_v30, %v1241_v44  ;;  %v6184_v54 = vld [vmem:[#allocation8 + $0x78] sm:$0xff]   ;;  %v1885_v55 = vld [vmem:[#allocation2 + $0x26] sm:$0xff]  ;;  %v1754_v11 = vld [vmem:[#allocation2 + $0x1d] sm:$0xff] }
 0x291   : > { %v1889_v63 = vld [vmem:[#allocation2 + $0x46] sm:$0xff]  ;;  %v1891_v6 = vld [vmem:[#allocation2 + $0x56] sm:$0xff] }
 0x292   : > { %5393 = vmatmul.mubr.msk.bf16.gmra.mrb[12].mxu1 %vm539_vm0, %v896_v37  ;;  %v1627_v37 = vld [vmem:[#allocation2 + $0x34] sm:$0xff]  ;;  %v1897_v9 = vpack.c.bf16 %v1892_v7, %v1891_v6  ;;  %v1755_v13 = vld [vmem:[#allocation2 + $0x25] sm:$0xff] }
 0x293   : > { %5441 = vmatmul.mubr.msk.bf16.gmra.mrb[16].mxu0 %vm539_vm0, %v1116_v38  ;;  %5396 = vmatprep.mubr.msk.bf16.mxu1 %vm6510_vm4, %v6508_v0  ;;  %v1635_v38 = vpack.c.bf16 %v6996_v36, %v1627_v37  ;;  %v1505_v61 = vpack.c.bf16 %v1627_v37, %v6980_v34  ;;  %v1756_v14 = vld [vmem:[#allocation2 + $0x2d] sm:$0xff] }
 0x294   : > { %5444 = vmatprep.mubr.msk.bf16.mxu0 %vm6510_vm4, %v6508_v0 }
 0x29a   : > { %5397 = vmatmul.mubr.msk.bf16.gmra.mrb[16].mxu1 %vm539_vm0, %v897_v42 }
 0x29b   : > { %5445 = vmatmul.mubr.msk.bf16.gmra.mrb[20].mxu0 %vm539_vm0, %v1117_v43  ;;  %5404 = vmatprep.mubr.msk.bf16.mxu1 %vm6510_vm4, %v6508_v0 }
 0x29c   : > { %5476 = vmatprep.mubr.msk.bf16.mxu0 %vm6510_vm4, %v6508_v0 }
 0x2a2   : > { %5405 = vmatmul.mubr.msk.bf16.vlgmr.msra.gmra.mrb[20].mxu1 %vm539_vm0, %v874_v48  ;;  %v1884_v48 = vld [vmem:[#allocation2 + $0x1e] sm:$0xff] }
 0x2a3   : > { %5449 = vmatpush3.bf16.msra.mxu1 %v6175_v47  ;;  %5477 = vmatmul.mubr.msk.bf16.vlgmr.msra.gmra.mrb[24].mxu0 %vm539_vm0, %v1373_v51  ;;  %v1883_v47 = vld [vmem:[#allocation2 + $0x16] sm:$0xff]  ;;  %v6183_v51 = vld [vmem:[#allocation8 + $0x70] sm:$0xff]  }
 0x2a4   : > { %5408 = vmatprep.mubr.msk.bf16.mxu1 %vm6510_vm4, %v6508_v0  ;;  %5480 = vmatprep.mubr.msk.bf16.mxu0 %vm6510_vm4, %v6508_v0 }
 0x2a5   : > { %5450 = vmatprep.subr.bf16.mxu1 %v6508_v0  ;;  %5521 = vmatpush3.bf16.msra.mxu0 %v6177_v52  ;;  %v1503_v52 = vpack.c.bf16 %v6963_v17, %v1493_v50  ;;  %v1757_v17 = vld [vmem:[#allocation2 + $0x35] sm:$0xff] }
 0x2a6   : > { %5522 = vmatprep.subr.bf16.mxu0 %v6508_v0 }
 0x2a7   : > { %5451 = vmatpush3.bf16.msra.mxu1 %v6176_v53  ;;  %v1893_v53 = vpack.c.bf16 %v1884_v48, %v1883_v47 }
 0x2a8   : > { %5496 = vmatprep.subr.bf16.mxu1 %v6508_v0 }
 0x2a9   : > { %5523 = vmatpush3.bf16.msra.mxu0 %v6178_v56  ;;  %v1886_v56 = vld [vmem:[#allocation2 + $0x2e] sm:$0xff] }
 0x2aa   : > { %5409 = vmatmul.mubr.msk.bf16.gmra.mrb[24].mxu1 %vm539_vm0, %v875_v58  ;;  %5568 = vmatprep.subr.bf16.mxu0 %v6508_v0  ;;  %v1894_v58 = vpack.c.bf16 %v1886_v56, %v1885_v55 }
 0x2ab   : > { %5481 = vmatmul.mubr.msk.bf16.gmra.mrb[28].mxu0 %vm539_vm0, %v1374_v60  ;;  %5412 = vmatprep.mubr.msk.bf16.mxu1 %vm6510_vm4, %v6508_v0  ;;  %v1888_v60 = vld [vmem:[#allocation2 + $0x3e] sm:$0xff] }
 0x2ac   : > { %5484 = vmatprep.mubr.msk.bf16.mxu0 %vm6510_vm4, %v6508_v0  ;;  %v1895_v62 = vpack.c.bf16 %v1888_v60, %v1887_v59 }
 0x2b2   : > { %5413 = vmatmul.mubr.msk.bf16.gmra.mrb[28].mxu1 %vm539_vm0, %v876_v1  ;;  %v1890_v1 = vld [vmem:[#allocation2 + $0x4e] sm:$0xff] }
 0x2b3   : > { %5485 = vmatmul.mubr.msk.bf16.gmra.mrb[32].mxu0 %vm539_vm0, %v1375_v3  ;;  %5416 = vmatprep.mubr.msk.bf16.mxu1 %vm6510_vm4, %v6508_v0  ;;  %v1896_v3 = vpack.c.bf16 %v1890_v1, %v1889_v63  ;;  %v2032_v1 = vld [vmem:[#allocation10 + $0x10] sm:$0xff] }
 0x2b4   : > { %5488 = vmatprep.mubr.msk.bf16.mxu0 %vm6510_vm4, %v6508_v0 }
 0x2ba   : > { %5417 = vmatmul.mubr.msk.bf16.gmra.mrb[32].mxu1 %vm539_vm0, %v877_v8  ;;  %v1507_v8 = vpack.c.bf16 %v1502_v5, %v7008_v23 }
 0x2bb   : > { %5489 = vmatmul.mubr.msk.bf16.gmra.mrb[36].mxu0 %vm539_vm0, %v1376_v10  ;;  %5420 = vmatprep.mubr.msk.bf16.mxu1 %vm6510_vm4, %v6508_v0  ;;  %v1753_v10 = vld [vmem:[#allocation2 + $0x15] sm:$0xff] }
 0x2bc   : > { %5492 = vmatprep.mubr.msk.bf16.mxu0 %vm6510_vm4, %v6508_v0  ;;  %v1763_v12 = vpack.c.bf16 %v1754_v11, %v1753_v10 }
 0x2c2   : > { %5421 = vmatmul.mubr.msk.bf16.gmra.mrb[36].mxu1 %vm539_vm0, %v878_v15  ;;  %v1764_v15 = vpack.c.bf16 %v1756_v14, %v1755_v13 }
 0x2c3   : > { %5493 = vmatmul.mubr.msk.bf16.gmra.mrb[40].mxu0 %vm539_vm0, %v1377_v16  ;;  %5452 = vmatprep.mubr.msk.bf16.mxu1 %vm6510_vm4, %v6508_v0  ;;  %v1758_v16 = vld [vmem:[#allocation2 + $0x3d] sm:$0xff] }
 0x2c4   : > { %5524 = vmatprep.mubr.msk.bf16.mxu0 %vm6510_vm4, %v6508_v0  ;;  %v1765_v18 = vpack.c.bf16 %v1758_v16, %v1757_v17 }
 0x2ca   : > { %5453 = vmatmul.mubr.msk.bf16.vlgmr.msra.gmra.mrb[40].mxu1 %vm539_vm0, %v1243_v22  ;;  %v1760_v22 = vld [vmem:[#allocation2 + $0x4d] sm:$0xff] }
 0x2cb   : > { %5497 = vmatpush3.bf16.msra.mxu1 %v6179_v20  ;;  %5525 = vmatmul.mubr.msk.bf16.vlgmr.msra.gmra.mrb[44].mxu0 %vm539_vm0, %v1633_v28  ;;  %v1759_v20 = vld [vmem:[#allocation2 + $0x45] sm:$0xff] }
 0x2cc   : > { %5456 = vmatprep.mubr.msk.bf16.mxu1 %vm6510_vm4, %v6508_v0  ;;  %5528 = vmatprep.mubr.msk.bf16.mxu0 %vm6510_vm4, %v6508_v0  ;;  %v1766_v28 = vpack.c.bf16 %v1760_v22, %v1759_v20 }
 0x2cd   : > { %5498 = vmatprep.subr.bf16.mxu1 %v6508_v0  ;;  %5569 = vmatpush3.bf16.msra.mxu0 %v6181_v29  ;;  %v1761_v29 = vld [vmem:[#allocation2 + $0x55] sm:$0xff] }
 0x2ce   : > { %5570 = vmatprep.subr.bf16.mxu0 %v6508_v0 }
 0x2cf   : > { %5499 = vmatpush3.bf16.msra.mxu1 %v6180_v32  ;;  %v1762_v32 = vld [vmem:[#allocation2 + $0x5d] sm:$0x3f] }
 0x2d0   : > { %5544 = vmatprep.subr.bf16.mxu1 %v6508_v0 }
 0x2d1   : > { %5571 = vmatpush3.bf16.msra.mxu0 %v6182_v4  ;;  %v1767_v4 = vpack.c.bf16 %v1762_v32, %v1761_v29 }
 0x2d2   : > { %5457 = vmatmul.mubr.msk.bf16.gmra.mrb[44].mxu1 %vm539_vm0, %v1244_v26  ;;  %5646 = vmatprep.subr.bf16.mxu0 %v6508_v0  ;;  %v1636_v26 = vpack.c.bf16 %v7008_v23, %v1629_v21 }
 0x2d3   : > { %5529 = vmatmul.mubr.msk.bf16.gmra.mrb[48].mxu0 %vm539_vm0, %v1634_v35  ;;  %5460 = vmatprep.mubr.msk.bf16.mxu1 %vm6510_vm4, %v6508_v0 }
 0x2d4   : > { %5532 = vmatprep.mubr.msk.bf16.mxu0 %vm6510_vm4, %v6508_v0 }
 0x2da   : > { %5461 = vmatmul.mubr.msk.bf16.gmra.mrb[48].mxu1 %vm539_vm0, %v1245_v27 }
 0x2db   : > { %5533 = vmatmul.mubr.msk.bf16.gmra.mrb[52].mxu0 %vm539_vm0, %v1635_v38  ;;  %5464 = vmatprep.mubr.msk.bf16.mxu1 %vm6510_vm4, %v6508_v0 }
 0x2dc   : > { %5536 = vmatprep.mubr.msk.bf16.mxu0 %vm6510_vm4, %v6508_v0 }
 0x2e2   : > { %v7011_v39 = vpop.f32.mrb[0].mxu1  ;;  %5465 = vmatmul.mubr.msk.bf16.gmra.mrb[52].mxu1 %vm539_vm0, %v1246_v33  ;;  %v1632_v33 = vld [vmem:[#allocation2 + $0x5c] sm:$0x3f] }
 0x2e3   : > { %v7013_v40 = vpop.f32.mrb[4].mxu0  ;;  %5537 = vmatmul.mubr.msk.bf16.gmra.mrb[56].mxu0 %vm539_vm0, %v1636_v26  ;;  %v5382_v24 = vpop.f32.mrb[1].mxu1  ;;  %5468 = vmatprep.mubr.msk.bf16.mxu1 %vm6510_vm4, %v6508_v0  ;;  %v1637_v46 = vpack.c.bf16 %v1632_v33, %v1631_v31  ;;  %v2030_v26 = vld [vmem:[#allocation10] sm:$0xff] }
 0x2e4   : > { %v5430_v25 = vpop.f32.mrb[5].mxu0  ;;  %v7022_v27 = vpop.f32.mrb[2].mxu1  ;;  %5540 = vmatprep.mubr.msk.bf16.mxu0 %vm6510_vm4, %v6508_v0  ;;  %v2031_v24 = vld [vmem:[#allocation10 + $0x8] sm:$0xff] }
 0x2e5   : > { %v7024_v41 = vpop.f32.mrb[6].mxu0  ;;  %v5383_v42 = vpop.f32.mrb[3].mxu1  ;;  %v5990_v25 = vpack.c.bf16 %v2031_v24, %v2030_v26 }
 0x2e6   : > { %v5431_v43 = vpop.f32.mrb[7].mxu0 }
 0x2ea   : > { %5469 = vmatmul.mubr.msk.bf16.gmra.mrb[56].mxu1 %vm539_vm0, %v1247_v45 }
 0x2eb   : > { %5541 = vmatmul.mubr.msk.bf16.gmra.mrb[60].mxu0 %vm539_vm0, %v1637_v46  ;;  %5500 = vmatprep.mubr.msk.bf16.mxu1 %vm6510_vm4, %v6508_v0 }
 0x2ec   : > { %5572 = vmatprep.mubr.msk.bf16.mxu0 %vm6510_vm4, %v6508_v0 }
 0x2f2   : > { %5501 = vmatmul.mubr.msk.bf16.vlgmr.msra.gmra.mrb[60].mxu1 %vm539_vm0, %v1503_v52 }
 0x2f3   : > { %5545 = vmatpush3.bf16.msra.mxu1 %v6183_v51  ;;  %5573 = vmatmul.mubr.msk.bf16.vlgmr.msra.gmra.mrb[64].mxu0 %vm539_vm0, %v1893_v53 }
 0x2f4   : > { %5504 = vmatprep.mubr.msk.bf16.mxu1 %vm6510_vm4, %v6508_v0  ;;  %5576 = vmatprep.mubr.msk.bf16.mxu0 %vm6510_vm4, %v6508_v0 }
 0x2f5   : > { %5546 = vmatprep.subr.bf16.mxu1 %v6508_v0 }
 0x2f7   : > { %5547 = vmatpush3.bf16.msra.mxu1 %v6184_v54 }
 0x2f8   : > { %5991 = vmatprep.subr.bf16.mxu1 %v5990_v25 }
 0x2fa   : > { %5505 = vmatmul.mubr.msk.bf16.gmra.mrb[64].mxu1 %vm539_vm0, %v1504_v57 }
 0x2fb   : > { %5577 = vmatmul.mubr.msk.bf16.gmra.mrb[68].mxu0 %vm539_vm0, %v1894_v58  ;;  %5508 = vmatprep.mubr.msk.bf16.mxu1 %vm6510_vm4, %v6508_v0 }
 0x2fc   : > { %5580 = vmatprep.mubr.msk.bf16.mxu0 %vm6510_vm4, %v6508_v0 }
 0x302   : > { %5509 = vmatmul.mubr.msk.bf16.gmra.mrb[68].mxu1 %vm539_vm0, %v1505_v61 }
 0x303   : > { %5581 = vmatmul.mubr.msk.bf16.gmra.mrb[72].mxu0 %vm539_vm0, %v1895_v62  ;;  %5512 = vmatprep.mubr.msk.bf16.mxu1 %vm6510_vm4, %v6508_v0 }
 0x304   : > { %5584 = vmatprep.mubr.msk.bf16.mxu0 %vm6510_vm4, %v6508_v0 }
 0x30a   : > { %5513 = vmatmul.mubr.msk.bf16.gmra.mrb[72].mxu1 %vm539_vm0, %v1506_v2  ;;  %v2033_v2 = vld [vmem:[#allocation10 + $0x18] sm:$0xff] }
 0x30b   : > { %5585 = vmatmul.mubr.msk.bf16.gmra.mrb[76].mxu0 %vm539_vm0, %v1896_v3  ;;  %5516 = vmatprep.mubr.msk.bf16.mxu1 %vm6510_vm4, %v6508_v0  ;;  %v5994_v3 = vpack.c.bf16 %v2033_v2, %v2032_v1 }
 0x30c   : > { %5588 = vmatprep.mubr.msk.bf16.mxu0 %vm6510_vm4, %v6508_v0 }
 0x312   : > { %5517 = vmatmul.mubr.msk.bf16.gmra.mrb[76].mxu1 %vm539_vm0, %v1507_v8 }
 0x313   : > { %5589 = vmatmul.mubr.msk.bf16.gmra.mrb[80].mxu0 %vm539_vm0, %v1897_v9  ;;  %5548 = vmatprep.mubr.msk.bf16.mxu1 %vm6510_vm4, %v6508_v0 }
 0x314   : > { %5650 = vmatprep.mubr.msk.bf16.mxu0 %vm6510_vm4, %v6508_v0 }
 0x31a   : > { %5549 = vmatmul.mubr.msk.bf16.vlgmr.msra.gmra.mrb[80].mxu1 %vm539_vm0, %v1763_v12 }
 0x31b   : > { %5552 = vmatprep.mubr.msk.bf16.mxu1 %vm6510_vm4, %v6508_v0  ;;  %5993 = vmatpush3.bf16.msra.mxu1 %v5990_v25 }
 0x31c   : > { %5995 = vmatprep.subr.bf16.mxu1 %v5994_v3 }
 0x31f   : > { %5997 = vmatpush3.bf16.msra.mxu1 %v5994_v3 }
 0x322   : > { %5553 = vmatmul.mubr.msk.bf16.gmra.mrb[84].mxu1 %vm539_vm0, %v1764_v15 }
 0x323   : > { %5556 = vmatprep.mubr.msk.bf16.mxu1 %vm6510_vm4, %v6508_v0 }
 0x32a   : > { %5557 = vmatmul.mubr.msk.bf16.gmra.mrb[88].mxu1 %vm539_vm0, %v1765_v18 }
 0x32b   : > { %5560 = vmatprep.mubr.msk.bf16.mxu1 %vm6510_vm4, %v6508_v0 }
 0x332   : > { %5561 = vmatmul.mubr.msk.bf16.gmra.mrb[92].mxu1 %vm539_vm0, %v1766_v28 }
 0x333   : > { %5564 = vmatprep.mubr.msk.bf16.mxu1 %vm6510_vm4, %v6508_v0 }
 0x33a   : > { %5565 = vmatmul.mubr.msk.bf16.gmra.mrb[96].mxu1 %vm539_vm0, %v1767_v4 }
 0x355   : > { %v972_v19 = vpop.f32.mrb[4].mxu1 }
 0x356   : > { %v1192_v34 = vpop.f32.mrb[8].mxu0  ;;  %v5386_v35 = vpop.f32.mrb[5].mxu1 }
 0x357   : > { %v5434_v36 = vpop.f32.mrb[9].mxu0  ;;  %v975_v37 = vpop.f32.mrb[6].mxu1 }
 0x358   : > { %v1195_v38 = vpop.f32.mrb[10].mxu0  ;;  %v5387_v21 = vpop.f32.mrb[7].mxu1 }
 0x359   : > { %v5435_v23 = vpop.f32.mrb[11].mxu0 }
 0x35d   : > { %v980_v42 = vpop.f32.mrb[8].mxu1 }
 0x35e   : > { %v1200_v43 = vpop.f32.mrb[12].mxu0  ;;  %v5390_v44 = vpop.f32.mrb[9].mxu1 }
 0x35f   : > { %v5438_v30 = vpop.f32.mrb[13].mxu0  ;;  %v983_v31 = vpop.f32.mrb[10].mxu1 }
 0x360   : > { %v1203_v33 = vpop.f32.mrb[14].mxu0  ;;  %v5391_v45 = vpop.f32.mrb[11].mxu1 }
 0x361   : > { %v5439_v46 = vpop.f32.mrb[15].mxu0 }
 0x365   : > { %v988_v47 = vpop.f32.mrb[12].mxu1 }
 0x366   : > { %v7084_v48 = vpop.f32.mrb[16].mxu0  ;;  %v5394_v50 = vpop.f32.mrb[13].mxu1 }
 0x367   : > { %v5442_v51 = vpop.f32.mrb[17].mxu0  ;;  %v991_v52 = vpop.f32.mrb[14].mxu1 }
 0x368   : > { %v7086_v53 = vpop.f32.mrb[18].mxu0  ;;  %v5395_v54 = vpop.f32.mrb[15].mxu1 }
 0x369   : > { %v5443_v55 = vpop.f32.mrb[19].mxu0 }
 0x36d   : > { %v996_v56 = vpop.f32.mrb[16].mxu1 }
 0x36e   : > { %v7088_v57 = vpop.f32.mrb[20].mxu0  ;;  %v5398_v58 = vpop.f32.mrb[17].mxu1 }
 0x36f   : > { %v5446_v59 = vpop.f32.mrb[21].mxu0  ;;  %v7090_v60 = vpop.f32.mrb[18].mxu1 }
 0x370   : > { %v7092_v61 = vpop.f32.mrb[22].mxu0  ;;  %v5399_v62 = vpop.f32.mrb[19].mxu1 }
 0x371   : > { %v5447_v63 = vpop.f32.mrb[23].mxu0 }
 0x375   : > { %v1064_v5 = vpop.f32.mrb[20].mxu1 }
 0x376   : > { %v1065_v6 = vadd.f32 %v1064_v5, %v7011_v39  ;;  %v7095_v7 = vpop.f32.mrb[24].mxu0  ;;  %v5406_v8 = vpop.f32.mrb[21].mxu1 }
 0x377   : > { %v5478_v9 = vpop.f32.mrb[25].mxu0  ;;  %v1067_v10 = vpop.f32.mrb[22].mxu1 }
 0x378   : > { %v1068_v11 = vadd.f32 %v1067_v10, %v7022_v27  ;;  %v7098_v12 = vpop.f32.mrb[26].mxu0  ;;  %v5407_v13 = vpop.f32.mrb[23].mxu1  ;;  %v1223_v14 = vadd.f32 %v7013_v40, %v1065_v6 }
 0x379   : > { %v5479_v15 = vpop.f32.mrb[27].mxu0 }
 0x37a   : > { %v1224_v16 = vadd.f32 %v7024_v41, %v1068_v11 }
 0x37d   : > { %v1072_v17 = vpop.f32.mrb[24].mxu1 }
 0x37e   : > { %v1073_v18 = vadd.f32 %v1072_v17, %v972_v19  ;;  %v7102_v20 = vpop.f32.mrb[28].mxu0  ;;  %v5410_v39 = vpop.f32.mrb[25].mxu1 }
 0x37f   : > { %v5482_v22 = vpop.f32.mrb[29].mxu0  ;;  %v1075_v28 = vpop.f32.mrb[26].mxu1 }
 0x380   : > { %v1076_v29 = vadd.f32 %v1075_v28, %v975_v37  ;;  %v7104_v32 = vpop.f32.mrb[30].mxu0  ;;  %v5411_v4 = vpop.f32.mrb[27].mxu1  ;;  %v1225_v27 = vadd.f32 %v1192_v34, %v1073_v18 }
 0x381   : > { %v5483_v35 = vpop.f32.mrb[31].mxu0 }
 0x382   : > { %v1226_v36 = vadd.f32 %v1195_v38, %v1076_v29 }
 0x385   : > { %v1080_v21 = vpop.f32.mrb[28].mxu1 }
 0x386   : > { %v1081_v23 = vadd.f32 %v1080_v21, %v980_v42  ;;  %v7106_v40 = vpop.f32.mrb[32].mxu0  ;;  %v5414_v26 = vpop.f32.mrb[29].mxu1 }
 0x387   : > { %v5486_v41 = vpop.f32.mrb[33].mxu0  ;;  %v1083_v24 = vpop.f32.mrb[30].mxu1 }
 0x388   : > { %v1084_v19 = vadd.f32 %v1083_v24, %v983_v31  ;;  %v7108_v25 = vpop.f32.mrb[34].mxu0  ;;  %v5415_v44 = vpop.f32.mrb[31].mxu1  ;;  %v1227_v30 = vadd.f32 %v1200_v43, %v1081_v23 }
 0x389   : > { %v5487_v45 = vpop.f32.mrb[35].mxu0 }
 0x38a   : > { %v1228_v37 = vadd.f32 %v1203_v33, %v1084_v19 }
 0x38d   : > { %v1088_v46 = vpop.f32.mrb[32].mxu1 }
 0x38e   : > { %v1089_v50 = vadd.f32 %v1088_v46, %v988_v47  ;;  %v7110_v51 = vpop.f32.mrb[36].mxu0  ;;  %v5418_v34 = vpop.f32.mrb[33].mxu1 }
 0x38f   : > { %v5490_v38 = vpop.f32.mrb[37].mxu0  ;;  %v1091_v54 = vpop.f32.mrb[34].mxu1 }
 0x390   : > { %v1092_v42 = vadd.f32 %v1091_v54, %v991_v52  ;;  %v7112_v55 = vpop.f32.mrb[38].mxu0  ;;  %v5419_v58 = vpop.f32.mrb[35].mxu1  ;;  %v1229_v59 = vadd.f32 %v7084_v48, %v1089_v50 }
 0x391   : > { %v5491_v31 = vpop.f32.mrb[39].mxu0 }
 0x392   : > { %v1230_v62 = vadd.f32 %v7086_v53, %v1092_v42 }
 0x395   : > { %v1096_v63 = vpop.f32.mrb[36].mxu1 }
 0x396   : > { %v1097_v43 = vadd.f32 %v1096_v63, %v996_v56  ;;  %v7116_v1 = vpop.f32.mrb[40].mxu0  ;;  %v5422_v33 = vpop.f32.mrb[37].mxu1 }
 0x397   : > { %v5494_v47 = vpop.f32.mrb[41].mxu0  ;;  %v1099_v2 = vpop.f32.mrb[38].mxu1 }
 0x398   : > { %v1100_v3 = vadd.f32 %v1099_v2, %v7090_v60  ;;  %v7119_v5 = vpop.f32.mrb[42].mxu0  ;;  %v5423_v52 = vpop.f32.mrb[39].mxu1  ;;  %v1231_v6 = vadd.f32 %v7088_v57, %v1097_v43 }
 0x399   : > { %v5495_v8 = vpop.f32.mrb[43].mxu0 }
 0x39a   : > { %v1232_v48 = vadd.f32 %v7092_v61, %v1100_v3 }
 0x39d   : > { %v1314_v9 = vpop.f32.mrb[40].mxu1 }
 0x39e   : > { %v1353_v10 = vadd.f32 %v1314_v9, %v1223_v14  ;;  %v7123_v53 = vpop.f32.mrb[44].mxu0  ;;  %v5454_v56 = vpop.f32.mrb[41].mxu1 }
 0x39f   : > { %v5526_v11 = vpop.f32.mrb[45].mxu0  ;;  %v1317_v13 = vpop.f32.mrb[42].mxu1 }
 0x3a0   : > { %v1354_v15 = vadd.f32 %v1317_v13, %v1224_v16  ;;  %v7125_v17 = vpop.f32.mrb[46].mxu0  ;;  %v5455_v18 = vpop.f32.mrb[43].mxu1  ;;  %v1483_v60 = vadd.f32 %v7095_v7, %v1353_v10 }
 0x3a1   : > { %v5527_v39 = vpop.f32.mrb[47].mxu0 }
 0x3a2   : > { %v1484_v22 = vadd.f32 %v7098_v12, %v1354_v15 }
 0x3a5   : > { %v1322_v57 = vpop.f32.mrb[44].mxu1 }
 0x3a6   : > { %v1355_v28 = vadd.f32 %v1322_v57, %v1225_v27  ;;  %v7129_v29 = vpop.f32.mrb[48].mxu0  ;;  %v5458_v61 = vpop.f32.mrb[45].mxu1 }
 0x3a7   : > { %v5530_v14 = vpop.f32.mrb[49].mxu0  ;;  %v1325_v4 = vpop.f32.mrb[46].mxu1 }
 0x3a8   : > { %v1356_v35 = vadd.f32 %v1325_v4, %v1226_v36  ;;  %v7131_v21 = vpop.f32.mrb[50].mxu0  ;;  %v5459_v23 = vpop.f32.mrb[47].mxu1  ;;  %v1485_v16 = vadd.f32 %v7102_v20, %v1355_v28 }
 0x3a9   : > { %v5531_v26 = vpop.f32.mrb[51].mxu0 }
 0x3aa   : > { %v1486_v41 = vadd.f32 %v7104_v32, %v1356_v35 }
 0x3ad   : > { %v1330_v7 = vpop.f32.mrb[48].mxu1 }
 0x3ae   : > { %v1357_v24 = vadd.f32 %v1330_v7, %v1227_v30  ;;  %v7135_v19 = vpop.f32.mrb[52].mxu0  ;;  %v5462_v12 = vpop.f32.mrb[49].mxu1 }
 0x3af   : > { %v5534_v27 = vpop.f32.mrb[53].mxu0  ;;  %v1333_v44 = vpop.f32.mrb[50].mxu1 }
 0x3b0   : > { %v1358_v45 = vadd.f32 %v1333_v44, %v1228_v37  ;;  %v7137_v46 = vpop.f32.mrb[54].mxu0  ;;  %v5463_v50 = vpop.f32.mrb[51].mxu1  ;;  %v1487_v36 = vadd.f32 %v7106_v40, %v1357_v24 }
 0x3b1   : > { %v5535_v34 = vpop.f32.mrb[55].mxu0 }
 0x3b2   : > { %v1488_v38 = vadd.f32 %v7108_v25, %v1358_v45 }
 0x3b5   : > { %v1338_v20 = vpop.f32.mrb[52].mxu1 }
 0x3b6   : > { %v1359_v54 = vadd.f32 %v1338_v20, %v1229_v59  ;;  %v7141_v42 = vpop.f32.mrb[56].mxu0  ;;  %v5466_v32 = vpop.f32.mrb[53].mxu1 }
 0x3b7   : > { %v5538_v30 = vpop.f32.mrb[57].mxu0  ;;  %v1341_v58 = vpop.f32.mrb[54].mxu1 }
 0x3b8   : > { %v1360_v31 = vadd.f32 %v1341_v58, %v1230_v62  ;;  %v7143_v63 = vpop.f32.mrb[58].mxu0  ;;  %v5467_v43 = vpop.f32.mrb[55].mxu1  ;;  %v1489_v37 = vadd.f32 %v7110_v51, %v1359_v54 }
 0x3b9   : > { %v5539_v33 = vpop.f32.mrb[59].mxu0 }
 0x3ba   : > { %v1490_v47 = vadd.f32 %v7112_v55, %v1360_v31 }
 0x3bd   : > { %v1346_v40 = vpop.f32.mrb[56].mxu1 }
 0x3be   : > { %v1361_v2 = vadd.f32 %v1346_v40, %v1231_v6  ;;  %v7147_v3 = vpop.f32.mrb[60].mxu0  ;;  %v5470_v25 = vpop.f32.mrb[57].mxu1 }
 0x3bf   : > { %v5542_v59 = vpop.f32.mrb[61].mxu0  ;;  %v1349_v52 = vpop.f32.mrb[58].mxu1 }
 0x3c0   : > { %v1362_v8 = vadd.f32 %v1349_v52, %v1232_v48  ;;  %v7149_v9 = vpop.f32.mrb[62].mxu0  ;;  %v5471_v10 = vpop.f32.mrb[59].mxu1  ;;  %v1491_v62 = vadd.f32 %v7116_v1, %v1361_v2 }
 0x3c1   : > { %v5543_v56 = vpop.f32.mrb[63].mxu0 }
 0x3c2   : > { %v1492_v11 = vadd.f32 %v7119_v5, %v1362_v8 }
 0x3c5   : > { %v1574_v51 = vpop.f32.mrb[60].mxu1 }
 0x3c6   : > { %v1613_v13 = vadd.f32 %v1574_v51, %v1483_v60  ;;  %v7153_v15 = vpop.f32.mrb[64].mxu0  ;;  %v5502_v55 = vpop.f32.mrb[61].mxu1 }
 0x3c7   : > { %v5574_v6 = vpop.f32.mrb[65].mxu0  ;;  %v1577_v18 = vpop.f32.mrb[62].mxu1 }
 0x3c8   : > { %v1614_v39 = vadd.f32 %v1577_v18, %v1484_v22  ;;  %v1967_v57 = vpop.f32.mrb[66].mxu0  ;;  %v5503_v28 = vpop.f32.mrb[63].mxu1  ;;  %v1743_v48 = vadd.f32 %v7123_v53, %v1613_v13 }
 0x3c9   : > { %v5575_v61 = vpop.f32.mrb[67].mxu0 }
 0x3ca   : > { %v1744_v14 = vadd.f32 %v7125_v17, %v1614_v39 }
 0x3cd   : > { %v1582_v4 = vpop.f32.mrb[64].mxu1 }
 0x3ce   : > { %v1615_v1 = vadd.f32 %v1582_v4, %v1485_v16  ;;  %v7157_v35 = vpop.f32.mrb[68].mxu0  ;;  %v5506_v5 = vpop.f32.mrb[65].mxu1 }
 0x3cf   : > { %v5578_v23 = vpop.f32.mrb[69].mxu0  ;;  %v1585_v60 = vpop.f32.mrb[66].mxu1 }
 0x3d0   : > { %v1616_v26 = vadd.f32 %v1585_v60, %v1486_v41  ;;  %v1975_v7 = vpop.f32.mrb[70].mxu0  ;;  %v5507_v24 = vpop.f32.mrb[67].mxu1  ;;  %v1745_v12 = vadd.f32 %v7129_v29, %v1615_v1 }
 0x3d1   : > { %v5579_v22 = vpop.f32.mrb[71].mxu0 }
 0x3d2   : > { %v1746_v27 = vadd.f32 %v7131_v21, %v1616_v26 }
 0x3d5   : > { %v1590_v44 = vpop.f32.mrb[68].mxu1 }
 0x3d6   : > { %v1617_v53 = vadd.f32 %v1590_v44, %v1487_v36  ;;  %v7161_v45 = vpop.f32.mrb[72].mxu0  ;;  %v5510_v17 = vpop.f32.mrb[69].mxu1 }
 0x3d7   : > { %v5582_v50 = vpop.f32.mrb[73].mxu0  ;;  %v1593_v16 = vpop.f32.mrb[70].mxu1 }
 0x3d8   : > { %v1618_v34 = vadd.f32 %v1593_v16, %v1488_v38  ;;  %v1983_v20 = vpop.f32.mrb[74].mxu0  ;;  %v5511_v54 = vpop.f32.mrb[71].mxu1  ;;  %v1747_v32 = vadd.f32 %v7135_v19, %v1617_v53 }
 0x3d9   : > { %v5583_v41 = vpop.f32.mrb[75].mxu0 }
 0x3da   : > { %v1748_v30 = vadd.f32 %v7137_v46, %v1618_v34 }
 0x3dd   : > { %v1598_v58 = vpop.f32.mrb[72].mxu1 }
 0x3de   : > { %v1619_v29 = vadd.f32 %v1598_v58, %v1489_v37  ;;  %v7165_v31 = vpop.f32.mrb[76].mxu0  ;;  %v5514_v21 = vpop.f32.mrb[73].mxu1 }
 0x3df   : > { %v5586_v43 = vpop.f32.mrb[77].mxu0  ;;  %v1601_v36 = vpop.f32.mrb[74].mxu1 }
 0x3e0   : > { %v1620_v33 = vadd.f32 %v1601_v36, %v1490_v47  ;;  %v1991_v40 = vpop.f32.mrb[78].mxu0  ;;  %v5515_v2 = vpop.f32.mrb[75].mxu1  ;;  %v1749_v25 = vadd.f32 %v7141_v42, %v1619_v29 }
 0x3e1   : > { %v5587_v38 = vpop.f32.mrb[79].mxu0 }
 0x3e2   : > { %v1750_v59 = vadd.f32 %v7143_v63, %v1620_v33  ;;  %v4856_v63 = vld [vmem:[%s7903_s4] ss:$0 sm:$0xff] }
 0x3e5   : > { %v1606_v52 = vpop.f32.mrb[76].mxu1 }
 0x3e6   : > { %v1621_v19 = vadd.f32 %v1606_v52, %v1491_v62  ;;  %v7169_v8 = vpop.f32.mrb[80].mxu0  ;;  %v5518_v46 = vpop.f32.mrb[77].mxu1 }
 0x3e7   : > { %v5590_v10 = vpop.f32.mrb[81].mxu0  ;;  %v1609_v37 = vpop.f32.mrb[78].mxu1 }
 0x3e8   : > { %v1622_v56 = vadd.f32 %v1609_v37, %v1492_v11  ;;  %v1999_v51 = vpop.f32.mrb[82].mxu0  ;;  %v5519_v13 = vpop.f32.mrb[79].mxu1  ;;  %v1751_v55 = vadd.f32 %v7147_v3, %v1621_v19 }
 0x3e9   : > { %v5591_v47 = vpop.f32.mrb[83].mxu0 }
 0x3ea   : > { %v1752_v6 = vadd.f32 %v7149_v9, %v1622_v56 }
 0x3ed   : > { %v1834_v18 = vpop.f32.mrb[80].mxu1 }
 0x3ee   : > { %v1873_v42 = vadd.f32 %v1834_v18, %v1743_v48  ;;  %v5550_v39 = vpop.f32.mrb[81].mxu1 }
 0x3ef   : > { %v1837_v62 = vpop.f32.mrb[82].mxu1 }
 0x3f0   : > { %v2003_v28 = vadd.f32 %v7153_v15, %v1873_v42  ;;  %v1874_v61 = vadd.f32 %v1837_v62, %v1744_v14  ;;  %v5551_v4 = vpop.f32.mrb[83].mxu1 }
 0x3f2   : > { %v2020_v11 = vadd.f32 %v4856_v63, %v2003_v28  ;;  %v2004_v1 = vadd.f32 %v1967_v57, %v1874_v61 }
 0x3f4   : > { %v2021_v5 = vadd.f32 %v4856_v63, %v2004_v1  ;;  %5600 = vmatprep.mubr.msk.f32.mxu1 %vm539_vm0, %v2020_v11 }
 0x3f5   : > { %v1842_v3 = vpop.f32.mrb[84].mxu1 }
 0x3f6   : > { %v1875_v23 = vadd.f32 %v1842_v3, %v1745_v12  ;;  %v5554_v9 = vpop.f32.mrb[85].mxu1  ;;  %5601 = vmatmul.mubr.msk.f32.vlgmr.msra.gmra.mrb[100].mxu1 %vm539_vm0, %v2021_v5 }
 0x3f7   : > { %v1845_v48 = vpop.f32.mrb[86].mxu1 }
 0x3f8   : > { %v2005_v60 = vadd.f32 %v7157_v35, %v1875_v23  ;;  %v1876_v26 = vadd.f32 %v1845_v48, %v1746_v27  ;;  %v5555_v24 = vpop.f32.mrb[87].mxu1 }
 0x3fa   : > { %v2022_v22 = vadd.f32 %v4856_v63, %v2005_v60  ;;  %v2006_v44 = vadd.f32 %v1975_v7, %v1876_v26 }
 0x3fc   : > { %v2023_v15 = vadd.f32 %v4856_v63, %v2006_v44  ;;  %5603 = vmatprep.mubr.msk.f32.mxu1 %vm539_vm0, %v2022_v22 }
 0x3fd   : > { %v1850_v14 = vpop.f32.mrb[88].mxu1 }
 0x3fe   : > { %v1877_v57 = vadd.f32 %v1850_v14, %v1747_v32  ;;  %v5558_v53 = vpop.f32.mrb[89].mxu1  ;;  %5604 = vmatmul.mubr.msk.f32.gmra.mrb[102].mxu1 %vm539_vm0, %v2023_v15 }
 0x3ff   : > { %v1853_v17 = vpop.f32.mrb[90].mxu1 }
 0x400   : > { %v2007_v12 = vadd.f32 %v7161_v45, %v1877_v57  ;;  %v1878_v50 = vadd.f32 %v1853_v17, %v1748_v30  ;;  %v5559_v16 = vpop.f32.mrb[91].mxu1 }
 0x402   : > { %v2024_v34 = vadd.f32 %v4856_v63, %v2007_v12  ;;  %v2008_v54 = vadd.f32 %v1983_v20, %v1878_v50 }
 0x404   : > { %v2025_v35 = vadd.f32 %v4856_v63, %v2008_v54  ;;  %5606 = vmatprep.mubr.msk.f32.mxu1 %vm539_vm0, %v2024_v34 }
 0x405   : > { %v1858_v27 = vpop.f32.mrb[92].mxu1 }
 0x406   : > { %v1879_v7 = vadd.f32 %v1858_v27, %v1749_v25  ;;  %v5562_v41 = vpop.f32.mrb[93].mxu1  ;;  %5607 = vmatmul.mubr.msk.f32.gmra.mrb[104].mxu1 %vm539_vm0, %v2025_v35  ;;  %v7217_v35 = vand.u32 127, %v623_v49 }
 0x407   : > { %v1861_v58 = vpop.f32.mrb[94].mxu1 }
 0x408   : > { %v2009_v32 = vadd.f32 %v7165_v31, %v1879_v7  ;;  %v1880_v29 = vadd.f32 %v1861_v58, %v1750_v59  ;;  %v5563_v21 = vpop.f32.mrb[95].mxu1  ;;  %v4867_v59 = vld [vmem:[%s7906_s7] ss:$0 sm:$0xff] }
 0x40a   : > { %v2026_v43 = vadd.f32 %v4856_v63, %v2009_v32  ;;  %v2010_v36 = vadd.f32 %v1991_v40, %v1880_v29 }
 0x40c   : > { %v2027_v45 = vadd.f32 %v4856_v63, %v2010_v36  ;;  %5609 = vmatprep.mubr.msk.f32.mxu1 %vm539_vm0, %v2026_v43 }
 0x40d   : > { %v1866_v30 = vpop.f32.mrb[96].mxu1 }
 0x40e   : > { %v1881_v20 = vadd.f32 %v1866_v30, %v1751_v55  ;;  %v5566_v33 = vpop.f32.mrb[97].mxu1  ;;  %5610 = vmatmul.mubr.msk.f32.gmra.mrb[106].mxu1 %vm539_vm0, %v2027_v45 }
 0x40f   : > { %v1869_v2 = vpop.f32.mrb[98].mxu1 }
 0x410   : > { %v2011_v25 = vadd.f32 %v7169_v8, %v1881_v20  ;;  %v1882_v38 = vadd.f32 %v1869_v2, %v1752_v6  ;;  %v5567_v52 = vpop.f32.mrb[99].mxu1 }
 0x412   : > { %v2028_v19 = vadd.f32 %v4856_v63, %v2011_v25  ;;  %v2012_v46 = vadd.f32 %v1999_v51, %v1882_v38 }
 0x414   : > { %v2029_v31 = vadd.f32 %v4856_v63, %v2012_v46  ;;  %5612 = vmatprep.mubr.msk.f32.mxu1 %vm539_vm0, %v2028_v19 }
 0x416   : > { %5613 = vmatmul.mubr.msk.f32.gmra.mrb[108].mxu1 %vm539_vm0, %v2029_v31 }
 0x4c9   : > { %v5602_v40 = vpop.f32.mrb[100].mxu1 }
 0x4ca   : > { %v2181_v10 = vmul.f32 2.0, %v5602_v40  ;;  %v2130_v37 = vpop.f32.mrb[101].mxu1 }
 0x4cb   : > { %v2180_v56 = vmul.f32 2.0, %v2130_v37 }
 0x4cc   : > { %v2197_v13 = vsub.f32 %v4867_v59, %v2181_v10 }
 0x4cd   : > { %v2196_v55 = vsub.f32 %v4867_v59, %v2180_v56 }
 0x4ce   : > { %v2211_v8 = vsel %vm584_vm1, %v2197_v13, inf }
 0x4cf   : > { %2212 = vmin.xlane.f32.xlu0 %v2211_v8  ;;  %v2208_v51 = vsel %vm584_vm1, %v2196_v55, inf }
 0x4d0   : > { %2209 = vmin.xlane.f32.xlu1 %v2208_v51 }
 0x4d1   : > { %v5605_v47 = vpop.f32.mrb[102].mxu1 }
 0x4d2   : > { %v2183_v6 = vmul.f32 2.0, %v5605_v47  ;;  %v2140_v18 = vpop.f32.mrb[103].mxu1 }
 0x4d3   : > { %v2182_v42 = vmul.f32 2.0, %v2140_v18 }
 0x4d4   : > { %v2199_v39 = vsub.f32 %v4867_v59, %v2183_v6 }
 0x4d5   : > { %v2198_v63 = vsub.f32 %v4867_v59, %v2182_v42 }
 0x4d6   : > { %v2217_v62 = vsel %vm584_vm1, %v2199_v39, inf }
 0x4d7   : > { %2218 = vmin.xlane.f32.xlu1 %v2217_v62  ;;  %v2214_v28 = vsel %vm584_vm1, %v2198_v63, inf }
 0x4d8   : > { %2215 = vmin.xlane.f32.xlu0 %v2214_v28 }
 0x4d9   : > { %v5608_v61 = vpop.f32.mrb[104].mxu1 }
 0x4da   : > { %v2185_v4 = vmul.f32 2.0, %v5608_v61  ;;  %v2150_v11 = vpop.f32.mrb[105].mxu1 }
 0x4db   : > { %v2184_v1 = vmul.f32 2.0, %v2150_v11 }
 0x4dc   : > { %v2201_v5 = vsub.f32 %v4867_v59, %v2185_v4 }
 0x4dd   : > { %v2200_v3 = vsub.f32 %v4867_v59, %v2184_v1 }
 0x4de   : > { %v2223_v23 = vsel %vm584_vm1, %v2201_v5, inf }
 0x4df   : > { %2224 = vmin.xlane.f32.xlu1 %v2223_v23  ;;  %v2220_v9 = vsel %vm584_vm1, %v2200_v3, inf }
 0x4e0   : > { %2221 = vmin.xlane.f32.xlu0 %v2220_v9 }
 0x4e1   : > { %v5611_v48 = vpop.f32.mrb[106].mxu1 }
 0x4e2   : > { %v2187_v60 = vmul.f32 2.0, %v5611_v48  ;;  %v2160_v26 = vpop.f32.mrb[107].mxu1 }
 0x4e3   : > { %v2186_v24 = vmul.f32 2.0, %v2160_v26 }
 0x4e4   : > { %v7200_v22 = vsub.f32 %v4867_v59, %v2187_v60 }
 0x4e5   : > { %v7202_v44 = vsub.f32 %v4867_v59, %v2186_v24 }
 0x4e6   : > { %v2229_v15 = vsel %vm584_vm1, %v7200_v22, inf }
 0x4e7   : > { %2230 = vmin.xlane.f32.xlu1 %v2229_v15  ;;  %v2226_v14 = vsel %vm584_vm1, %v7202_v44, inf  ;;  %v2441_v15 = vld [vmem:[%s7904_s5 + $0x10] sm:$0xff] }
 0x4e8   : > { %2227 = vmin.xlane.f32.xlu0 %v2226_v14 }
 0x4e9   : > { %v5614_v57 = vpop.f32.mrb[108].mxu1 }
 0x4ea   : > { %v2189_v53 = vmul.f32 2.0, %v5614_v57  ;;  %v2170_v17 = vpop.f32.mrb[109].mxu1  ;;  %v2442_v57 = vld [vmem:[%s7904_s5 + $0x18] sm:$0xff] }
 0x4eb   : > { %v2188_v12 = vmul.f32 2.0, %v2170_v17 }
 0x4ec   : > { %v7208_v50 = vsub.f32 %v4867_v59, %v2189_v53  ;;  %v6002_v53 = vpack.c.bf16 %v2442_v57, %v2441_v15 }
 0x4ed   : > { %v7210_v16 = vsub.f32 %v4867_v59, %v2188_v12 }
 0x4ee   : > { %v2236_v34 = vsel %vm2235_vm6, %v7208_v50, inf }
 0x4ef   : > { %2237 = vmin.xlane.f32.xlu1 %v2236_v34  ;;  %v2232_v54 = vsel %vm584_vm1, %v7210_v16, inf }
 0x4f0   : > { %2233 = vmin.xlane.f32.xlu0 %v2232_v54 }
 0x55c   : > { %v2213_v27 = vpop.xlane.xlu0 %2212 }
 0x55d   : > { %vm2240_vm7 = vcmp.eq.f32.partialorder %v2197_v13, %v2213_v27  ;;  %v2210_v7 = vpop.xlane.xlu1 %2209 }
 0x55e   : > { %v2250_v41 = vsel %vm2240_vm7, %v7217_v35, 64  ;;  %vm2239_vm8 = vcmp.eq.f32.partialorder %v2196_v55, %v2210_v7 }
 0x55f   : > { %v7221_v58 = vsel %vm584_vm1, %v2250_v41, 2147483647  ;;  %v2249_v32 = vsel %vm2239_vm8, %v7217_v35, 64 }
 0x560   : > { %v7225_v29 = vsel %vm584_vm1, %v2249_v32, 2147483647  ;;  %v2276_v21 = vshra.s32 %v7221_v58, 16  ;;  %v2275_v17 = vand.u32 65535, %v7221_v58 }
 0x561   : > { %v2261_v43 = vshra.s32 %v7225_v29, 16  ;;  %v2260_v12 = vand.u32 65535, %v7225_v29 }
 0x562   : > { %v7229_v49 = vcvt.s32.f32 %v2276_v21 }
 0x563   : > { %v7231_v36 = vcvt.s32.f32 %v2261_v43  ;;  %v2262_v54 = vcvt.s32.f32 %v2260_v12 }
 0x564   : > { %v2219_v45 = vpop.xlane.xlu1 %2218  ;;  %2279 = vmin.xlane.f32.xlu1 %v7229_v49 }
 0x565   : > { %vm2242_vm9 = vcmp.eq.f32.partialorder %v2199_v39, %v2219_v45  ;;  %v2216_v30 = vpop.xlane.xlu0 %2215  ;;  %2264 = vmin.xlane.f32.xlu0 %v7231_v36 }
 0x566   : > { %v2252_v20 = vsel %vm2242_vm9, %v7217_v35, 64  ;;  %vm2241_vm10 = vcmp.eq.f32.partialorder %v2198_v63, %v2216_v30 }
 0x567   : > { %v7237_v33 = vsel %vm584_vm1, %v2252_v20, 2147483647  ;;  %v2251_v2 = vsel %vm2241_vm10, %v7217_v35, 64 }
 0x568   : > { %v7241_v25 = vsel %vm584_vm1, %v2251_v2, 2147483647  ;;  %v2306_v38 = vshra.s32 %v7237_v33, 16  ;;  %v2305_v41 = vand.u32 65535, %v7237_v33 }
 0x569   : > { %v2291_v52 = vshra.s32 %v7241_v25, 16  ;;  %v2290_v58 = vand.u32 65535, %v7241_v25 }
 0x56a   : > { %v7245_v19 = vcvt.s32.f32 %v2306_v38  ;;  %v2307_v29 = vcvt.s32.f32 %v2305_v41 }
 0x56b   : > { %v7247_v46 = vcvt.s32.f32 %v2291_v52  ;;  %v2292_v43 = vcvt.s32.f32 %v2290_v58 }
 0x56c   : > { %v2225_v31 = vpop.xlane.xlu1 %2224  ;;  %2309 = vmin.xlane.f32.xlu1 %v7245_v19 }
 0x56d   : > { %vm2244_vm11 = vcmp.eq.f32.partialorder %v2201_v5, %v2225_v31  ;;  %v2222_v40 = vpop.xlane.xlu0 %2221  ;;  %2294 = vmin.xlane.f32.xlu0 %v7247_v46  ;;  %v2443_v31 = vld [vmem:[%s7904_s5 + $0x20] sm:$0xff] }
 0x56e   : > { %v2254_v59 = vsel %vm2244_vm11, %v7217_v35, 64  ;;  %vm2243_vm12 = vcmp.eq.f32.partialorder %v2200_v3, %v2222_v40  ;;  %v2444_v40 = vld [vmem:[%s7904_s5 + $0x28] sm:$0xff] }
 0x56f   : > { %v7253_v10 = vsel %vm584_vm1, %v2254_v59, 2147483647  ;;  %v2253_v37 = vsel %vm2243_vm12, %v7217_v35, 64  ;;  %v2445_v59 = vld [vmem:[%s7904_s5 + $0x30] sm:$0xff] }
 0x570   : > { %v7257_v56 = vsel %vm584_vm1, %v2253_v37, 2147483647  ;;  %v2336_v13 = vshra.s32 %v7253_v10, 16  ;;  %v2335_v45 = vand.u32 65535, %v7253_v10  ;;  %v6006_v10 = vpack.c.bf16 %v2444_v40, %v2443_v31  ;;  %v2446_v37 = vld [vmem:[%s7904_s5 + $0x38] sm:$0xff] }
 0x571   : > { %v2321_v55 = vshra.s32 %v7257_v56, 16  ;;  %v2320_v30 = vand.u32 65535, %v7257_v56 }
 0x572   : > { %v7261_v8 = vcvt.s32.f32 %v2336_v13  ;;  %v2337_v33 = vcvt.s32.f32 %v2335_v45 }
 0x573   : > { %v7263_v51 = vcvt.s32.f32 %v2321_v55  ;;  %v2322_v25 = vcvt.s32.f32 %v2320_v30  ;;  %v6010_v55 = vpack.c.bf16 %v2446_v37, %v2445_v59 }
 0x574   : > { %v2231_v47 = vpop.xlane.xlu1 %2230  ;;  %2339 = vmin.xlane.f32.xlu1 %v7261_v8 }
 0x575   : > { %vm2246_vm13 = vcmp.eq.f32.partialorder %v7200_v22, %v2231_v47  ;;  %v2228_v6 = vpop.xlane.xlu0 %2227  ;;  %2324 = vmin.xlane.f32.xlu0 %v7263_v51  ;;  %v2439_v22 = vld [vmem:[%s7904_s5] sm:$0xff] }
 0x576   : > { %v2256_v18 = vsel %vm2246_vm13, %v7217_v35, 64  ;;  %vm2245_vm14 = vcmp.eq.f32.partialorder %v7202_v44, %v2228_v6  ;;  %v2440_v44 = vld [vmem:[%s7904_s5 + $0x8] sm:$0xff] }
 0x577   : > { %v7271_v42 = vsel %vm584_vm1, %v2256_v18, 2147483647  ;;  %v2255_v39 = vsel %vm2245_vm14, %v7217_v35, 64  ;;  %v5998_v14 = vpack.c.bf16 %v2440_v44, %v2439_v22 }
 0x578   : > { %v7275_v63 = vsel %vm584_vm1, %v2255_v39, 2147483647  ;;  %v2366_v62 = vshra.s32 %v7271_v42, 16 }
 0x579   : > { %v2351_v28 = vshra.s32 %v7275_v63, 16  ;;  %5999 = vmatprep.subr.bf16.mxu1 %v5998_v14 }
 0x57a   : > { %v7279_v61 = vcvt.s32.f32 %v2366_v62  ;;  %6001 = vmatpush3.bf16.msra.mxu1 %v5998_v14 }
 0x57b   : > { %v7281_v4 = vcvt.s32.f32 %v2351_v28  ;;  %6003 = vmatprep.subr.bf16.mxu1 %v6002_v53 }
 0x57c   : > { %2369 = vmin.xlane.f32.xlu1 %v7279_v61  ;;  %v2238_v11 = vpop.xlane.xlu1 %2237 }
 0x57d   : > { %vm2248_vm15 = vcmp.eq.f32.partialorder %v7208_v50, %v2238_v11  ;;  %2354 = vmin.xlane.f32.xlu0 %v7281_v4  ;;  %v2234_v1 = vpop.xlane.xlu0 %2233  ;;  %v6185_v11 = vld [vmem:[#allocation11 + $0x10] sm:$0xff]  }
 0x57e   : > { %v2258_v5 = vsel %vm2248_vm15, %v7217_v35, 64  ;;  %vm2247_vm2 = vcmp.eq.f32.partialorder %v7210_v16, %v2234_v1  ;;  %6005 = vmatpush3.bf16.msra.mxu1 %v6002_v53  ;;  %v2277_v16 = vcvt.s32.f32 %v2275_v17  ;;  %5647 = vmatpush3.bf16.msra.mxu0 %v6185_v11  ;;  %v6187_v11 = vld [vmem:[#allocation11] sm:$0xff]  }
 0x57f   : > { %v7289_v3 = vsel %vm2235_vm6, %v2258_v5, 2147483647  ;;  %v2257_v23 = vsel %vm2247_vm2, %v7217_v35, 64  ;;  %6007 = vmatprep.subr.bf16.mxu1 %v6006_v10  ;;  %5648 = vmatprep.subr.bf16.mxu0 %v6508_v0 }
 0x580   : > { %v7293_v9 = vsel %vm584_vm1, %v2257_v23, 2147483647  ;;  %v2396_v48 = vshra.s32 %v7289_v3, 16  ;;  %v2395_v18 = vand.u32 65535, %v7289_v3 }
 0x581   : > { %v2381_v60 = vshra.s32 %v7293_v9, 16 }
 0x582   : > { %v7297_v26 = vcvt.s32.f32 %v2396_v48  ;;  %6009 = vmatpush3.bf16.msra.mxu1 %v6006_v10 }
 0x583   : > { %v7299_v24 = vcvt.s32.f32 %v2381_v60  ;;  %6011 = vmatprep.subr.bf16.mxu1 %v6010_v55 }
 0x584   : > { %2399 = vmin.xlane.f32.xlu1 %v7297_v26 }
 0x585   : > { %2384 = vmin.xlane.f32.xlu0 %v7299_v24 }
 0x586   : > { %6013 = vmatpush3.bf16.msra.mxu1 %v6010_v55 }
 0x587   : > { %5662 = vmatprep.subr.bf16.mxu1 %v6508_v0 }
 0x5f1   : > { %v7317_v50 = vpop.xlane.xlu1 %2279 }
 0x5f2   : > { %v7319_v34 = vpop.xlane.xlu0 %2264  ;;  %vm2281_vm5 = vcmp.eq.f32.partialorder %v7229_v49, %v7317_v50  ;;  %v2286_v1 = vcvt.f32.s32 %v7317_v50 }
 0x5f3   : > { %v2282_v27 = vsel %vm2281_vm5, %v2277_v16, inf  ;;  %vm2266_vm6 = vcmp.eq.f32.partialorder %v7231_v36, %v7319_v34  ;;  %v2271_v5 = vcvt.f32.s32 %v7319_v34 }
 0x5f4   : > { %2283 = vmin.xlane.f32.xlu1 %v2282_v27  ;;  %v2267_v7 = vsel %vm2266_vm6, %v2262_v54, inf  ;;  %v2287_v23 = vshll.u32 %v2286_v1, 16 }
 0x5f5   : > { %2268 = vmin.xlane.f32.xlu0 %v2267_v7  ;;  %v2272_v60 = vshll.u32 %v2271_v5, 16 }
 0x5f9   : > { %v7327_v32 = vpop.xlane.xlu1 %2309 }
 0x5fa   : > { %v7329_v21 = vpop.xlane.xlu0 %2294  ;;  %vm2311_vm7 = vcmp.eq.f32.partialorder %v7245_v19, %v7327_v32  ;;  %v2365_v19 = vand.u32 65535, %v7271_v42  ;;  %v2380_v42 = vand.u32 65535, %v7293_v9 }
 0x5fb   : > { %v2312_v49 = vsel %vm2311_vm7, %v2307_v29, inf  ;;  %vm2296_vm8 = vcmp.eq.f32.partialorder %v7247_v46, %v7329_v21  ;;  %v2350_v46 = vand.u32 65535, %v7275_v63  ;;  %v2397_v63 = vcvt.s32.f32 %v2395_v18 }
 0x5fc   : > { %2313 = vmin.xlane.f32.xlu1 %v2312_v49  ;;  %v2297_v36 = vsel %vm2296_vm8, %v2292_v43, inf  ;;  %v2367_v13 = vcvt.s32.f32 %v2365_v19  ;;  %v2382_v28 = vcvt.s32.f32 %v2380_v42  ;;  %v2301_v15 = vcvt.f32.s32 %v7329_v21 }
 0x5fd   : > { %2298 = vmin.xlane.f32.xlu0 %v2297_v36 }
 0x5fe   : > { %v2302_v16 = vshll.u32 %v2301_v15, 16 }
 0x601   : > { %v7337_v20 = vpop.xlane.xlu1 %2339 }
 0x602   : > { %v7339_v2 = vpop.xlane.xlu0 %2324  ;;  %vm2341_vm9 = vcmp.eq.f32.partialorder %v7261_v8, %v7337_v20  ;;  %v2346_v7 = vcvt.f32.s32 %v7337_v20 }
 0x603   : > { %v2342_v38 = vsel %vm2341_vm9, %v2337_v33, inf  ;;  %vm2326_vm10 = vcmp.eq.f32.partialorder %v7263_v51, %v7339_v2  ;;  %v2352_v51 = vcvt.s32.f32 %v2350_v46  ;;  %v2331_v41 = vcvt.f32.s32 %v7339_v2 }
 0x604   : > { %2343 = vmin.xlane.f32.xlu1 %v2342_v38  ;;  %v2327_v52 = vsel %vm2326_vm10, %v2322_v25, inf  ;;  %v2347_v21 = vshll.u32 %v2346_v7, 16 }
 0x605   : > { %2328 = vmin.xlane.f32.xlu0 %v2327_v52  ;;  %v2332_v36 = vshll.u32 %v2331_v41, 16 }
 0x609   : > { %v7359_v56 = vpop.xlane.xlu1 %2369 }
 0x60a   : > { %v7361_v8 = vpop.xlane.xlu0 %2354  ;;  %vm2371_vm11 = vcmp.eq.f32.partialorder %v7279_v61, %v7359_v56  ;;  %v2376_v33 = vcvt.f32.s32 %v7359_v56 }
 0x60b   : > { %v2372_v47 = vsel %vm2371_vm11, %v2367_v13, inf  ;;  %vm2356_vm12 = vcmp.eq.f32.partialorder %v7281_v4, %v7361_v8  ;;  %v2361_v2 = vcvt.f32.s32 %v7361_v8 }
 0x60c   : > { %2373 = vmin.xlane.f32.xlu1 %v2372_v47  ;;  %v2357_v6 = vsel %vm2356_vm12, %v2352_v51, inf  ;;  %v2377_v19 = vshll.u32 %v2376_v33, 16  ;;  %v6193_v33 = vld [vmem:[#allocation11 + $0x40] sm:$0xff]  }
 0x60d   : > { %2358 = vmin.xlane.f32.xlu0 %v2357_v6  ;;  %v2362_v40 = vshll.u32 %v2361_v2, 16 }
 0x611   : > { %v7370_v39 = vpop.xlane.xlu1 %2399 }
 0x612   : > { %v7372_v62 = vpop.xlane.xlu0 %2384  ;;  %vm2401_vm13 = vcmp.eq.f32.partialorder %v7297_v26, %v7370_v39  ;;  %v2406_v56 = vcvt.f32.s32 %v7370_v39 }
 0x613   : > { %v2402_v61 = vsel %vm2401_vm13, %v2397_v63, inf  ;;  %vm2386_vm14 = vcmp.eq.f32.partialorder %v7299_v24, %v7372_v62  ;;  %v2316_v24 = vcvt.f32.s32 %v7327_v32  ;;  %v2391_v13 = vcvt.f32.s32 %v7372_v62 }
 0x614   : > { %2403 = vmin.xlane.f32.xlu1 %v2402_v61  ;;  %v2387_v4 = vsel %vm2386_vm14, %v2382_v28, inf  ;;  %v2407_v47 = vshll.u32 %v2406_v56, 16  ;;  %vm2593_vm13 = vcmask 261122   ;;  %vm2600_vm14 = vcmask 261126  }
 0x615   : > { %2388 = vmin.xlane.f32.xlu0 %v2387_v4  ;;  %v2317_v17 = vshll.u32 %v2316_v24, 16  ;;  %v2392_v42 = vshll.u32 %v2391_v13, 16  ;;  %v6186_v4 = vld [vmem:[#allocation11 + $0x18] sm:$0xff]   ;;  %v6189_v24 = vld [vmem:[#allocation11 + $0x20] sm:$0xff]  }
 0x616   : > { %5649 = vmatpush3.bf16.msra.mxu0 %v6186_v4 }
 0x617   : > { %5678 = vmatprep.subr.bf16.mxu0 %v6508_v0 }
 0x681   : > { %v2284_v3 = vpop.xlane.xlu1 %2283 }
 0x682   : > { %v2285_v9 = vcvt.f32.s32 %v2284_v3  ;;  %v2269_v48 = vpop.xlane.xlu0 %2268 }
 0x683   : > { %v2270_v26 = vcvt.f32.s32 %v2269_v48 }
 0x684   : > { %v2288_v22 = vadd.s32 %v2287_v23, %v2285_v9 }
 0x685   : > { %v2273_v44 = vadd.s32 %v2272_v60, %v2270_v26 }
 0x686   : > { %vm2410_vm15 = vcmp.eq.s32.totalorder %v7217_v35, %v2288_v22 }
 0x687   : > { %vm2409_vm2 = vcmp.eq.s32.totalorder %v7217_v35, %v2273_v44  ;;  %v4869_v57 = vsel %vm2410_vm15, 1.0, %v6508_v0  ;;  %vm2596_vm15 = vcmask 261124  }
 0x688   : > { %v4868_v14 = vsel %vm2409_vm2, 1.0, %v6508_v0  ;;  %vm2602_vm2 = vcmask 259072  }
 0x689   : > { %v2314_v53 = vpop.xlane.xlu1 %2313  ;;  %5631 = vmatprep.mubr.msk.f32.mxu1 %vm584_vm1, %v4868_v14 }
 0x68a   : > { %v2315_v12 = vcvt.f32.s32 %v2314_v53  ;;  %5632 = vmatmul.mubr.msk.f32.vlgmr.msra.gmra.mrb[110].mxu1 %vm584_vm1, %v4869_v57  ;;  %v2299_v50 = vpop.xlane.xlu0 %2298  ;;  %v6191_v57 = vld [vmem:[#allocation11 + $0x30] sm:$0xff]   ;;  %v6190_v53 = vld [vmem:[#allocation11 + $0x28] sm:$0xff]  }
 0x68b   : > { %v2300_v34 = vcvt.f32.s32 %v2299_v50  ;;  %5663 = vmatpush3.bf16.msra.mxu1 %v6187_v11  ;;  %v6200_v11 = vld [vmem:[#allocation11 + $0x78] sm:$0xff]  }
 0x68c   : > { %v2318_v54 = vadd.s32 %v2317_v17, %v2315_v12  ;;  %5664 = vmatprep.subr.bf16.mxu1 %v6508_v0  ;;  %v6192_v17 = vld [vmem:[#allocation11 + $0x38] sm:$0xff]  }
 0x68d   : > { %v2303_v27 = vadd.s32 %v2302_v16, %v2300_v34 }
 0x68e   : > { %vm2412_vm5 = vcmp.eq.s32.totalorder %v7217_v35, %v2318_v54 }
 0x68f   : > { %vm2411_vm6 = vcmp.eq.s32.totalorder %v7217_v35, %v2303_v27  ;;  %v4871_v29 = vsel %vm2412_vm5, 1.0, %v6508_v0 }
 0x690   : > { %v4870_v58 = vsel %vm2411_vm6, 1.0, %v6508_v0 }
 0x691   : > { %v2344_v32 = vpop.xlane.xlu1 %2343  ;;  %5634 = vmatprep.mubr.msk.f32.mxu1 %vm584_vm1, %v4870_v58 }
 0x692   : > { %v2345_v43 = vcvt.f32.s32 %v2344_v32  ;;  %5635 = vmatmul.mubr.msk.f32.gmra.mrb[112].mxu1 %vm584_vm1, %v4871_v29  ;;  %v2329_v49 = vpop.xlane.xlu0 %2328 }
 0x693   : > { %v2330_v45 = vcvt.f32.s32 %v2329_v49 }
 0x694   : > { %v2348_v30 = vadd.s32 %v2347_v21, %v2345_v43 }
 0x695   : > { %v2333_v20 = vadd.s32 %v2332_v36, %v2330_v45 }
 0x696   : > { %vm2414_vm7 = vcmp.eq.s32.totalorder %v7217_v35, %v2348_v30 }
 0x697   : > { %vm2413_vm8 = vcmp.eq.s32.totalorder %v7217_v35, %v2333_v20  ;;  %v4873_v52 = vsel %vm2414_vm7, 1.0, %v6508_v0 }
 0x698   : > { %v4872_v25 = vsel %vm2413_vm8, 1.0, %v6508_v0 }
 0x699   : > { %v2374_v38 = vpop.xlane.xlu1 %2373  ;;  %5637 = vmatprep.mubr.msk.f32.mxu1 %vm584_vm1, %v4872_v25 }
 0x69a   : > { %v2375_v46 = vcvt.f32.s32 %v2374_v38  ;;  %5638 = vmatmul.mubr.msk.f32.gmra.mrb[114].mxu1 %vm584_vm1, %v4873_v52  ;;  %v2359_v31 = vpop.xlane.xlu0 %2358  ;;  %v6195_v38 = vld [vmem:[#allocation11 + $0x50] sm:$0xff]   ;;  %v6194_v52 = vld [vmem:[#allocation11 + $0x48] sm:$0xff]  }
 0x69b   : > { %v2360_v59 = vcvt.f32.s32 %v2359_v31  ;;  %v6196_v31 = vld [vmem:[#allocation11 + $0x58] sm:$0xff]  }
 0x69c   : > { %v2378_v10 = vadd.s32 %v2377_v19, %v2375_v46 }
 0x69d   : > { %v2363_v37 = vadd.s32 %v2362_v40, %v2360_v59 }
 0x69e   : > { %vm2416_vm9 = vcmp.eq.s32.totalorder %v7217_v35, %v2378_v10 }
 0x69f   : > { %vm2415_vm10 = vcmp.eq.s32.totalorder %v7217_v35, %v2363_v37  ;;  %v4875_v51 = vsel %vm2416_vm9, 1.0, %v6508_v0 }
 0x6a0   : > { %v4874_v55 = vsel %vm2415_vm10, 1.0, %v6508_v0 }
 0x6a1   : > { %v2404_v8 = vpop.xlane.xlu1 %2403  ;;  %5640 = vmatprep.mubr.msk.f32.mxu1 %vm584_vm1, %v4874_v55 }
 0x6a2   : > { %v2405_v6 = vcvt.f32.s32 %v2404_v8  ;;  %5641 = vmatmul.mubr.msk.f32.gmra.mrb[116].mxu1 %vm584_vm1, %v4875_v51  ;;  %v2389_v18 = vpop.xlane.xlu0 %2388 }
 0x6a3   : > { %v2390_v39 = vcvt.f32.s32 %v2389_v18 }
 0x6a4   : > { %v2408_v63 = vadd.s32 %v2407_v47, %v2405_v6 }
 0x6a5   : > { %v2393_v28 = vadd.s32 %v2392_v42, %v2390_v39  ;;  %v6197_v42 = vld [vmem:[#allocation11 + $0x60] sm:$0xff]  }
 0x6a6   : > { %vm2418_vm11 = vcmp.eq.s32.totalorder %v7217_v35, %v2408_v63 }
 0x6a7   : > { %vm2417_vm12 = vcmp.eq.s32.totalorder %v7217_v35, %v2393_v28  ;;  %v4877_v61 = vsel %vm2418_vm11, 1.0, %v6508_v0  ;;  %v6188_v35 = vld [vmem:[#allocation11 + $0x8] sm:$0xff]   ;;  %v6199_v28 = vld [vmem:[#allocation11 + $0x70] sm:$0xff]  }
 0x6a8   : > { %v4876_v62 = vsel %vm2417_vm12, 1.0, %v6508_v0  ;;  %5665 = vmatpush3.bf16.msra.mxu1 %v6188_v35 }
 0x6a9   : > { %5643 = vmatprep.mubr.msk.f32.mxu1 %vm584_vm1, %v4876_v62  ;;  %5694 = vmatprep.subr.bf16.mxu1 %v6508_v0  ;;  %v6198_v62 = vld [vmem:[#allocation11 + $0x68] sm:$0xff]  }
 0x6aa   : > { %5644 = vmatmul.mubr.msk.f32.gmra.mrb[118].mxu1 %vm584_vm1, %v4877_v61  ;;  %vm2598_vm1 = vcmask 257024  }
 0x6ab   : > { %5666 = vmatprep.mubr.msk.bf16.mxu1 %vm6510_vm4, %v6508_v0 }
 0x75d   : > { %v5633_v1 = vpop.f32.mrb[110].mxu1 }
 0x75e   : > { %2594 = vst.msk [vmem:[#allocation3 + $0x13] sm:$0xfc] %vm2593_vm13, %v5633_v1  ;;  %v2543_v5 = vpop.f32.mrb[111].mxu1 }
 0x75f   : > { %2592 = vst.msk [vmem:[#allocation3 + $0xb] sm:$0xff] %vm539_vm0, %v2543_v5 }
 0x765   : > { %v5636_v3 = vpop.f32.mrb[112].mxu1 }
 0x766   : > { %2599 = vst.msk [vmem:[#allocation3 + $0x23] sm:$0xf] %vm2598_vm1, %v5636_v3  ;;  %v2553_v23 = vpop.f32.mrb[113].mxu1  ;;  %v2628_v48 = vld [vmem:[#allocation3 + $0x1] ss:$2 sm:$0xff] }
 0x767   : > { %2601 = vst.msk [vmem:[#allocation3 + $0x23] sm:$0xc0] %vm2600_vm14, %v5636_v3  ;;  %v2611_v60 = vld [vmem:[#allocation3] ss:$2 sm:$0xff]  ;;  %v3000_v6 = vld [vmem:[#allocation3 + $0xb] ss:$2 sm:$0xff] }
 0x768   : > { %2595 = vst.msk [vmem:[#allocation3 + $0x1b] sm:$0x3] %vm543_vm3, %v2553_v23  ;;  %v2800_v30 = vld [vmem:[#allocation3 + $0x2] ss:$2 sm:$0xff] }
 0x769   : > { %2597 = vst.msk [vmem:[#allocation3 + $0x1b] sm:$0xf0] %vm2596_vm15, %v2553_v23  ;;  %v2900_v20 = vld [vmem:[#allocation3 + $0xa] ss:$2 sm:$0xff] }
 0x76a   : > { %v3100_v18 = vld [vmem:[#allocation3 + $0xc] ss:$2 sm:$0xff] }
 0x76d   : > { %v5639_v9 = vpop.f32.mrb[114].mxu1 }
 0x76e   : > { %2604 = vst.msk [vmem:[#allocation3 + $0x33] sm:$0xff] %vm539_vm0, %v5639_v9  ;;  %v2563_v26 = vpop.f32.mrb[115].mxu1 }
 0x76f   : > { %v2613_v44 = vld [vmem:[#allocation3 + $0x10] ss:$2 sm:$0xff]  ;;  %2603 = vst.msk [vmem:[#allocation3 + $0x2b] sm:$0x3f] %vm2602_vm2, %v2563_v26 }
 0x770   : > { %v2630_v22 = vld [vmem:[#allocation3 + $0x11] ss:$2 sm:$0xff]  ;;  %v2620_v14 = vpack.c.bf16 %v2613_v44, %v2611_v60  ;;  %v2802_v36 = vld [vmem:[#allocation3 + $0x12] ss:$2 sm:$0xff] }
 0x771   : > { %v2637_v15 = vpack.c.bf16 %v2630_v22, %v2628_v48  ;;  %v2902_v45 = vld [vmem:[#allocation3 + $0x1a] ss:$2 sm:$0xff]  ;;  %v2809_v2 = vpack.c.bf16 %v2802_v36, %v2800_v30  ;;  %v3002_v51 = vld [vmem:[#allocation3 + $0x1b] ss:$2 sm:$0xff] }
 0x772   : > { %5667 = vmatmul.mubr.msk.bf16.vlgmr.msra.gmra.mrb[120].mxu1 %vm539_vm0, %v2620_v14  ;;  %v2909_v25 = vpack.c.bf16 %v2902_v45, %v2900_v20  ;;  %v3102_v47 = vld [vmem:[#allocation3 + $0x1c] ss:$2 sm:$0xff]  ;;  %v3009_v39 = vpack.c.bf16 %v3002_v51, %v3000_v6 }
 0x773   : > { %5651 = vmatmul.mubr.msk.bf16.vlgmr.msra.gmra.mrb[84].mxu0 %vm539_vm0, %v2637_v15  ;;  %5670 = vmatprep.mubr.msk.bf16.mxu1 %vm6510_vm4, %v6508_v0  ;;  %v3109_v63 = vpack.c.bf16 %v3102_v47, %v3100_v18  ;;  %v3200_v44 = vld [vmem:[#allocation3 + $0x14] ss:$2 sm:$0xff] }
 0x774   : > { %5679 = vmatpush3.bf16.msra.mxu0 %v6189_v24  ;;  %5654 = vmatprep.mubr.msk.bf16.mxu0 %vm6510_vm4, %v6508_v0  ;;  %v3300_v24 = vld [vmem:[#allocation3 + $0x15] ss:$2 sm:$0xff] }
 0x775   : > { %5680 = vmatprep.subr.bf16.mxu0 %v6508_v0  ;;  %5695 = vmatpush3.bf16.msra.mxu1 %v6191_v57  ;;  %v5642_v12 = vpop.f32.mrb[116].mxu1  ;;  %v6201_v15 = vld [vmem:[#allocation11 + $0x80] sm:$0xff]   ;;  %v6203_v20 = vld [vmem:[%s7909_s10 + $0x40] sm:$0xff]  }
 0x776   : > { %5696 = vmatprep.subr.bf16.mxu1 %v6508_v0  ;;  %2606 = vst.msk [vmem:[#allocation3 + $0x43] sm:$0x3] %vm543_vm3, %v5642_v12  ;;  %v2573_v50 = vpop.f32.mrb[117].mxu1  ;;  %v2632_v34 = vld [vmem:[#allocation3 + $0x21] ss:$2 sm:$0xff] }
 0x777   : > { %2607 = vst.msk [vmem:[#allocation3 + $0x43] sm:$0xf0] %vm2596_vm15, %v5642_v12  ;;  %v2615_v54 = vld [vmem:[#allocation3 + $0x20] ss:$2 sm:$0xff]  ;;  %v3004_v35 = vld [vmem:[#allocation3 + $0x2b] ss:$2 sm:$0xff] }
 0x778   : > { %5681 = vmatpush3.bf16.msra.mxu0 %v6190_v53  ;;  %2605 = vst.msk [vmem:[#allocation3 + $0x3b] sm:$0xfc] %vm2593_vm13, %v2573_v50  ;;  %v2804_v40 = vld [vmem:[#allocation3 + $0x22] ss:$2 sm:$0xff]  ;;  %v3302_v22 = vld [vmem:[#allocation3 + $0x25] ss:$2 sm:$0xff] }
 0x779   : > { %5710 = vmatprep.subr.bf16.mxu0 %v6508_v0  ;;  %5697 = vmatpush3.bf16.msra.mxu1 %v6192_v17  ;;  %v2904_v59 = vld [vmem:[#allocation3 + $0x2a] ss:$2 sm:$0xff]  ;;  %v3309_v57 = vpack.c.bf16 %v3302_v22, %v3300_v24 }
 0x77a   : > { %5726 = vmatprep.subr.bf16.mxu1 %v6508_v0  ;;  %v3104_v1 = vld [vmem:[#allocation3 + $0x2c] ss:$2 sm:$0xff] }
 0x77b   : > { %v3202_v26 = vld [vmem:[#allocation3 + $0x24] ss:$2 sm:$0xff] }
 0x77c   : > { %v3209_v14 = vpack.c.bf16 %v3202_v26, %v3200_v44  ;;  %v6202_v53 = vld [vmem:[#allocation11 + $0x88] sm:$0xff]  }
 0x77d   : > { %v5645_v16 = vpop.f32.mrb[118].mxu1 }
 0x77e   : > { %2610 = vst.msk [vmem:[#allocation3 + $0x53] sm:$0x3f] %vm2602_vm2, %v5645_v16  ;;  %v2583_v27 = vpop.f32.mrb[119].mxu1 }
 0x77f   : > { %v2634_v7 = vld [vmem:[#allocation3 + $0x31] ss:$2 sm:$0xff]  ;;  %v2617_v41 = vld [vmem:[#allocation3 + $0x30] ss:$2 sm:$0xff]  ;;  %2608 = vst.msk [vmem:[#allocation3 + $0x4b] sm:$0xf] %vm2598_vm1, %v2583_v27 }
 0x780   : > { %2609 = vst.msk [vmem:[#allocation3 + $0x4b] sm:$0xc0] %vm2600_vm14, %v2583_v27  ;;  %v2638_v58 = vpack.c.bf16 %v2634_v7, %v2632_v34  ;;  %v2621_v32 = vpack.c.bf16 %v2617_v41, %v2615_v54  ;;  %v2636_v29 = vld [vmem:[#allocation3 + $0x41] ss:$2 sm:$0x3] }
 0x781   : > { %v2619_v21 = vld [vmem:[#allocation3 + $0x40] ss:$2 sm:$0x3]  ;;  %v2639_v43 = vpack.c.bf16 %v2636_v29, %v2636_v29  ;;  %v3006_v61 = vld [vmem:[#allocation3 + $0x3b] ss:$2 sm:$0xff] }
 0x782   : > { %5655 = vmatmul.mubr.msk.bf16.gmra.mrb[88].mxu0 %vm539_vm0, %v2638_v58  ;;  %5671 = vmatmul.mubr.msk.bf16.gmra.mrb[124].mxu1 %vm539_vm0, %v2621_v32  ;;  %v2622_v49 = vpack.c.bf16 %v2619_v21, %v2619_v21  ;;  %v2806_v19 = vld [vmem:[#allocation3 + $0x32] ss:$2 sm:$0xff]  ;;  %v2808_v56 = vld [vmem:[#allocation3 + $0x42] ss:$2 sm:$0x3]  ;;  %v3010_v5 = vpack.c.bf16 %v3006_v61, %v3004_v35 }
 0x783   : > { %5658 = vmatprep.mubr.msk.bf16.mxu0 %vm6510_vm4, %v6508_v0  ;;  %5674 = vmatprep.mubr.msk.bf16.mxu1 %vm6510_vm4, %v6508_v0  ;;  %v2906_v46 = vld [vmem:[#allocation3 + $0x3a] ss:$2 sm:$0xff]  ;;  %v2810_v10 = vpack.c.bf16 %v2806_v19, %v2804_v40  ;;  %v2811_v55 = vpack.c.bf16 %v2808_v56, %v2808_v56  ;;  %v3304_v16 = vld [vmem:[#allocation3 + $0x35] ss:$2 sm:$0xff] }
 0x784   : > { %v2910_v37 = vpack.c.bf16 %v2906_v46, %v2904_v59  ;;  %v3106_v4 = vld [vmem:[#allocation3 + $0x3c] ss:$2 sm:$0xff]  ;;  %v6209_v19 = vld [vmem:[%s7909_s10 + $0x58] sm:$0xff]  }
 0x785   : > { %v3110_v3 = vpack.c.bf16 %v3106_v4, %v3104_v1  ;;  %v3204_v50 = vld [vmem:[#allocation3 + $0x34] ss:$2 sm:$0xff]  ;;  %v3308_v7 = vld [vmem:[#allocation3 + $0x55] ss:$2 sm:$0x3]  ;;  %v6216_v56 = vld [vmem:[%s7909_s10 + $0x30] sm:$0xff]  }
 0x786   : > { %v2908_v13 = vld [vmem:[#allocation3 + $0x4a] ss:$2 sm:$0x3]  ;;  %v3008_v23 = vld [vmem:[#allocation3 + $0x4b] ss:$2 sm:$0x3]  ;;  %v3311_v58 = vpack.c.bf16 %v3308_v7, %v3308_v7 }
 0x787   : > { %v2911_v8 = vpack.c.bf16 %v2908_v13, %v2908_v13  ;;  %v3108_v9 = vld [vmem:[#allocation3 + $0x4c] ss:$2 sm:$0x3]  ;;  %v3011_v48 = vpack.c.bf16 %v3008_v23, %v3008_v23  ;;  %v3306_v12 = vld [vmem:[#allocation3 + $0x45] ss:$2 sm:$0xff]  ;;  %v6212_v40 = vld [vmem:[%s7909_s10 + $0x20] sm:$0xff]  }
 0x788   : > { %v3111_v60 = vpack.c.bf16 %v3108_v9, %v3108_v9  ;;  %v3206_v17 = vld [vmem:[#allocation3 + $0x44] ss:$2 sm:$0xff]  ;;  %v3310_v54 = vpack.c.bf16 %v3306_v12, %v3304_v16  ;;  %v3208_v27 = vld [vmem:[#allocation3 + $0x54] ss:$2 sm:$0x3] }
 0x789   : > { %v3210_v34 = vpack.c.bf16 %v3206_v17, %v3204_v50  ;;  %v3211_v41 = vpack.c.bf16 %v3208_v27, %v3208_v27  ;;  %v3402_v32 = vld [vmem:[#allocation3 + $0x26] ss:$2 sm:$0xff]  ;;  %v3400_v29 = vld [vmem:[#allocation3 + $0x16] ss:$2 sm:$0xff] }
 0x78a   : > { %5659 = vmatmul.mubr.msk.bf16.gmra.mrb[92].mxu0 %vm539_vm0, %v2639_v43  ;;  %5675 = vmatmul.mubr.msk.bf16.gmra.mrb[128].mxu1 %vm539_vm0, %v2622_v49  ;;  %v3409_v21 = vpack.c.bf16 %v3402_v32, %v3400_v29  ;;  %v3406_v43 = vld [vmem:[#allocation3 + $0x46] ss:$2 sm:$0xff]  ;;  %v3404_v49 = vld [vmem:[#allocation3 + $0x36] ss:$2 sm:$0xff] }
 0x78b   : > { %5682 = vmatprep.mubr.msk.bf16.mxu0 %vm6510_vm4, %v6508_v0  ;;  %5698 = vmatprep.mubr.msk.bf16.mxu1 %vm6510_vm4, %v6508_v0  ;;  %v3410_v36 = vpack.c.bf16 %v3406_v43, %v3404_v49  ;;  %v3408_v45 = vld [vmem:[#allocation3 + $0x56] ss:$2 sm:$0x3]  ;;  %v6213_v59 = vld [vmem:[%s7909_s10 + $0x68] sm:$0xff]  }
 0x78c   : > { %v3411_v30 = vpack.c.bf16 %v3408_v45, %v3408_v45  ;;  %v6210_v46 = vld [vmem:[%s7909_s10 + $0x18] sm:$0xff]  }
 0x78d   : > { %v6217_v13 = vld [vmem:[%s7909_s10 + $0x78] sm:$0xff]  }
 0x792   : > { %5683 = vmatmul.mubr.msk.bf16.vlgmr.msra.gmra.mrb[96].mxu0 %vm539_vm0, %v2809_v2  ;;  %5699 = vmatmul.mubr.msk.bf16.vlgmr.msra.gmra.mrb[132].mxu1 %vm539_vm0, %v2909_v25  ;;  %v6205_v2 = vld [vmem:[%s7909_s10 + $0x48] sm:$0xff]  }
 0x793   : > { %5711 = vmatpush3.bf16.msra.mxu0 %v6193_v33  ;;  %5686 = vmatprep.mubr.msk.bf16.mxu0 %vm6510_vm4, %v6508_v0  ;;  %v6204_v33 = vld [vmem:[%s7909_s10] sm:$0xff]   ;;  %v6206_v25 = vld [vmem:[%s7909_s10 + $0x8] sm:$0xff]  }
 0x794   : > { %5702 = vmatprep.mubr.msk.bf16.mxu1 %vm6510_vm4, %v6508_v0  ;;  %5712 = vmatprep.subr.bf16.mxu0 %v6508_v0 }
 0x795   : > { %5727 = vmatpush3.bf16.msra.mxu1 %v6195_v38  ;;  %v6207_v38 = vld [vmem:[%s7909_s10 + $0x50] sm:$0xff]  }
 0x796   : > { %5728 = vmatprep.subr.bf16.mxu1 %v6508_v0 }
 0x797   : > { %5713 = vmatpush3.bf16.msra.mxu0 %v6194_v52  ;;  %v6208_v52 = vld [vmem:[%s7909_s10 + $0x10] sm:$0xff]  }
 0x798   : > { %5742 = vmatprep.subr.bf16.mxu0 %v6508_v0 }
 0x799   : > { %5729 = vmatpush3.bf16.msra.mxu1 %v6196_v31  ;;  %v6211_v31 = vld [vmem:[%s7909_s10 + $0x60] sm:$0xff]  }
 0x79a   : > { %5687 = vmatmul.mubr.msk.bf16.gmra.mrb[100].mxu0 %vm539_vm0, %v2810_v10  ;;  %5703 = vmatmul.mubr.msk.bf16.gmra.mrb[136].mxu1 %vm539_vm0, %v2910_v37  ;;  %v6214_v10 = vld [vmem:[%s7909_s10 + $0x28] sm:$0xff]   ;;  %v6215_v37 = vld [vmem:[%s7909_s10 + $0x70] sm:$0xff]  }
 0x79b   : > { %5690 = vmatprep.mubr.msk.bf16.mxu0 %vm6510_vm4, %v6508_v0  ;;  %5706 = vmatprep.mubr.msk.bf16.mxu1 %vm6510_vm4, %v6508_v0 }
 0x79c   : > { %5758 = vmatprep.subr.bf16.mxu1 %v6508_v0 }
 0x7a2   : > { %5691 = vmatmul.mubr.msk.bf16.gmra.mrb[104].mxu0 %vm539_vm0, %v2811_v55  ;;  %5707 = vmatmul.mubr.msk.bf16.gmra.mrb[140].mxu1 %vm539_vm0, %v2911_v8  ;;  %v6218_v55 = vld [vmem:[%s7909_s10 + $0x38] sm:$0xff]  }
 0x7a3   : > { %5714 = vmatprep.mubr.msk.bf16.mxu0 %vm6510_vm4, %v6508_v0  ;;  %5730 = vmatprep.mubr.msk.bf16.mxu1 %vm6510_vm4, %v6508_v0 }
 0x7aa   : > { %5715 = vmatmul.mubr.msk.bf16.vlgmr.msra.gmra.mrb[108].mxu0 %vm539_vm0, %v3009_v39  ;;  %5731 = vmatmul.mubr.msk.bf16.vlgmr.msra.gmra.mrb[144].mxu1 %vm539_vm0, %v3109_v63 }
 0x7ab   : > { %5743 = vmatpush3.bf16.msra.mxu0 %v6197_v42  ;;  %5718 = vmatprep.mubr.msk.bf16.mxu0 %vm6510_vm4, %v6508_v0 }
 0x7ac   : > { %5734 = vmatprep.mubr.msk.bf16.mxu1 %vm6510_vm4, %v6508_v0  ;;  %5744 = vmatprep.subr.bf16.mxu0 %v6508_v0 }
 0x7ad   : > { %5759 = vmatpush3.bf16.msra.mxu1 %v6199_v28 }
 0x7ae   : > { %5760 = vmatprep.subr.bf16.mxu1 %v6508_v0 }
 0x7af   : > { %5745 = vmatpush3.bf16.msra.mxu0 %v6198_v62 }
 0x7b0   : > { %5774 = vmatprep.subr.bf16.mxu0 %v6508_v0 }
 0x7b1   : > { %5761 = vmatpush3.bf16.msra.mxu1 %v6200_v11 }
 0x7b2   : > { %5719 = vmatmul.mubr.msk.bf16.gmra.mrb[112].mxu0 %vm539_vm0, %v3010_v5  ;;  %5735 = vmatmul.mubr.msk.bf16.gmra.mrb[148].mxu1 %vm539_vm0, %v3110_v3 }
 0x7b3   : > { %5722 = vmatprep.mubr.msk.bf16.mxu0 %vm6510_vm4, %v6508_v0  ;;  %5738 = vmatprep.mubr.msk.bf16.mxu1 %vm6510_vm4, %v6508_v0 }
 0x7b4   : > { %5790 = vmatprep.subr.bf16.mxu1 %v6508_v0 }
 0x7ba   : > { %5723 = vmatmul.mubr.msk.bf16.gmra.mrb[116].mxu0 %vm539_vm0, %v3011_v48  ;;  %5739 = vmatmul.mubr.msk.bf16.gmra.mrb[152].mxu1 %vm539_vm0, %v3111_v60 }
 0x7bb   : > { %5746 = vmatprep.mubr.msk.bf16.mxu0 %vm6510_vm4, %v6508_v0  ;;  %5762 = vmatprep.mubr.msk.bf16.mxu1 %vm6510_vm4, %v6508_v0 }
 0x7c2   : > { %5747 = vmatmul.mubr.msk.bf16.vlgmr.msra.gmra.mrb[120].mxu0 %vm539_vm0, %v3209_v14  ;;  %5763 = vmatmul.mubr.msk.bf16.vlgmr.msra.gmra.mrb[156].mxu1 %vm539_vm0, %v3309_v57 }
 0x7c3   : > { %5775 = vmatpush3.bf16.msra.mxu0 %v6201_v15  ;;  %5750 = vmatprep.mubr.msk.bf16.mxu0 %vm6510_vm4, %v6508_v0 }
 0x7c4   : > { %5766 = vmatprep.mubr.msk.bf16.mxu1 %vm6510_vm4, %v6508_v0  ;;  %5776 = vmatprep.subr.bf16.mxu0 %v6508_v0 }
 0x7c5   : > { %5791 = vmatpush3.bf16.msra.mxu1 %v6203_v20 }
 0x7c6   : > { %5792 = vmatprep.subr.bf16.mxu1 %v6508_v0 }
 0x7c7   : > { %5777 = vmatpush3.bf16.msra.mxu0 %v6202_v53 }
 0x7c8   : > { %5810 = vmatprep.subr.bf16.mxu0 %v6508_v0 }
 0x7c9   : > { %5793 = vmatpush3.bf16.msra.mxu1 %v6205_v2 }
 0x7ca   : > { %5751 = vmatmul.mubr.msk.bf16.gmra.mrb[124].mxu0 %vm539_vm0, %v3210_v34  ;;  %5767 = vmatmul.mubr.msk.bf16.gmra.mrb[160].mxu1 %vm539_vm0, %v3310_v54 }
 0x7cb   : > { %5754 = vmatprep.mubr.msk.bf16.mxu0 %vm6510_vm4, %v6508_v0  ;;  %5770 = vmatprep.mubr.msk.bf16.mxu1 %vm6510_vm4, %v6508_v0 }
 0x7cc   : > { %5794 = vmatprep.subr.bf16.mxu1 %v6508_v0 }
 0x7cd   : > { %5795 = vmatpush3.bf16.msra.mxu1 %v6207_v38 }
 0x7ce   : > { %5796 = vmatprep.subr.bf16.mxu1 %v6508_v0 }
 0x7d1   : > { %5797 = vmatpush3.bf16.msra.mxu1 %v6209_v19 }
 0x7d2   : > { %5755 = vmatmul.mubr.msk.bf16.gmra.mrb[128].mxu0 %vm539_vm0, %v3211_v41  ;;  %5771 = vmatmul.mubr.msk.bf16.gmra.mrb[164].mxu1 %vm539_vm0, %v3311_v58 }
 0x7d3   : > { %5778 = vmatprep.mubr.msk.bf16.mxu0 %vm6510_vm4, %v6508_v0  ;;  %5806 = vmatprep.mubr.msk.bf16.mxu1 %vm6510_vm4, %v6508_v0 }
 0x7d4   : > { %5798 = vmatprep.subr.bf16.mxu1 %v6508_v0 }
 0x7d5   : > { %5799 = vmatpush3.bf16.msra.mxu1 %v6211_v31 }
 0x7d6   : > { %5800 = vmatprep.subr.bf16.mxu1 %v6508_v0 }
 0x7d9   : > { %5801 = vmatpush3.bf16.msra.mxu1 %v6213_v59 }
 0x7da   : > { %5779 = vmatmul.mubr.msk.bf16.vlgmr.msra.gmra.mrb[132].mxu0 %vm539_vm0, %v3409_v21  ;;  %5802 = vmatprep.subr.bf16.mxu1 %v6508_v0 }
 0x7db   : > { %5782 = vmatprep.mubr.msk.bf16.mxu0 %vm6510_vm4, %v6508_v0  ;;  %5811 = vmatpush3.bf16.msra.mxu0 %v6204_v33 }
 0x7dc   : > { %5812 = vmatprep.subr.bf16.mxu0 %v6508_v0 }
 0x7dd   : > { %5803 = vmatpush3.bf16.msra.mxu1 %v6215_v37 }
 0x7de   : > { %5804 = vmatprep.subr.bf16.mxu1 %v6508_v0 }
 0x7df   : > { %5813 = vmatpush3.bf16.msra.mxu0 %v6206_v25 }
 0x7e0   : > { %5814 = vmatprep.subr.bf16.mxu0 %v6508_v0 }
 0x7e1   : > { %5805 = vmatpush3.bf16.msra.mxu1 %v6217_v13 }
 0x7e2   : > { %5783 = vmatmul.mubr.msk.bf16.gmra.mrb[136].mxu0 %vm539_vm0, %v3410_v36  ;;  %5830 = vmatprep.subr.bf16.mxu1 %v6508_v0 }
 0x7e3   : > { %5786 = vmatprep.mubr.msk.bf16.mxu0 %vm6510_vm4, %v6508_v0  ;;  %5815 = vmatpush3.bf16.msra.mxu0 %v6208_v52 }
 0x7e4   : > { %5816 = vmatprep.subr.bf16.mxu0 %v6508_v0 }
 0x7e7   : > { %5817 = vmatpush3.bf16.msra.mxu0 %v6210_v46 }
 0x7e8   : > { %5818 = vmatprep.subr.bf16.mxu0 %v6508_v0 }
 0x7ea   : > { %5787 = vmatmul.mubr.msk.bf16.gmra.mrb[140].mxu0 %vm539_vm0, %v3411_v30 }
 0x7eb   : > { %5826 = vmatprep.mubr.msk.bf16.mxu0 %vm6510_vm4, %v6508_v0  ;;  %5819 = vmatpush3.bf16.msra.mxu0 %v6212_v40 }
 0x7ec   : > { %5820 = vmatprep.subr.bf16.mxu0 %v6508_v0 }
 0x7ef   : > { %5821 = vmatpush3.bf16.msra.mxu0 %v6214_v10 }
 0x7f0   : > { %5822 = vmatprep.subr.bf16.mxu0 %v6508_v0 }
 0x7f3   : > { %5823 = vmatpush3.bf16.msra.mxu0 %v6216_v56 }
 0x7f4   : > { %5824 = vmatprep.subr.bf16.mxu0 %v6508_v0 }
 0x7f7   : > { %5825 = vmatpush3.bf16.msra.mxu0 %v6218_v55 }
 0x7f8   : > { %5850 = vmatprep.subr.bf16.mxu0 %v6508_v0 }
 0x845   : > { %v2777_v51 = vpop.f32.mrb[120].mxu1 }
 0x846   : > { %v2700_v8 = vpop.f32.mrb[84].mxu0  ;;  %v5668_v18 = vpop.f32.mrb[121].mxu1 }
 0x847   : > { %v2778_v47 = vadd.f32 %v2777_v51, %v2700_v8  ;;  %v5652_v6 = vpop.f32.mrb[85].mxu0  ;;  %v2780_v39 = vpop.f32.mrb[122].mxu1 }
 0x848   : > { %v2703_v42 = vpop.f32.mrb[86].mxu0  ;;  %v5669_v62 = vpop.f32.mrb[123].mxu1 }
 0x849   : > { %v2781_v63 = vadd.f32 %v2780_v39, %v2703_v42  ;;  %v5653_v28 = vpop.f32.mrb[87].mxu0 }
 0x855   : > { %v2708_v61 = vpop.f32.mrb[88].mxu0  ;;  %v2785_v4 = vpop.f32.mrb[124].mxu1 }
 0x856   : > { %v2786_v11 = vadd.f32 %v2785_v4, %v2708_v61  ;;  %v5656_v35 = vpop.f32.mrb[89].mxu0  ;;  %v5672_v1 = vpop.f32.mrb[125].mxu1 }
 0x857   : > { %v2711_v5 = vpop.f32.mrb[90].mxu0  ;;  %v2788_v3 = vpop.f32.mrb[126].mxu1 }
 0x858   : > { %v2789_v23 = vadd.f32 %v2788_v3, %v2711_v5  ;;  %v5657_v9 = vpop.f32.mrb[91].mxu0  ;;  %v5673_v48 = vpop.f32.mrb[127].mxu1 }
 0x85d   : > { %v2716_v60 = vpop.f32.mrb[92].mxu0  ;;  %v2793_v26 = vpop.f32.mrb[128].mxu1 }
 0x85e   : > { %v2794_v22 = vadd.f32 %v2793_v26, %v2716_v60  ;;  %v5660_v44 = vpop.f32.mrb[93].mxu0  ;;  %v5676_v24 = vpop.f32.mrb[129].mxu1 }
 0x85f   : > { %v2719_v15 = vpop.f32.mrb[94].mxu0  ;;  %v2796_v14 = vpop.f32.mrb[130].mxu1 }
 0x860   : > { %v5661_v57 = vpop.f32.mrb[95].mxu0  ;;  %v5677_v53 = vpop.f32.mrb[131].mxu1 }
 0x865   : > { %v2872_v17 = vpop.f32.mrb[96].mxu0  ;;  %v2972_v12 = vpop.f32.mrb[132].mxu1 }
 0x866   : > { %v2894_v50 = vadd.f32 %v2872_v17, %v2778_v47  ;;  %v5684_v16 = vpop.f32.mrb[97].mxu0  ;;  %v5700_v34 = vpop.f32.mrb[133].mxu1 }
 0x867   : > { %v2875_v54 = vpop.f32.mrb[98].mxu0  ;;  %v2975_v27 = vpop.f32.mrb[134].mxu1 }
 0x868   : > { %v2994_v7 = vadd.f32 %v2972_v12, %v2894_v50  ;;  %v2895_v41 = vadd.f32 %v2875_v54, %v2781_v63  ;;  %v5685_v58 = vpop.f32.mrb[99].mxu0  ;;  %v5701_v32 = vpop.f32.mrb[135].mxu1 }
 0x86a   : > { %v2995_v29 = vadd.f32 %v2975_v27, %v2895_v41 }
 0x86d   : > { %v2880_v21 = vpop.f32.mrb[100].mxu0  ;;  %v2980_v43 = vpop.f32.mrb[136].mxu1 }
 0x86e   : > { %v2896_v49 = vadd.f32 %v2880_v21, %v2786_v11  ;;  %v5688_v36 = vpop.f32.mrb[101].mxu0  ;;  %v5704_v45 = vpop.f32.mrb[137].mxu1 }
 0x86f   : > { %v2883_v30 = vpop.f32.mrb[102].mxu0  ;;  %v2983_v20 = vpop.f32.mrb[138].mxu1 }
 0x870   : > { %v2996_v33 = vadd.f32 %v2980_v43, %v2896_v49  ;;  %v2897_v2 = vadd.f32 %v2883_v30, %v2789_v23  ;;  %v5689_v25 = vpop.f32.mrb[103].mxu0  ;;  %v5705_v38 = vpop.f32.mrb[139].mxu1 }
 0x872   : > { %v2997_v52 = vadd.f32 %v2983_v20, %v2897_v2 }
 0x875   : > { %v2888_v19 = vpop.f32.mrb[104].mxu0  ;;  %v2988_v46 = vpop.f32.mrb[140].mxu1 }
 0x876   : > { %v2898_v31 = vadd.f32 %v2888_v19, %v2794_v22  ;;  %v5692_v40 = vpop.f32.mrb[105].mxu0  ;;  %v5708_v59 = vpop.f32.mrb[141].mxu1 }
 0x877   : > { %v2891_v10 = vpop.f32.mrb[106].mxu0  ;;  %v2991_v37 = vpop.f32.mrb[142].mxu1 }
 0x878   : > { %v2998_v56 = vadd.f32 %v2988_v46, %v2898_v31  ;;  %v5693_v13 = vpop.f32.mrb[107].mxu0  ;;  %v5709_v55 = vpop.f32.mrb[143].mxu1 }
 0x87d   : > { %v3072_v8 = vpop.f32.mrb[108].mxu0  ;;  %v3172_v51 = vpop.f32.mrb[144].mxu1 }
 0x87e   : > { %v3094_v47 = vadd.f32 %v3072_v8, %v2994_v7  ;;  %v5716_v6 = vpop.f32.mrb[109].mxu0  ;;  %v5732_v18 = vpop.f32.mrb[145].mxu1 }
 0x87f   : > { %v3075_v42 = vpop.f32.mrb[110].mxu0  ;;  %v3175_v39 = vpop.f32.mrb[146].mxu1 }
 0x880   : > { %v3194_v63 = vadd.f32 %v3172_v51, %v3094_v47  ;;  %v3095_v28 = vadd.f32 %v3075_v42, %v2995_v29  ;;  %v5717_v62 = vpop.f32.mrb[111].mxu0  ;;  %v5733_v61 = vpop.f32.mrb[147].mxu1 }
 0x882   : > { %v3195_v4 = vadd.f32 %v3175_v39, %v3095_v28  ;;  %v4933_v39 = vld [vmem:[%s7908_s9] ss:$0 sm:$0xff] }
 0x885   : > { %v3080_v11 = vpop.f32.mrb[112].mxu0  ;;  %v3180_v35 = vpop.f32.mrb[148].mxu1 }
 0x886   : > { %v3096_v1 = vadd.f32 %v3080_v11, %v2996_v33  ;;  %v5720_v5 = vpop.f32.mrb[113].mxu0  ;;  %v5736_v3 = vpop.f32.mrb[149].mxu1 }
 0x887   : > { %v3083_v23 = vpop.f32.mrb[114].mxu0  ;;  %v3183_v9 = vpop.f32.mrb[150].mxu1 }
 0x888   : > { %v3196_v48 = vadd.f32 %v3180_v35, %v3096_v1  ;;  %v3097_v60 = vadd.f32 %v3083_v23, %v2997_v52  ;;  %v5721_v26 = vpop.f32.mrb[115].mxu0  ;;  %v5737_v22 = vpop.f32.mrb[151].mxu1 }
 0x88a   : > { %v3197_v44 = vadd.f32 %v3183_v9, %v3097_v60 }
 0x88d   : > { %v3088_v24 = vpop.f32.mrb[116].mxu0  ;;  %v3188_v15 = vpop.f32.mrb[152].mxu1 }
 0x88e   : > { %v3098_v14 = vadd.f32 %v3088_v24, %v2998_v56  ;;  %v5724_v57 = vpop.f32.mrb[117].mxu0  ;;  %v5740_v53 = vpop.f32.mrb[153].mxu1 }
 0x88f   : > { %v3091_v17 = vpop.f32.mrb[118].mxu0  ;;  %v3191_v12 = vpop.f32.mrb[154].mxu1 }
 0x890   : > { %v3198_v50 = vadd.f32 %v3188_v15, %v3098_v14  ;;  %v5725_v16 = vpop.f32.mrb[119].mxu0  ;;  %v5741_v34 = vpop.f32.mrb[155].mxu1  ;;  %v6219_v14 = vld [vmem:[%s7909_s10 + $0x80] sm:$0xff]  }
 0x891   : > { %v6220_v12 = vld [vmem:[%s7909_s10 + $0xc0] sm:$0xff]  }
 0x895   : > { %v3272_v54 = vpop.f32.mrb[120].mxu0  ;;  %v3372_v27 = vpop.f32.mrb[156].mxu1 }
 0x896   : > { %v3294_v7 = vadd.f32 %v3272_v54, %v3194_v63  ;;  %v5748_v41 = vpop.f32.mrb[121].mxu0  ;;  %v5764_v58 = vpop.f32.mrb[157].mxu1 }
 0x897   : > { %v3275_v32 = vpop.f32.mrb[122].mxu0  ;;  %v3375_v29 = vpop.f32.mrb[158].mxu1  ;;  %v6221_v58 = vld [vmem:[%s7909_s10 + $0x88] sm:$0xff]  }
 0x898   : > { %v3394_v21 = vadd.f32 %v3372_v27, %v3294_v7  ;;  %v3295_v43 = vadd.f32 %v3275_v32, %v3195_v4  ;;  %v5749_v49 = vpop.f32.mrb[123].mxu0  ;;  %v5765_v36 = vpop.f32.mrb[159].mxu1  ;;  %v6222_v32 = vld [vmem:[%s7909_s10 + $0xc8] sm:$0xff]  }
 0x899   : > { %v6225_v49 = vld [vmem:[%s7909_s10 + $0x98] sm:$0xff]  }
 0x89a   : > { %v3395_v45 = vadd.f32 %v3375_v29, %v3295_v43  ;;  %v6224_v43 = vld [vmem:[%s7909_s10 + $0xd0] sm:$0xff]   ;;  %v6226_v36 = vld [vmem:[%s7909_s10 + $0xd8] sm:$0xff]  }
 0x89d   : > { %v3280_v30 = vpop.f32.mrb[124].mxu0  ;;  %v3380_v20 = vpop.f32.mrb[160].mxu1 }
 0x89e   : > { %v3296_v33 = vadd.f32 %v3280_v30, %v3196_v48  ;;  %v5752_v2 = vpop.f32.mrb[125].mxu0  ;;  %v5768_v25 = vpop.f32.mrb[161].mxu1  ;;  %v6228_v30 = vld [vmem:[%s7909_s10 + $0xe0] sm:$0xff]  }
 0x89f   : > { %v3283_v38 = vpop.f32.mrb[126].mxu0  ;;  %v3383_v52 = vpop.f32.mrb[162].mxu1  ;;  %v6231_v2 = vld [vmem:[%s7909_s10 + $0xb0] sm:$0xff]  }
 0x8a0   : > { %v3396_v19 = vadd.f32 %v3380_v20, %v3296_v33  ;;  %v3297_v46 = vadd.f32 %v3283_v38, %v3197_v44  ;;  %v5753_v31 = vpop.f32.mrb[127].mxu0  ;;  %v5769_v40 = vpop.f32.mrb[163].mxu1  ;;  %v6229_v20 = vld [vmem:[%s7909_s10 + $0xa8] sm:$0xff]   ;;  %v6232_v25 = vld [vmem:[%s7909_s10 + $0xf0] sm:$0xff]   ;;  %v6233_v38 = vld [vmem:[%s7909_s10 + $0xb8] sm:$0xff]  }
 0x8a1   : > { %v6230_v33 = vld [vmem:[%s7909_s10 + $0xe8] sm:$0xff]   ;;  %v6235_v31 = vld [vmem:[%s7909_s10 + $0x100] sm:$0xff]  }
 0x8a2   : > { %v3397_v59 = vadd.f32 %v3383_v52, %v3297_v46  ;;  %v6234_v52 = vld [vmem:[%s7909_s10 + $0xf8] sm:$0xff]   ;;  %v6236_v40 = vld [vmem:[%s7909_s10 + $0x140] sm:$0xff]  }
 0x8a5   : > { %v3288_v10 = vpop.f32.mrb[128].mxu0  ;;  %v3388_v37 = vpop.f32.mrb[164].mxu1 }
 0x8a6   : > { %v3298_v56 = vadd.f32 %v3288_v10, %v3198_v50  ;;  %v5756_v13 = vpop.f32.mrb[129].mxu0  ;;  %v5772_v55 = vpop.f32.mrb[165].mxu1 }
 0x8a7   : > { %v3291_v8 = vpop.f32.mrb[130].mxu0  ;;  %v3391_v51 = vpop.f32.mrb[166].mxu1  ;;  %v6239_v13 = vld [vmem:[%s7909_s10 + $0x110] sm:$0xff]  }
 0x8a8   : > { %v3398_v47 = vadd.f32 %v3388_v37, %v3298_v56  ;;  %v5757_v6 = vpop.f32.mrb[131].mxu0  ;;  %v5773_v18 = vpop.f32.mrb[167].mxu1  ;;  %v6237_v37 = vld [vmem:[%s7909_s10 + $0x108] sm:$0xff]   ;;  %v6240_v55 = vld [vmem:[%s7909_s10 + $0x150] sm:$0xff]   ;;  %v6241_v8 = vld [vmem:[%s7909_s10 + $0x118] sm:$0xff]  }
 0x8a9   : > { %v6238_v56 = vld [vmem:[%s7909_s10 + $0x148] sm:$0xff]   ;;  %v6242_v51 = vld [vmem:[%s7909_s10 + $0x158] sm:$0xff]   ;;  %v6244_v6 = vld [vmem:[%s7909_s10 + $0x160] sm:$0xff]  }
 0x8aa   : > { %v6245_v18 = vld [vmem:[%s7909_s10 + $0x128] sm:$0xff]  }
 0x8ad   : > { %v3472_v42 = vpop.f32.mrb[132].mxu0 }
 0x8ae   : > { %v3494_v63 = vadd.f32 %v3472_v42, %v3394_v21  ;;  %v5780_v28 = vpop.f32.mrb[133].mxu0  ;;  %v6223_v21 = vld [vmem:[%s7909_s10 + $0x90] sm:$0xff]   ;;  %v6246_v42 = vld [vmem:[%s7909_s10 + $0x168] sm:$0xff]  }
 0x8af   : > { %v3475_v62 = vpop.f32.mrb[134].mxu0  ;;  %v6249_v28 = vld [vmem:[%s7909_s10 + $0x138] sm:$0xff]  }
 0x8b0   : > { %v3506_v61 = vadd.f32 %v4933_v39, %v3494_v63  ;;  %v3495_v4 = vadd.f32 %v3475_v62, %v3395_v45  ;;  %v5781_v11 = vpop.f32.mrb[135].mxu0  ;;  %v6227_v45 = vld [vmem:[%s7909_s10 + $0xa0] sm:$0xff]   ;;  %v6248_v63 = vld [vmem:[%s7909_s10 + $0x170] sm:$0xff]   ;;  %v6250_v62 = vld [vmem:[%s7909_s10 + $0x178] sm:$0xff]  }
 0x8b1   : > { %v6251_v11 = vld [vmem:[%s7909_s10 + $0x180] sm:$0xff]  }
 0x8b2   : > { %v3511_v35 = vmax.f32 %v3506_v61, 0.0  ;;  %v3507_v1 = vadd.f32 %v4933_v39, %v3495_v4 }
 0x8b4   : > { %3516 = vst [vmem:[#allocation4 + $0x7] sm:$0xf] %v3511_v35  ;;  %v3512_v5 = vmax.f32 %v3507_v1, 0.0  ;;  %v6252_v35 = vld [vmem:[%s7909_s10 + $0x1c0] sm:$0xff]  }
 0x8b5   : > { %v3480_v3 = vpop.f32.mrb[136].mxu0 }
 0x8b6   : > { %3517 = vst [vmem:[#allocation4 + $0xb] sm:$0x3c] %v3512_v5  ;;  %v3496_v23 = vadd.f32 %v3480_v3, %v3396_v19  ;;  %v5784_v9 = vpop.f32.mrb[137].mxu0  ;;  %v6253_v3 = vld [vmem:[%s7909_s10 + $0x188] sm:$0xff]  }
 0x8b7   : > { %v3483_v48 = vpop.f32.mrb[138].mxu0  ;;  %v6255_v9 = vld [vmem:[%s7909_s10 + $0x190] sm:$0xff]  }
 0x8b8   : > { %v3508_v60 = vadd.f32 %v4933_v39, %v3496_v23  ;;  %v3497_v26 = vadd.f32 %v3483_v48, %v3397_v59  ;;  %v5785_v22 = vpop.f32.mrb[139].mxu0  ;;  %v6254_v23 = vld [vmem:[%s7909_s10 + $0x1c8] sm:$0xff]   ;;  %v6256_v48 = vld [vmem:[%s7909_s10 + $0x1d0] sm:$0xff]  }
 0x8b9   : > { %v6259_v22 = vld [vmem:[%s7909_s10 + $0x1a0] sm:$0xff]  }
 0x8ba   : > { %v3513_v44 = vmax.f32 %v3508_v60, 0.0  ;;  %v3509_v24 = vadd.f32 %v4933_v39, %v3497_v26  ;;  %v6257_v60 = vld [vmem:[%s7909_s10 + $0x198] sm:$0xff]  }
 0x8bb   : > { %v6258_v26 = vld [vmem:[%s7909_s10 + $0x1d8] sm:$0xff]  }
 0x8bc   : > { %3518 = vst [vmem:[#allocation4 + $0xf] sm:$0xf0] %v3513_v44  ;;  %v3514_v15 = vmax.f32 %v3509_v24, 0.0  ;;  %v6260_v44 = vld [vmem:[%s7909_s10 + $0x1e0] sm:$0xff]   ;;  %v6261_v24 = vld [vmem:[%s7909_s10 + $0x1a8] sm:$0xff]  }
 0x8bd   : > { %v3488_v57 = vpop.f32.mrb[140].mxu0  ;;  %v3540_v53 = vld [vmem:[#allocation4 + $0x1] ss:$2 sm:$0xff]  ;;  %v3521_v17 = vld [vmem:[#allocation4] ss:$2 sm:$0xff] }
 0x8be   : > { %3519 = vst [vmem:[#allocation4 + $0x13] sm:$0xc0] %v3514_v15  ;;  %v3498_v50 = vadd.f32 %v3488_v57, %v3398_v47  ;;  %v5788_v16 = vpop.f32.mrb[141].mxu0  ;;  %v3541_v34 = vpack.c.bf16 %v3540_v53, %v3540_v53  ;;  %v3522_v54 = vpack.c.bf16 %v3521_v17, %v3521_v17  ;;  %v3736_v19 = vld [vmem:[#allocation4 + $0x2] ss:$2 sm:$0xff]  ;;  %v6262_v15 = vld [vmem:[%s7909_s10 + $0x1e8] sm:$0xff]  }
 0x8bf   : > { %v3491_v27 = vpop.f32.mrb[142].mxu0  ;;  %v3737_v59 = vpack.c.bf16 %v3736_v19, %v3736_v19  ;;  %v6243_v47 = vld [vmem:[%s7909_s10 + $0x120] sm:$0xff]   ;;  %v6264_v57 = vld [vmem:[%s7909_s10 + $0x1f0] sm:$0xff]   ;;  %v6265_v53 = vld [vmem:[%s7909_s10 + $0x1b8] sm:$0xff]  }
 0x8c0   : > { %v3510_v7 = vadd.f32 %v4933_v39, %v3498_v50  ;;  %v5789_v41 = vpop.f32.mrb[143].mxu0  ;;  %5807 = vmatmul.mubr.bf16.vlgmr.msra.gmra.mrb[168].mxu1 %v3541_v34  ;;  %5827 = vmatmul.mubr.bf16.vlgmr.msra.gmra.mrb[144].mxu0 %v3522_v54  ;;  %v6247_v39 = vld [vmem:[%s7909_s10 + $0x130] sm:$0xff]   ;;  %v6266_v17 = vld [vmem:[%s7909_s10 + $0x1f8] sm:$0xff]   ;;  %v6267_v16 = vld [vmem:[%s7909_s10 + $0x200] sm:$0xff]  }
 0x8c1   : > { %5831 = vmatpush3.bf16.msra.mxu1 %v6219_v14  ;;  %5851 = vmatpush3.bf16.msra.mxu0 %v6220_v12  ;;  %v6263_v14 = vld [vmem:[%s7909_s10 + $0x1b0] sm:$0xff]   ;;  %v6268_v27 = vld [vmem:[%s7909_s10 + $0x208] sm:$0xff]   ;;  %v6270_v41 = vld [vmem:[%s7909_s10 + $0x218] sm:$0xff]  }
 0x8c2   : > { %v3515_v29 = vmax.f32 %v3510_v7, 0.0  ;;  %5832 = vmatprep.subr.bf16.mxu1 %v6508_v0  ;;  %5852 = vmatprep.subr.bf16.mxu0 %v6508_v0  ;;  %v6269_v7 = vld [vmem:[%s7909_s10 + $0x210] sm:$0xff]  }
 0x8c3   : > { %5846 = vmatprep.mubr.msk.bf16.mxu1 %vm6510_vm4, %v6508_v0  ;;  %5866 = vmatprep.mubr.msk.bf16.mxu0 %vm6510_vm4, %v6508_v0  ;;  %v3845_v46 = vld [vmem:[#allocation4 + $0x6] ss:$2 sm:$0xff]  ;;  %v3954_v61 = vld [vmem:[#allocation4 + $0x7] ss:$2 sm:$0xff] }
 0x8c4   : > { %3520 = vst [vmem:[#allocation4 + $0x1b] sm:$0x3] %v3515_v29  ;;  %v3846_v10 = vpack.c.bf16 %v3845_v46, %v3845_v46  ;;  %v4063_v4 = vld [vmem:[#allocation4 + $0x8] ss:$2 sm:$0xff]  ;;  %v3955_v1 = vpack.c.bf16 %v3954_v61, %v3954_v61  ;;  %v6273_v29 = vld [vmem:[%s7909_s10 + $0x230] sm:$0xff]  }
 0x8c5   : > { %5833 = vmatpush3.bf16.msra.mxu1 %v6221_v58  ;;  %5853 = vmatpush3.bf16.msra.mxu0 %v6222_v32  ;;  %v4064_v5 = vpack.c.bf16 %v4063_v4, %v4063_v4  ;;  %v4172_v12 = vld [vmem:[#allocation4 + $0xc] ss:$2 sm:$0xff] }
 0x8c6   : > { %5834 = vmatprep.subr.bf16.mxu1 %v6508_v0  ;;  %5854 = vmatprep.subr.bf16.mxu0 %v6508_v0  ;;  %v4173_v34 = vpack.c.bf16 %v4172_v12, %v4172_v12  ;;  %v6271_v58 = vld [vmem:[%s7909_s10 + $0x220] sm:$0xff]   ;;  %v6272_v32 = vld [vmem:[%s7909_s10 + $0x228] sm:$0xff]  }
 0x8c9   : > { %5835 = vmatpush3.bf16.msra.mxu1 %v6223_v21  ;;  %5855 = vmatpush3.bf16.msra.mxu0 %v6224_v43  ;;  %v6274_v21 = vld [vmem:[%s7909_s10 + $0x238] sm:$0xff]  }
 0x8ca   : > { %5836 = vmatprep.subr.bf16.mxu1 %v6508_v0  ;;  %5856 = vmatprep.subr.bf16.mxu0 %v6508_v0 }
 0x8cb   : > { %v4281_v50 = vld [vmem:[#allocation4 + $0xd] ss:$2 sm:$0xff]  ;;  %v4390_v43 = vld [vmem:[#allocation4 + $0xe] ss:$2 sm:$0xff] }
 0x8cc   : > { %v4282_v54 = vpack.c.bf16 %v4281_v50, %v4281_v50 }
 0x8cd   : > { %5837 = vmatpush3.bf16.msra.mxu1 %v6225_v49  ;;  %5857 = vmatpush3.bf16.msra.mxu0 %v6226_v36  ;;  %v4391_v49 = vpack.c.bf16 %v4390_v43, %v4390_v43  ;;  %v6275_v36 = vld [vmem:[#allocation13] sm:$0xff]  }
 0x8ce   : > { %5838 = vmatprep.subr.bf16.mxu1 %v6508_v0  ;;  %5858 = vmatprep.subr.bf16.mxu0 %v6508_v0 }
 0x8d1   : > { %5839 = vmatpush3.bf16.msra.mxu1 %v6227_v45  ;;  %5859 = vmatpush3.bf16.msra.mxu0 %v6228_v30  ;;  %v6276_v45 = vld [vmem:[#allocation13 + $0x8] sm:$0xff]   ;;  %v6277_v30 = vld [vmem:[#allocation13 + $0x10] sm:$0xff]  }
 0x8d2   : > { %5840 = vmatprep.subr.bf16.mxu1 %v6508_v0  ;;  %5860 = vmatprep.subr.bf16.mxu0 %v6508_v0 }
 0x8d5   : > { %5841 = vmatpush3.bf16.msra.mxu1 %v6229_v20  ;;  %5861 = vmatpush3.bf16.msra.mxu0 %v6230_v33 }
 0x8d6   : > { %5842 = vmatprep.subr.bf16.mxu1 %v6508_v0  ;;  %5862 = vmatprep.subr.bf16.mxu0 %v6508_v0 }
 0x8d9   : > { %5843 = vmatpush3.bf16.msra.mxu1 %v6231_v2  ;;  %5863 = vmatpush3.bf16.msra.mxu0 %v6232_v25 }
 0x8da   : > { %5844 = vmatprep.subr.bf16.mxu1 %v6508_v0  ;;  %5864 = vmatprep.subr.bf16.mxu0 %v6508_v0 }
 0x8dd   : > { %5845 = vmatpush3.bf16.msra.mxu1 %v6233_v38  ;;  %5865 = vmatpush3.bf16.msra.mxu0 %v6234_v52 }
 0x8de   : > { %5870 = vmatprep.subr.bf16.mxu1 %v6508_v0  ;;  %5890 = vmatprep.subr.bf16.mxu0 %v6508_v0 }
 0x8e0   : > { %5847 = vmatmul.mubr.bf16.vlgmr.msra.gmra.mrb[172].mxu1 %v3737_v59  ;;  %5867 = vmatmul.mubr.bf16.vlgmr.msra.gmra.mrb[148].mxu0 %v3846_v10  ;;  %v6279_v59 = vld [vmem:[#allocation13 + $0x20] sm:$0xff]   ;;  %v6280_v10 = vld [vmem:[#allocation13 + $0x28] sm:$0xff]  }
 0x8e1   : > { %5871 = vmatpush3.bf16.msra.mxu1 %v6235_v31  ;;  %5891 = vmatpush3.bf16.msra.mxu0 %v6236_v40  ;;  %v6278_v40 = vld [vmem:[#allocation13 + $0x18] sm:$0xff]  }
 0x8e2   : > { %5872 = vmatprep.subr.bf16.mxu1 %v6508_v0  ;;  %5892 = vmatprep.subr.bf16.mxu0 %v6508_v0 }
 0x8e3   : > { %5886 = vmatprep.mubr.msk.bf16.mxu1 %vm6510_vm4, %v6508_v0  ;;  %5906 = vmatprep.mubr.msk.bf16.mxu0 %vm6510_vm4, %v6508_v0 }
 0x8e5   : > { %5873 = vmatpush3.bf16.msra.mxu1 %v6237_v37  ;;  %5893 = vmatpush3.bf16.msra.mxu0 %v6238_v56  ;;  %v6281_v37 = vld [vmem:[#allocation13 + $0x30] sm:$0xff]   ;;  %v6282_v56 = vld [vmem:[#allocation13 + $0x38] sm:$0xff]  }
 0x8e6   : > { %5874 = vmatprep.subr.bf16.mxu1 %v6508_v0  ;;  %5894 = vmatprep.subr.bf16.mxu0 %v6508_v0 }
 0x8e9   : > { %5875 = vmatpush3.bf16.msra.mxu1 %v6239_v13  ;;  %5895 = vmatpush3.bf16.msra.mxu0 %v6240_v55 }
 0x8ea   : > { %5876 = vmatprep.subr.bf16.mxu1 %v6508_v0  ;;  %5896 = vmatprep.subr.bf16.mxu0 %v6508_v0 }
 0x8ed   : > { %5877 = vmatpush3.bf16.msra.mxu1 %v6241_v8  ;;  %5897 = vmatpush3.bf16.msra.mxu0 %v6242_v51 }
 0x8ee   : > { %5878 = vmatprep.subr.bf16.mxu1 %v6508_v0  ;;  %5898 = vmatprep.subr.bf16.mxu0 %v6508_v0 }
 0x8f1   : > { %5879 = vmatpush3.bf16.msra.mxu1 %v6243_v47  ;;  %5899 = vmatpush3.bf16.msra.mxu0 %v6244_v6 }
 0x8f2   : > { %5880 = vmatprep.subr.bf16.mxu1 %v6508_v0  ;;  %5900 = vmatprep.subr.bf16.mxu0 %v6508_v0 }
 0x8f5   : > { %5881 = vmatpush3.bf16.msra.mxu1 %v6245_v18  ;;  %5901 = vmatpush3.bf16.msra.mxu0 %v6246_v42 }
 0x8f6   : > { %5882 = vmatprep.subr.bf16.mxu1 %v6508_v0  ;;  %5902 = vmatprep.subr.bf16.mxu0 %v6508_v0 }
 0x8f9   : > { %5883 = vmatpush3.bf16.msra.mxu1 %v6247_v39  ;;  %5903 = vmatpush3.bf16.msra.mxu0 %v6248_v63 }
 0x8fa   : > { %5884 = vmatprep.subr.bf16.mxu1 %v6508_v0  ;;  %5904 = vmatprep.subr.bf16.mxu0 %v6508_v0 }
 0x8fd   : > { %5885 = vmatpush3.bf16.msra.mxu1 %v6249_v28  ;;  %5905 = vmatpush3.bf16.msra.mxu0 %v6250_v62 }
 0x8fe   : > { %5910 = vmatprep.subr.bf16.mxu1 %v6508_v0  ;;  %5930 = vmatprep.subr.bf16.mxu0 %v6508_v0 }
 0x900   : > { %5887 = vmatmul.mubr.bf16.vlgmr.msra.gmra.mrb[176].mxu1 %v3955_v1  ;;  %5907 = vmatmul.mubr.bf16.vlgmr.msra.gmra.mrb[152].mxu0 %v4064_v5 }
 0x901   : > { %5911 = vmatpush3.bf16.msra.mxu1 %v6251_v11  ;;  %5931 = vmatpush3.bf16.msra.mxu0 %v6252_v35 }
 0x902   : > { %5912 = vmatprep.subr.bf16.mxu1 %v6508_v0  ;;  %5932 = vmatprep.subr.bf16.mxu0 %v6508_v0 }
 0x903   : > { %5926 = vmatprep.mubr.msk.bf16.mxu1 %vm6510_vm4, %v6508_v0  ;;  %5946 = vmatprep.mubr.msk.bf16.mxu0 %vm6510_vm4, %v6508_v0 }
 0x905   : > { %5913 = vmatpush3.bf16.msra.mxu1 %v6253_v3  ;;  %5933 = vmatpush3.bf16.msra.mxu0 %v6254_v23 }
 0x906   : > { %5914 = vmatprep.subr.bf16.mxu1 %v6508_v0  ;;  %5934 = vmatprep.subr.bf16.mxu0 %v6508_v0 }
 0x909   : > { %5915 = vmatpush3.bf16.msra.mxu1 %v6255_v9  ;;  %5935 = vmatpush3.bf16.msra.mxu0 %v6256_v48 }
 0x90a   : > { %5916 = vmatprep.subr.bf16.mxu1 %v6508_v0  ;;  %5936 = vmatprep.subr.bf16.mxu0 %v6508_v0 }
 0x90d   : > { %5917 = vmatpush3.bf16.msra.mxu1 %v6257_v60  ;;  %5937 = vmatpush3.bf16.msra.mxu0 %v6258_v26 }
 0x90e   : > { %5918 = vmatprep.subr.bf16.mxu1 %v6508_v0  ;;  %5938 = vmatprep.subr.bf16.mxu0 %v6508_v0 }
 0x911   : > { %5919 = vmatpush3.bf16.msra.mxu1 %v6259_v22  ;;  %5939 = vmatpush3.bf16.msra.mxu0 %v6260_v44 }
 0x912   : > { %5920 = vmatprep.subr.bf16.mxu1 %v6508_v0  ;;  %5940 = vmatprep.subr.bf16.mxu0 %v6508_v0 }
 0x915   : > { %5921 = vmatpush3.bf16.msra.mxu1 %v6261_v24  ;;  %5941 = vmatpush3.bf16.msra.mxu0 %v6262_v15 }
 0x916   : > { %5922 = vmatprep.subr.bf16.mxu1 %v6508_v0  ;;  %5942 = vmatprep.subr.bf16.mxu0 %v6508_v0 }
 0x919   : > { %5923 = vmatpush3.bf16.msra.mxu1 %v6263_v14  ;;  %5943 = vmatpush3.bf16.msra.mxu0 %v6264_v57 }
 0x91a   : > { %5924 = vmatprep.subr.bf16.mxu1 %v6508_v0  ;;  %5944 = vmatprep.subr.bf16.mxu0 %v6508_v0 }
 0x91d   : > { %5925 = vmatpush3.bf16.msra.mxu1 %v6265_v53  ;;  %5945 = vmatpush3.bf16.msra.mxu0 %v6266_v17  ;;  %v5134_v53 = vld [vmem:[%s7910_s11] ss:$0 sm:$0xff] }
 0x91e   : > { %5950 = vmatprep.subr.bf16.mxu1 %v6508_v0  ;;  %5970 = vmatprep.subr.bf16.mxu0 %v6508_v0 }
 0x920   : > { %5927 = vmatmul.mubr.bf16.vlgmr.msra.gmra.mrb[180].mxu1 %v4173_v34  ;;  %5947 = vmatmul.mubr.bf16.vlgmr.msra.gmra.mrb[156].mxu0 %v4282_v54 }
 0x921   : > { %5951 = vmatpush3.bf16.msra.mxu1 %v6267_v16  ;;  %5966 = vmatprep.mubr.msk.bf16.mxu1 %vm6510_vm4, %v6508_v0 }
 0x922   : > { %5952 = vmatprep.subr.bf16.mxu1 %v6508_v0  ;;  %5986 = vmatprep.mubr.msk.bf16.mxu0 %vm6510_vm4, %v6508_v0 }
 0x923   : > { %5971 = vmatpush3.bf16.msra.mxu0 %v6275_v36 }
 0x924   : > { %5972 = vmatprep.subr.bf16.mxu0 %v6508_v0 }
 0x925   : > { %5953 = vmatpush3.bf16.msra.mxu1 %v6268_v27 }
 0x926   : > { %5954 = vmatprep.subr.bf16.mxu1 %v6508_v0 }
 0x927   : > { %5973 = vmatpush3.bf16.msra.mxu0 %v6276_v45 }
 0x928   : > { %5974 = vmatprep.subr.bf16.mxu0 %v6508_v0 }
 0x929   : > { %5955 = vmatpush3.bf16.msra.mxu1 %v6269_v7 }
 0x92a   : > { %5956 = vmatprep.subr.bf16.mxu1 %v6508_v0 }
 0x92b   : > { %5975 = vmatpush3.bf16.msra.mxu0 %v6277_v30 }
 0x92c   : > { %5976 = vmatprep.subr.bf16.mxu0 %v6508_v0 }
 0x92d   : > { %5957 = vmatpush3.bf16.msra.mxu1 %v6270_v41 }
 0x92e   : > { %5958 = vmatprep.subr.bf16.mxu1 %v6508_v0 }
 0x92f   : > { %5977 = vmatpush3.bf16.msra.mxu0 %v6278_v40 }
 0x930   : > { %5978 = vmatprep.subr.bf16.mxu0 %v6508_v0 }
 0x931   : > { %5959 = vmatpush3.bf16.msra.mxu1 %v6271_v58 }
 0x932   : > { %5960 = vmatprep.subr.bf16.mxu1 %v6508_v0 }
 0x933   : > { %5979 = vmatpush3.bf16.msra.mxu0 %v6279_v59 }
 0x934   : > { %5980 = vmatprep.subr.bf16.mxu0 %v6508_v0 }
 0x935   : > { %5961 = vmatpush3.bf16.msra.mxu1 %v6272_v32 }
 0x936   : > { %5962 = vmatprep.subr.bf16.mxu1 %v6508_v0 }
 0x937   : > { %5981 = vmatpush3.bf16.msra.mxu0 %v6280_v10 }
 0x938   : > { %5982 = vmatprep.subr.bf16.mxu0 %v6508_v0 }
 0x939   : > { %5963 = vmatpush3.bf16.msra.mxu1 %v6273_v29 }
 0x93a   : > { %5964 = vmatprep.subr.bf16.mxu1 %v6508_v0 }
 0x93b   : > { %5983 = vmatpush3.bf16.msra.mxu0 %v6281_v37 }
 0x93c   : > { %5984 = vmatprep.subr.bf16.mxu0 %v6508_v0 }
 0x93d   : > { %5965 = vmatpush3.bf16.msra.mxu1 %v6274_v21 }
 0x93f   : > { %5985 = vmatpush3.bf16.msra.mxu0 %v6282_v56 }
 0x940   : > { %5967 = vmatmul.mubr.bf16.vlgmr.msra.gmra.mrb[184].mxu1 %v4391_v49  ;;  %v4535_v49 = vld [vmem:[%s7958_s23] sm:$0x1] }
 0x993   : > { %v3641_v20 = vpop.f32.mrb[168].mxu1  ;;  %v3729_v33 = vpop.f32.mrb[144].mxu0 }
 0x994   : > { %v3730_v2 = vadd.f32 %v3729_v33, %v3641_v20  ;;  %v5808_v25 = vpop.f32.mrb[169].mxu1  ;;  %v5828_v38 = vpop.f32.mrb[145].mxu0 }
 0x995   : > { %v3644_v52 = vpop.f32.mrb[170].mxu1  ;;  %v3732_v19 = vpop.f32.mrb[146].mxu0 }
 0x996   : > { %v5809_v46 = vpop.f32.mrb[171].mxu1  ;;  %v5829_v31 = vpop.f32.mrb[147].mxu0 }
 0x9b3   : > { %v3837_v13 = vpop.f32.mrb[172].mxu1  ;;  %v3946_v55 = vpop.f32.mrb[148].mxu0 }
 0x9b4   : > { %v3843_v8 = vadd.f32 %v3837_v13, %v3730_v2  ;;  %v5848_v51 = vpop.f32.mrb[173].mxu1  ;;  %v5868_v47 = vpop.f32.mrb[149].mxu0 }
 0x9b5   : > { %v3840_v6 = vpop.f32.mrb[174].mxu1  ;;  %v3949_v18 = vpop.f32.mrb[150].mxu0 }
 0x9b6   : > { %v3952_v42 = vadd.f32 %v3946_v55, %v3843_v8  ;;  %v5849_v39 = vpop.f32.mrb[175].mxu1  ;;  %v5869_v63 = vpop.f32.mrb[151].mxu0 }
 0x9d3   : > { %v4055_v28 = vpop.f32.mrb[176].mxu1  ;;  %v4164_v62 = vpop.f32.mrb[152].mxu0 }
 0x9d4   : > { %v4061_v61 = vadd.f32 %v4055_v28, %v3952_v42  ;;  %v5888_v4 = vpop.f32.mrb[177].mxu1  ;;  %v5908_v11 = vpop.f32.mrb[153].mxu0 }
 0x9d5   : > { %v4058_v35 = vpop.f32.mrb[178].mxu1  ;;  %v4167_v1 = vpop.f32.mrb[154].mxu0 }
 0x9d6   : > { %v4170_v5 = vadd.f32 %v4164_v62, %v4061_v61  ;;  %v5889_v0 = vpop.f32.mrb[179].mxu1  ;;  %v5909_v3 = vpop.f32.mrb[155].mxu0 }
 0x9f3   : > { %v4273_v23 = vpop.f32.mrb[180].mxu1  ;;  %v4382_v9 = vpop.f32.mrb[156].mxu0 }
 0x9f4   : > { %v4279_v48 = vadd.f32 %v4273_v23, %v4170_v5  ;;  %v5928_v60 = vpop.f32.mrb[181].mxu1  ;;  %v5948_v26 = vpop.f32.mrb[157].mxu0 }
 0x9f5   : > { %v4276_v22 = vpop.f32.mrb[182].mxu1  ;;  %v4385_v44 = vpop.f32.mrb[158].mxu0 }
 0x9f6   : > { %v4388_v24 = vadd.f32 %v4382_v9, %v4279_v48  ;;  %v5929_v15 = vpop.f32.mrb[183].mxu1  ;;  %v5949_v14 = vpop.f32.mrb[159].mxu0 }
 0xa13   : > { %v4491_v57 = vpop.f32.mrb[184].mxu1 }
 0xa14   : > { %v4497_v17 = vadd.f32 %v4491_v57, %v4388_v24  ;;  %v5968_v12 = vpop.f32.mrb[185].mxu1 }
 0xa15   : > { %v4494_v50 = vpop.f32.mrb[186].mxu1 }
 0xa16   : > { %v4505_v16 = vadd.f32 %v5134_v53, %v4497_v17  ;;  %v5969_v34 = vpop.f32.mrb[187].mxu1 }
 0xa18   : > { %v4506_v54 = vmax.f32 %v4505_v16, 0.0 }
 0xa1a   : > { %v4508_v27 = vrot.slane %v4506_v54, 1  ;;  %v4511_v41 = vrot.slane %v4506_v54, 6  ;;  %v4514_v32 = vrot.slane %v4506_v54, 7 }
 0xa1c   : > { %v4510_v7 = vadd.f32 %v4508_v27, %v4506_v54 }
 0xa1e   : > { %v4513_v58 = vadd.f32 %v4511_v41, %v4510_v7 }
 0xa20   : > { %v4516_v29 = vadd.f32 %v4514_v32, %v4513_v58 }
 0xa22   : > { %v4517_v21 = vmul.f32 0.25, %v4516_v29 }
 0xa24   : > { %v4518_v43 = vpack.c.bf16 %v4517_v21, %v4517_v21 }
 0xa26   : > { %5987 = vmatmul.mubr.bf16.vlgmr.msra.gmra.mrb[160].mxu0 %v4518_v43 }
 0xaf9   : > { %v4618_v36 = vpop.f32.mrb[160].mxu0 }
 0xafa   : > { %v4619_v45 = vadd.f32 %v4618_v36, %v4535_v49  ;;  %v5988_v30 = vpop.f32.mrb[161].mxu0 }
 0xafb   : > { %v4621_v20 = vpop.f32.mrb[162].mxu0 }
 0xafc   : > { %4624 = vst [vmem:[%s532_s29] sm:$0x1] %v4619_v45  ;;  %v5989_v33 = vpop.f32.mrb[163].mxu0 }
 0xafd   : > { %6436 = shalt.err (!%p6433_p0)
}
 0xafe   : > { %s6437_s15 = scalar_lea.hbm %s7857_s16, 16  ;;  %s6441_s8 = scalar_lea.hbm %s7960_s27, 32 }
 0xaff   : > { %p6438_p10 = scmp.ne.s32.totalorder %s7857_s16, %s6437_s15  ;;  %p6442_p4 = scmp.lt.u32.totalorder %s7857_s16, %s7960_s27 }
 0xb00   : > { %p6443_p12 = scmp.lt.u32.totalorder %s6441_s8, %s6437_s15  ;;  %p6445_p8 = scmp.lt.u32.totalorder %s6437_s15, %s7857_s16 }
 0xb01   : > { %p6439_p2 = pnand %p6438_p10, %p7961_p11 }
 0xb02   : > { %p6444_p7 = por %p6443_p12, %p6442_p4 }
 0xb03   : > { %p6440_p3 = pneg %p6439_p2 }
 0xb04   : > { %p6446_p13 = por %p6445_p8, %p6444_p7 }
 0xb06   : > { %p6447_p1 = pnand %p6446_p13, %p6440_p3 }
 0xb08   : > { %6450 = shalt.err (!%p6447_p1)
}
 0xb09   : > { %6035 = dma.vmem_to_hbm [thread:$0]  (%p7961_p11), %s7859_s20, 16, %s7857_s16, %s4626_s25  }
 0xb0a PF: > { %s7962_s23 = sld [smem:[#allocation22_spill]]  ;;  %s7963_s21 = sld [smem:[#allocation19_spill]] }
 0xb0b   : > { %s7964_s29 = sld [smem:[#allocation26_spill]] }
 0xb10   : > { %p6067_p6 = scmp.ge.s32.totalorder %s7962_s23, 2  ;;  %s4650_s13 = sand.u32 1, %s7963_s21  }
 0xb11   : > { %p7965_p9 = scmp.ne.s32.totalorder %s7964_s29, 0  ;;  %s4651_s24 = scalar_lea.sflag [#allocation7], %s4650_s13 }
 0xb13   : > { %p6054_p5 = pnand %p6067_p6, %p7965_p9 }
 0xb15   : > { %6480 = dma.done.wait (!%p6054_p5), %s4651_s24, 16  }
 0xb16   : > { %6482 = vsyncadd (!%p6054_p5), %s4651_s24, 4294967280  ;;  %s7966_s16 = sld [smem:[#allocation23_spill]]  ;;  %s7967_s29 = sld [smem:[#allocation20_spill]] }
 0xb17   : > { %s7968_s30 = sld [smem:[#allocation21_spill]]  ;;  %s7969_s15 = sld [smem:[#allocation24_spill]] }
 0xb1c   : > { %p27_p0 = scmp.ge.s32.totalorder %s7966_s16, 4  }
 0xb1e   :  { %29 = sbr.rel (!%p27_p0) target bundleno = 11 (0xb), region = 211 }
 0xb25   :  { %4655 = vsyncpa [#allocation6], 1 }
 0xb26   :  { %4657 = vsyncpa [#allocation6 + $0x1], 1 }
 0xb27   :  { %4658 = vsyncpa [#allocation9], 1 }
 0xb28   :  { %4659 = vsyncpa [#allocation12], 1 }
 0xb29   :  { %4660 = vsyncpa [#allocation7], 1 }
 0xb2a   :  { %4662 = vsyncpa [#allocation7 + $0x1], 1 }

</bundles_post_ra>
